<compile_context>
chip_gen: v7x
topology: tpu7x:2x2x1
jax: 0.10.0
libtpu: 0.0.40
codegen_flags: <defaults>
</compile_context>

<pallas_src>
import jax
import jax.numpy as jnp
from jax.experimental import pallas as pl
from jax.experimental.pallas import tpu as pltpu

EPS = 1e-5


def _instance_norm(y):
    # y: (N, C) float32. Per-channel stats over the spatial (N) axis,
    # biased variance, no affine. Single pass for the statistics.
    inv_n = 1.0 / y.shape[0]
    mean = jnp.sum(y, axis=0, keepdims=True) * inv_n
    ex2 = jnp.sum(y * y, axis=0, keepdims=True) * inv_n
    var = ex2 - mean * mean
    return (y - mean) * jax.lax.rsqrt(var + EPS)


def _conv3x3(x3, w_ref):
    """3x3 conv with 1-pixel reflection padding, shift-and-accumulate form.

    x3:    (H, W, C) activations in the MXU dtype (bf16).
    w_ref: (9, Cin, Cout) weight ref, tap index k = ky*3 + kx.
    Returns (H*W, C) float32 (MXU accumulates in f32).
    """
    H, W, C = x3.shape
    # Row (H) shifts with reflection. H is the outer dim (not sublane/lane),
    # so these concats are cheap per-tile copies.
    rows = (
        jnp.concatenate([x3[1:2], x3[:-1]], axis=0),    # ky=0: x[refl(i-1), :]
        x3,                                             # ky=1: x[i, :]
        jnp.concatenate([x3[1:], x3[-2:-1]], axis=0),   # ky=2: x[refl(i+1), :]
    )
    acc = jnp.zeros((H * W, C), jnp.float32)
    for ky, xr in enumerate(rows):
        # Column (W) shifts with reflection.
        # TODO(synk): these are sublane-axis concats (materialized copies); a
        # pltpu.roll-based shift + boundary fixup would move them onto the XLU slot.
        cols = (
            jnp.concatenate([xr[:, 1:2], xr[:, :-1]], axis=1),   # kx=0: refl(j-1)
            xr,                                                  # kx=1: j
            jnp.concatenate([xr[:, 1:], xr[:, -2:-1]], axis=1),  # kx=2: refl(j+1)
        )
        for kx, xs in enumerate(cols):
            acc = acc + jnp.dot(xs.reshape(H * W, C), w_ref[ky * 3 + kx],
                                preferred_element_type=jnp.float32)
    return acc


def resnet_block_kernel(x_ref, w1_ref, w2_ref, o_ref):
    H, W, C = x_ref.shape
    x = x_ref[...]                                     # (H, W, C), input dtype
    xf32 = x.astype(jnp.float32).reshape(H * W, C)     # residual path (f32)

    # conv1 -> InstanceNorm -> ReLU   (bf16 MXU operands, f32 accumulate/normalize)
    y1 = _conv3x3(x.astype(jnp.bfloat16), w1_ref)
    h1 = jnp.maximum(_instance_norm(y1), 0.0)
    # TODO(synk): Dropout(0.5) (use_dropout=True) would go here.

    # conv2 -> InstanceNorm
    y2 = _conv3x3(h1.astype(jnp.bfloat16).reshape(H, W, C), w2_ref)
    h2 = _instance_norm(y2)

    # residual skip
    o_ref[...] = (xf32 + h2).reshape(H, W, C).astype(o_ref.dtype)
    # TODO(synk): for very large H*W (e.g. 128x128x256), add an in-kernel
    # fori_loop over row tiles of the matmul M dim to cap live VMEM.


def resnet_block(x_nchw, w1, b1, w2, b2):
    """ResnetBlock forward. x_nchw: (B, C, H, W); w*: (C, C, 3, 3) OIHW; b*: (C,).

    b1/b2 are accepted for API parity but unused: a per-channel conv bias followed
    by affine-free InstanceNorm is exactly cancelled by the mean subtraction.
    Returns NCHW, same dtype as input. Requires H, W >= 2 and dim == C.
    """
    del b1, b2
    B, C, H, W = x_nchw.shape
    x = jnp.transpose(x_nchw, (0, 2, 3, 1))            # NHWC; C on the lane dim

    def pack(w):  # OIHW -> (9, Cin, Cout), tap-major, bf16 for the MXU
        return jnp.transpose(w, (2, 3, 1, 0)).reshape(9, C, C).astype(jnp.bfloat16)

    w1p, w2p = pack(w1), pack(w2)

    flops = 2 * 9 * 2 * B * H * W * C * C              # two convs, 9 taps, 2*M*K*N
    bytes_accessed = 2 * B * H * W * C * x.dtype.itemsize + 2 * 9 * C * C * 2

    out = pl.pallas_call(
        resnet_block_kernel,
        out_shape=jax.ShapeDtypeStruct((B, H, W, C), x.dtype),
        grid_spec=pltpu.PrefetchScalarGridSpec(
            num_scalar_prefetch=0,
            grid=(B,),                                  # one image per grid step
            in_specs=[
                pl.BlockSpec((None, H, W, C), lambda b: (b, 0, 0, 0)),
                pl.BlockSpec((9, C, C), lambda b: (0, 0, 0)),
                pl.BlockSpec((9, C, C), lambda b: (0, 0, 0)),
            ],
            out_specs=pl.BlockSpec((None, H, W, C), lambda b: (b, 0, 0, 0)),
        ),
        compiler_params=pltpu.CompilerParams(
            dimension_semantics=("parallel",),          # images independent; 2 TCs on v7x
            vmem_limit_bytes=64 * 1024 * 1024,
        ),
        cost_estimate=pl.CostEstimate(
            flops=flops, transcendentals=0, bytes_accessed=bytes_accessed),
    )(x, w1p, w2p)
    return jnp.transpose(out, (0, 3, 1, 2))             # back to NCHW


def _ref_forward(x, w1, b1, w2, b2, conv_dtype=jnp.float32):
    # Pure-JAX reference (NCHW). conv_dtype=bfloat16 reproduces the kernel's
    # MXU operand rounding (f32 accumulation either way).
    def conv(h, w, b):
        hp = jnp.pad(h, ((0, 0), (0, 0), (1, 1), (1, 1)), mode="reflect")
        y = jax.lax.conv_general_dilated(
            hp.astype(conv_dtype), w.astype(conv_dtype), (1, 1), "VALID",
            dimension_numbers=("NCHW", "OIHW", "NCHW"),
            preferred_element_type=jnp.float32)
        return y + b[None, :, None, None]

    def inorm(h):
        mu = jnp.mean(h, axis=(2, 3), keepdims=True)
        var = jnp.mean((h - mu) ** 2, axis=(2, 3), keepdims=True)
        return (h - mu) / jnp.sqrt(var + EPS)

    h = jnp.maximum(inorm(conv(x, w1, b1)), 0.0)
    h = inorm(conv(h, w2, b2))
    return x + h


if __name__ == "__main__":
    B, C, H, W = 2, 4, 16, 16
    key = jax.random.PRNGKey(0)
    kx, kw1, kb1, kw2, kb2 = jax.random.split(key, 5)

    x = jax.random.normal(kx, (B, C, H, W), dtype=jnp.float32)
    w1 = jax.random.normal(kw1, (C, C, 3, 3), dtype=jnp.float32) * 0.1
    b1 = jax.random.normal(kb1, (C,), dtype=jnp.float32) * 0.1
    w2 = jax.random.normal(kw2, (C, C, 3, 3), dtype=jnp.float32) * 0.1
    b2 = jax.random.normal(kb2, (C,), dtype=jnp.float32) * 0.1

    out = jax.block_until_ready(resnet_block(x, w1, b1, w2, b2))
    assert out.shape == (B, C, H, W)
    assert out.dtype == x.dtype

    # Tight check vs. a reference using the same bf16 MXU-operand rounding.
    ref_b = _ref_forward(x, w1, b1, w2, b2, conv_dtype=jnp.bfloat16)
    assert jnp.allclose(out, ref_b, rtol=5e-3, atol=5e-3), "mismatch vs bf16 reference"
    # Looser check vs. the full-f32 module semantics (kernel intentionally uses
    # bf16 MXU operands for throughput).
    ref_f = _ref_forward(x, w1, b1, w2, b2, conv_dtype=jnp.float32)
    assert jnp.allclose(out, ref_f, rtol=5e-2, atol=5e-2), "mismatch vs f32 reference"

    print("KERNEL_OK")
</pallas_src>

<mosaic_0001>
module attributes {stable_mosaic.version = 11 : i64} {
  func.func @resnet_block_kernel(%arg0: i32, %arg1: memref<1x16x16x4xf32, #tpu.memory_space<vmem>>, %arg2: memref<9x4x4xbf16, #tpu.memory_space<vmem>>, %arg3: memref<9x4x4xbf16, #tpu.memory_space<vmem>>, %arg4: memref<1x16x16x4xf32, #tpu.memory_space<vmem>>) attributes {dimension_semantics = [#tpu.dimension_semantics<parallel>], iteration_bounds = array<i64: 2>, scalar_prefetch = 0 : i64, scratch_operands = 0 : i64, tpu.core_type = #tpu.core_type<tc>, window_params = [{transform_indices = @transform_0, window_bounds = array<i64: 1, 16, 16, 4>}, {pipeline_mode = #tpu.pipeline_mode<synchronous>, transform_indices = @transform_1, window_bounds = array<i64: 9, 4, 4>}, {pipeline_mode = #tpu.pipeline_mode<synchronous>, transform_indices = @transform_2, window_bounds = array<i64: 9, 4, 4>}, {transform_indices = @transform_3, window_bounds = array<i64: 1, 16, 16, 4>}]} {
    %c0 = arith.constant 0 : index
    %c0_0 = arith.constant 0 : index
    %c0_1 = arith.constant 0 : index
    %c0_2 = arith.constant 0 : index
    %0 = vector.load %arg1[%c0, %c0_0, %c0_1, %c0_2] : memref<1x16x16x4xf32, #tpu.memory_space<vmem>>, vector<1x16x16x4xf32>
    %1 = vector.shape_cast %0 : vector<1x16x16x4xf32> to vector<16x16x4xf32>
    %2 = vector.shape_cast %1 : vector<16x16x4xf32> to vector<256x4xf32>
    %3 = arith.truncf %1 : vector<16x16x4xf32> to vector<16x16x4xbf16>
    %4 = vector.extract_strided_slice %3 {offsets = [1, 0, 0], sizes = [1, 16, 4], strides = [1, 1, 1]} : vector<16x16x4xbf16> to vector<1x16x4xbf16>
    %5 = vector.extract_strided_slice %3 {offsets = [0, 0, 0], sizes = [15, 16, 4], strides = [1, 1, 1]} : vector<16x16x4xbf16> to vector<15x16x4xbf16>
    %6 = tpu.concatenate %4, %5 in 0 : vector<1x16x4xbf16>, vector<15x16x4xbf16> -> vector<16x16x4xbf16>
    %7 = vector.extract_strided_slice %3 {offsets = [1, 0, 0], sizes = [15, 16, 4], strides = [1, 1, 1]} : vector<16x16x4xbf16> to vector<15x16x4xbf16>
    %8 = vector.extract_strided_slice %3 {offsets = [14, 0, 0], sizes = [1, 16, 4], strides = [1, 1, 1]} : vector<16x16x4xbf16> to vector<1x16x4xbf16>
    %9 = tpu.concatenate %7, %8 in 0 : vector<15x16x4xbf16>, vector<1x16x4xbf16> -> vector<16x16x4xbf16>
    %cst = arith.constant 0.000000e+00 : f32
    %10 = vector.broadcast %cst : f32 to vector<256x4xf32>
    %11 = vector.extract_strided_slice %6 {offsets = [0, 1, 0], sizes = [16, 1, 4], strides = [1, 1, 1]} : vector<16x16x4xbf16> to vector<16x1x4xbf16>
    %12 = vector.extract_strided_slice %6 {offsets = [0, 0, 0], sizes = [16, 15, 4], strides = [1, 1, 1]} : vector<16x16x4xbf16> to vector<16x15x4xbf16>
    %13 = tpu.concatenate %11, %12 in 1 : vector<16x1x4xbf16>, vector<16x15x4xbf16> -> vector<16x16x4xbf16>
    %14 = vector.extract_strided_slice %6 {offsets = [0, 1, 0], sizes = [16, 15, 4], strides = [1, 1, 1]} : vector<16x16x4xbf16> to vector<16x15x4xbf16>
    %15 = vector.extract_strided_slice %6 {offsets = [0, 14, 0], sizes = [16, 1, 4], strides = [1, 1, 1]} : vector<16x16x4xbf16> to vector<16x1x4xbf16>
    %16 = tpu.concatenate %14, %15 in 1 : vector<16x15x4xbf16>, vector<16x1x4xbf16> -> vector<16x16x4xbf16>
    %17 = vector.shape_cast %13 : vector<16x16x4xbf16> to vector<256x4xbf16>
    %c0_3 = arith.constant 0 : index
    %c0_4 = arith.constant 0 : index
    %c0_5 = arith.constant 0 : index
    %18 = vector.load %arg2[%c0_3, %c0_4, %c0_5] : memref<9x4x4xbf16, #tpu.memory_space<vmem>>, vector<1x4x4xbf16>
    %19 = vector.shape_cast %18 : vector<1x4x4xbf16> to vector<4x4xbf16>
    %cst_6 = arith.constant dense<0.000000e+00> : vector<256x4xf32>
    %20 = tpu.matmul %17, %19, %cst_6 {dimension_numbers = #tpu.dot_dimension_numbers<[1], [0], [0], [1], [0, 0, 1, 1], [], []>} : vector<256x4xbf16>, vector<4x4xbf16>, vector<256x4xf32> -> vector<256x4xf32>
    %21 = arith.addf %10, %20 : vector<256x4xf32>
    %22 = vector.shape_cast %6 : vector<16x16x4xbf16> to vector<256x4xbf16>
    %c1 = arith.constant 1 : index
    %c0_7 = arith.constant 0 : index
    %c0_8 = arith.constant 0 : index
    %23 = vector.load %arg2[%c1, %c0_7, %c0_8] : memref<9x4x4xbf16, #tpu.memory_space<vmem>>, vector<1x4x4xbf16>
    %24 = vector.shape_cast %23 : vector<1x4x4xbf16> to vector<4x4xbf16>
    %cst_9 = arith.constant dense<0.000000e+00> : vector<256x4xf32>
    %25 = tpu.matmul %22, %24, %cst_9 {dimension_numbers = #tpu.dot_dimension_numbers<[1], [0], [0], [1], [0, 0, 1, 1], [], []>} : vector<256x4xbf16>, vector<4x4xbf16>, vector<256x4xf32> -> vector<256x4xf32>
    %26 = arith.addf %21, %25 : vector<256x4xf32>
    %27 = vector.shape_cast %16 : vector<16x16x4xbf16> to vector<256x4xbf16>
    %c2 = arith.constant 2 : index
    %c0_10 = arith.constant 0 : index
    %c0_11 = arith.constant 0 : index
    %28 = vector.load %arg2[%c2, %c0_10, %c0_11] : memref<9x4x4xbf16, #tpu.memory_space<vmem>>, vector<1x4x4xbf16>
    %29 = vector.shape_cast %28 : vector<1x4x4xbf16> to vector<4x4xbf16>
    %cst_12 = arith.constant dense<0.000000e+00> : vector<256x4xf32>
    %30 = tpu.matmul %27, %29, %cst_12 {dimension_numbers = #tpu.dot_dimension_numbers<[1], [0], [0], [1], [0, 0, 1, 1], [], []>} : vector<256x4xbf16>, vector<4x4xbf16>, vector<256x4xf32> -> vector<256x4xf32>
    %31 = arith.addf %26, %30 : vector<256x4xf32>
    %32 = vector.extract_strided_slice %3 {offsets = [0, 1, 0], sizes = [16, 1, 4], strides = [1, 1, 1]} : vector<16x16x4xbf16> to vector<16x1x4xbf16>
    %33 = vector.extract_strided_slice %3 {offsets = [0, 0, 0], sizes = [16, 15, 4], strides = [1, 1, 1]} : vector<16x16x4xbf16> to vector<16x15x4xbf16>
    %34 = tpu.concatenate %32, %33 in 1 : vector<16x1x4xbf16>, vector<16x15x4xbf16> -> vector<16x16x4xbf16>
    %35 = vector.extract_strided_slice %3 {offsets = [0, 1, 0], sizes = [16, 15, 4], strides = [1, 1, 1]} : vector<16x16x4xbf16> to vector<16x15x4xbf16>
    %36 = vector.extract_strided_slice %3 {offsets = [0, 14, 0], sizes = [16, 1, 4], strides = [1, 1, 1]} : vector<16x16x4xbf16> to vector<16x1x4xbf16>
    %37 = tpu.concatenate %35, %36 in 1 : vector<16x15x4xbf16>, vector<16x1x4xbf16> -> vector<16x16x4xbf16>
    %38 = vector.shape_cast %34 : vector<16x16x4xbf16> to vector<256x4xbf16>
    %c3 = arith.constant 3 : index
    %c0_13 = arith.constant 0 : index
    %c0_14 = arith.constant 0 : index
    %39 = vector.load %arg2[%c3, %c0_13, %c0_14] : memref<9x4x4xbf16, #tpu.memory_space<vmem>>, vector<1x4x4xbf16>
    %40 = vector.shape_cast %39 : vector<1x4x4xbf16> to vector<4x4xbf16>
    %cst_15 = arith.constant dense<0.000000e+00> : vector<256x4xf32>
    %41 = tpu.matmul %38, %40, %cst_15 {dimension_numbers = #tpu.dot_dimension_numbers<[1], [0], [0], [1], [0, 0, 1, 1], [], []>} : vector<256x4xbf16>, vector<4x4xbf16>, vector<256x4xf32> -> vector<256x4xf32>
    %42 = arith.addf %31, %41 : vector<256x4xf32>
    %43 = vector.shape_cast %3 : vector<16x16x4xbf16> to vector<256x4xbf16>
    %c4 = arith.constant 4 : index
    %c0_16 = arith.constant 0 : index
    %c0_17 = arith.constant 0 : index
    %44 = vector.load %arg2[%c4, %c0_16, %c0_17] : memref<9x4x4xbf16, #tpu.memory_space<vmem>>, vector<1x4x4xbf16>
    %45 = vector.shape_cast %44 : vector<1x4x4xbf16> to vector<4x4xbf16>
    %cst_18 = arith.constant dense<0.000000e+00> : vector<256x4xf32>
    %46 = tpu.matmul %43, %45, %cst_18 {dimension_numbers = #tpu.dot_dimension_numbers<[1], [0], [0], [1], [0, 0, 1, 1], [], []>} : vector<256x4xbf16>, vector<4x4xbf16>, vector<256x4xf32> -> vector<256x4xf32>
    %47 = arith.addf %42, %46 : vector<256x4xf32>
    %48 = vector.shape_cast %37 : vector<16x16x4xbf16> to vector<256x4xbf16>
    %c5 = arith.constant 5 : index
    %c0_19 = arith.constant 0 : index
    %c0_20 = arith.constant 0 : index
    %49 = vector.load %arg2[%c5, %c0_19, %c0_20] : memref<9x4x4xbf16, #tpu.memory_space<vmem>>, vector<1x4x4xbf16>
    %50 = vector.shape_cast %49 : vector<1x4x4xbf16> to vector<4x4xbf16>
    %cst_21 = arith.constant dense<0.000000e+00> : vector<256x4xf32>
    %51 = tpu.matmul %48, %50, %cst_21 {dimension_numbers = #tpu.dot_dimension_numbers<[1], [0], [0], [1], [0, 0, 1, 1], [], []>} : vector<256x4xbf16>, vector<4x4xbf16>, vector<256x4xf32> -> vector<256x4xf32>
    %52 = arith.addf %47, %51 : vector<256x4xf32>
    %53 = vector.extract_strided_slice %9 {offsets = [0, 1, 0], sizes = [16, 1, 4], strides = [1, 1, 1]} : vector<16x16x4xbf16> to vector<16x1x4xbf16>
    %54 = vector.extract_strided_slice %9 {offsets = [0, 0, 0], sizes = [16, 15, 4], strides = [1, 1, 1]} : vector<16x16x4xbf16> to vector<16x15x4xbf16>
    %55 = tpu.concatenate %53, %54 in 1 : vector<16x1x4xbf16>, vector<16x15x4xbf16> -> vector<16x16x4xbf16>
    %56 = vector.extract_strided_slice %9 {offsets = [0, 1, 0], sizes = [16, 15, 4], strides = [1, 1, 1]} : vector<16x16x4xbf16> to vector<16x15x4xbf16>
    %57 = vector.extract_strided_slice %9 {offsets = [0, 14, 0], sizes = [16, 1, 4], strides = [1, 1, 1]} : vector<16x16x4xbf16> to vector<16x1x4xbf16>
    %58 = tpu.concatenate %56, %57 in 1 : vector<16x15x4xbf16>, vector<16x1x4xbf16> -> vector<16x16x4xbf16>
    %59 = vector.shape_cast %55 : vector<16x16x4xbf16> to vector<256x4xbf16>
    %c6 = arith.constant 6 : index
    %c0_22 = arith.constant 0 : index
    %c0_23 = arith.constant 0 : index
    %60 = vector.load %arg2[%c6, %c0_22, %c0_23] : memref<9x4x4xbf16, #tpu.memory_space<vmem>>, vector<1x4x4xbf16>
    %61 = vector.shape_cast %60 : vector<1x4x4xbf16> to vector<4x4xbf16>
    %cst_24 = arith.constant dense<0.000000e+00> : vector<256x4xf32>
    %62 = tpu.matmul %59, %61, %cst_24 {dimension_numbers = #tpu.dot_dimension_numbers<[1], [0], [0], [1], [0, 0, 1, 1], [], []>} : vector<256x4xbf16>, vector<4x4xbf16>, vector<256x4xf32> -> vector<256x4xf32>
    %63 = arith.addf %52, %62 : vector<256x4xf32>
    %64 = vector.shape_cast %9 : vector<16x16x4xbf16> to vector<256x4xbf16>
    %c7 = arith.constant 7 : index
    %c0_25 = arith.constant 0 : index
    %c0_26 = arith.constant 0 : index
    %65 = vector.load %arg2[%c7, %c0_25, %c0_26] : memref<9x4x4xbf16, #tpu.memory_space<vmem>>, vector<1x4x4xbf16>
    %66 = vector.shape_cast %65 : vector<1x4x4xbf16> to vector<4x4xbf16>
    %cst_27 = arith.constant dense<0.000000e+00> : vector<256x4xf32>
    %67 = tpu.matmul %64, %66, %cst_27 {dimension_numbers = #tpu.dot_dimension_numbers<[1], [0], [0], [1], [0, 0, 1, 1], [], []>} : vector<256x4xbf16>, vector<4x4xbf16>, vector<256x4xf32> -> vector<256x4xf32>
    %68 = arith.addf %63, %67 : vector<256x4xf32>
    %69 = vector.shape_cast %58 : vector<16x16x4xbf16> to vector<256x4xbf16>
    %c8 = arith.constant 8 : index
    %c0_28 = arith.constant 0 : index
    %c0_29 = arith.constant 0 : index
    %70 = vector.load %arg2[%c8, %c0_28, %c0_29] : memref<9x4x4xbf16, #tpu.memory_space<vmem>>, vector<1x4x4xbf16>
    %71 = vector.shape_cast %70 : vector<1x4x4xbf16> to vector<4x4xbf16>
    %cst_30 = arith.constant dense<0.000000e+00> : vector<256x4xf32>
    %72 = tpu.matmul %69, %71, %cst_30 {dimension_numbers = #tpu.dot_dimension_numbers<[1], [0], [0], [1], [0, 0, 1, 1], [], []>} : vector<256x4xbf16>, vector<4x4xbf16>, vector<256x4xf32> -> vector<256x4xf32>
    %73 = arith.addf %68, %72 : vector<256x4xf32>
    %cst_31 = arith.constant dense<0.000000e+00> : vector<4xf32>
    %74 = vector.multi_reduction <add>, %73, %cst_31 [0] : vector<256x4xf32> to vector<4xf32>
    %75 = vector.shape_cast %74 : vector<4xf32> to vector<1x4xf32>
    %cst_32 = arith.constant 3.906250e-03 : f32
    %76 = vector.broadcast %cst_32 : f32 to vector<1x4xf32>
    %77 = arith.mulf %75, %76 : vector<1x4xf32>
    %78 = arith.mulf %73, %73 : vector<256x4xf32>
    %cst_33 = arith.constant dense<0.000000e+00> : vector<4xf32>
    %79 = vector.multi_reduction <add>, %78, %cst_33 [0] : vector<256x4xf32> to vector<4xf32>
    %80 = vector.shape_cast %79 : vector<4xf32> to vector<1x4xf32>
    %cst_34 = arith.constant 3.906250e-03 : f32
    %81 = vector.broadcast %cst_34 : f32 to vector<1x4xf32>
    %82 = arith.mulf %80, %81 : vector<1x4xf32>
    %83 = arith.mulf %77, %77 : vector<1x4xf32>
    %84 = arith.subf %82, %83 : vector<1x4xf32>
    %85 = vector.broadcast %77 : vector<1x4xf32> to vector<256x4xf32>
    %86 = arith.subf %73, %85 : vector<256x4xf32>
    %cst_35 = arith.constant 9.99999974E-6 : f32
    %87 = vector.broadcast %cst_35 : f32 to vector<1x4xf32>
    %88 = arith.addf %84, %87 : vector<1x4xf32>
    %89 = math.rsqrt %88 : vector<1x4xf32>
    %90 = vector.broadcast %89 : vector<1x4xf32> to vector<256x4xf32>
    %91 = arith.mulf %86, %90 : vector<256x4xf32>
    %cst_36 = arith.constant 0.000000e+00 : f32
    %92 = vector.broadcast %cst_36 : f32 to vector<256x4xf32>
    %93 = arith.maximumf %91, %92 : vector<256x4xf32>
    %94 = arith.truncf %93 : vector<256x4xf32> to vector<256x4xbf16>
    %95 = vector.shape_cast %94 : vector<256x4xbf16> to vector<16x16x4xbf16>
    %96 = vector.extract_strided_slice %95 {offsets = [1, 0, 0], sizes = [1, 16, 4], strides = [1, 1, 1]} : vector<16x16x4xbf16> to vector<1x16x4xbf16>
    %97 = vector.extract_strided_slice %95 {offsets = [0, 0, 0], sizes = [15, 16, 4], strides = [1, 1, 1]} : vector<16x16x4xbf16> to vector<15x16x4xbf16>
    %98 = tpu.concatenate %96, %97 in 0 : vector<1x16x4xbf16>, vector<15x16x4xbf16> -> vector<16x16x4xbf16>
    %99 = vector.extract_strided_slice %95 {offsets = [1, 0, 0], sizes = [15, 16, 4], strides = [1, 1, 1]} : vector<16x16x4xbf16> to vector<15x16x4xbf16>
    %100 = vector.extract_strided_slice %95 {offsets = [14, 0, 0], sizes = [1, 16, 4], strides = [1, 1, 1]} : vector<16x16x4xbf16> to vector<1x16x4xbf16>
    %101 = tpu.concatenate %99, %100 in 0 : vector<15x16x4xbf16>, vector<1x16x4xbf16> -> vector<16x16x4xbf16>
    %cst_37 = arith.constant 0.000000e+00 : f32
    %102 = vector.broadcast %cst_37 : f32 to vector<256x4xf32>
    %103 = vector.extract_strided_slice %98 {offsets = [0, 1, 0], sizes = [16, 1, 4], strides = [1, 1, 1]} : vector<16x16x4xbf16> to vector<16x1x4xbf16>
    %104 = vector.extract_strided_slice %98 {offsets = [0, 0, 0], sizes = [16, 15, 4], strides = [1, 1, 1]} : vector<16x16x4xbf16> to vector<16x15x4xbf16>
    %105 = tpu.concatenate %103, %104 in 1 : vector<16x1x4xbf16>, vector<16x15x4xbf16> -> vector<16x16x4xbf16>
    %106 = vector.extract_strided_slice %98 {offsets = [0, 1, 0], sizes = [16, 15, 4], strides = [1, 1, 1]} : vector<16x16x4xbf16> to vector<16x15x4xbf16>
    %107 = vector.extract_strided_slice %98 {offsets = [0, 14, 0], sizes = [16, 1, 4], strides = [1, 1, 1]} : vector<16x16x4xbf16> to vector<16x1x4xbf16>
    %108 = tpu.concatenate %106, %107 in 1 : vector<16x15x4xbf16>, vector<16x1x4xbf16> -> vector<16x16x4xbf16>
    %109 = vector.shape_cast %105 : vector<16x16x4xbf16> to vector<256x4xbf16>
    %c0_38 = arith.constant 0 : index
    %c0_39 = arith.constant 0 : index
    %c0_40 = arith.constant 0 : index
    %110 = vector.load %arg3[%c0_38, %c0_39, %c0_40] : memref<9x4x4xbf16, #tpu.memory_space<vmem>>, vector<1x4x4xbf16>
    %111 = vector.shape_cast %110 : vector<1x4x4xbf16> to vector<4x4xbf16>
    %cst_41 = arith.constant dense<0.000000e+00> : vector<256x4xf32>
    %112 = tpu.matmul %109, %111, %cst_41 {dimension_numbers = #tpu.dot_dimension_numbers<[1], [0], [0], [1], [0, 0, 1, 1], [], []>} : vector<256x4xbf16>, vector<4x4xbf16>, vector<256x4xf32> -> vector<256x4xf32>
    %113 = arith.addf %102, %112 : vector<256x4xf32>
    %114 = vector.shape_cast %98 : vector<16x16x4xbf16> to vector<256x4xbf16>
    %c1_42 = arith.constant 1 : index
    %c0_43 = arith.constant 0 : index
    %c0_44 = arith.constant 0 : index
    %115 = vector.load %arg3[%c1_42, %c0_43, %c0_44] : memref<9x4x4xbf16, #tpu.memory_space<vmem>>, vector<1x4x4xbf16>
    %116 = vector.shape_cast %115 : vector<1x4x4xbf16> to vector<4x4xbf16>
    %cst_45 = arith.constant dense<0.000000e+00> : vector<256x4xf32>
    %117 = tpu.matmul %114, %116, %cst_45 {dimension_numbers = #tpu.dot_dimension_numbers<[1], [0], [0], [1], [0, 0, 1, 1], [], []>} : vector<256x4xbf16>, vector<4x4xbf16>, vector<256x4xf32> -> vector<256x4xf32>
    %118 = arith.addf %113, %117 : vector<256x4xf32>
    %119 = vector.shape_cast %108 : vector<16x16x4xbf16> to vector<256x4xbf16>
    %c2_46 = arith.constant 2 : index
    %c0_47 = arith.constant 0 : index
    %c0_48 = arith.constant 0 : index
    %120 = vector.load %arg3[%c2_46, %c0_47, %c0_48] : memref<9x4x4xbf16, #tpu.memory_space<vmem>>, vector<1x4x4xbf16>
    %121 = vector.shape_cast %120 : vector<1x4x4xbf16> to vector<4x4xbf16>
    %cst_49 = arith.constant dense<0.000000e+00> : vector<256x4xf32>
    %122 = tpu.matmul %119, %121, %cst_49 {dimension_numbers = #tpu.dot_dimension_numbers<[1], [0], [0], [1], [0, 0, 1, 1], [], []>} : vector<256x4xbf16>, vector<4x4xbf16>, vector<256x4xf32> -> vector<256x4xf32>
    %123 = arith.addf %118, %122 : vector<256x4xf32>
    %124 = vector.extract_strided_slice %95 {offsets = [0, 1, 0], sizes = [16, 1, 4], strides = [1, 1, 1]} : vector<16x16x4xbf16> to vector<16x1x4xbf16>
    %125 = vector.extract_strided_slice %95 {offsets = [0, 0, 0], sizes = [16, 15, 4], strides = [1, 1, 1]} : vector<16x16x4xbf16> to vector<16x15x4xbf16>
    %126 = tpu.concatenate %124, %125 in 1 : vector<16x1x4xbf16>, vector<16x15x4xbf16> -> vector<16x16x4xbf16>
    %127 = vector.extract_strided_slice %95 {offsets = [0, 1, 0], sizes = [16, 15, 4], strides = [1, 1, 1]} : vector<16x16x4xbf16> to vector<16x15x4xbf16>
    %128 = vector.extract_strided_slice %95 {offsets = [0, 14, 0], sizes = [16, 1, 4], strides = [1, 1, 1]} : vector<16x16x4xbf16> to vector<16x1x4xbf16>
    %129 = tpu.concatenate %127, %128 in 1 : vector<16x15x4xbf16>, vector<16x1x4xbf16> -> vector<16x16x4xbf16>
    %130 = vector.shape_cast %126 : vector<16x16x4xbf16> to vector<256x4xbf16>
    %c3_50 = arith.constant 3 : index
    %c0_51 = arith.constant 0 : index
    %c0_52 = arith.constant 0 : index
    %131 = vector.load %arg3[%c3_50, %c0_51, %c0_52] : memref<9x4x4xbf16, #tpu.memory_space<vmem>>, vector<1x4x4xbf16>
    %132 = vector.shape_cast %131 : vector<1x4x4xbf16> to vector<4x4xbf16>
    %cst_53 = arith.constant dense<0.000000e+00> : vector<256x4xf32>
    %133 = tpu.matmul %130, %132, %cst_53 {dimension_numbers = #tpu.dot_dimension_numbers<[1], [0], [0], [1], [0, 0, 1, 1], [], []>} : vector<256x4xbf16>, vector<4x4xbf16>, vector<256x4xf32> -> vector<256x4xf32>
    %134 = arith.addf %123, %133 : vector<256x4xf32>
    %135 = vector.shape_cast %95 : vector<16x16x4xbf16> to vector<256x4xbf16>
    %c4_54 = arith.constant 4 : index
    %c0_55 = arith.constant 0 : index
    %c0_56 = arith.constant 0 : index
    %136 = vector.load %arg3[%c4_54, %c0_55, %c0_56] : memref<9x4x4xbf16, #tpu.memory_space<vmem>>, vector<1x4x4xbf16>
    %137 = vector.shape_cast %136 : vector<1x4x4xbf16> to vector<4x4xbf16>
    %cst_57 = arith.constant dense<0.000000e+00> : vector<256x4xf32>
    %138 = tpu.matmul %135, %137, %cst_57 {dimension_numbers = #tpu.dot_dimension_numbers<[1], [0], [0], [1], [0, 0, 1, 1], [], []>} : vector<256x4xbf16>, vector<4x4xbf16>, vector<256x4xf32> -> vector<256x4xf32>
    %139 = arith.addf %134, %138 : vector<256x4xf32>
    %140 = vector.shape_cast %129 : vector<16x16x4xbf16> to vector<256x4xbf16>
    %c5_58 = arith.constant 5 : index
    %c0_59 = arith.constant 0 : index
    %c0_60 = arith.constant 0 : index
    %141 = vector.load %arg3[%c5_58, %c0_59, %c0_60] : memref<9x4x4xbf16, #tpu.memory_space<vmem>>, vector<1x4x4xbf16>
    %142 = vector.shape_cast %141 : vector<1x4x4xbf16> to vector<4x4xbf16>
    %cst_61 = arith.constant dense<0.000000e+00> : vector<256x4xf32>
    %143 = tpu.matmul %140, %142, %cst_61 {dimension_numbers = #tpu.dot_dimension_numbers<[1], [0], [0], [1], [0, 0, 1, 1], [], []>} : vector<256x4xbf16>, vector<4x4xbf16>, vector<256x4xf32> -> vector<256x4xf32>
    %144 = arith.addf %139, %143 : vector<256x4xf32>
    %145 = vector.extract_strided_slice %101 {offsets = [0, 1, 0], sizes = [16, 1, 4], strides = [1, 1, 1]} : vector<16x16x4xbf16> to vector<16x1x4xbf16>
    %146 = vector.extract_strided_slice %101 {offsets = [0, 0, 0], sizes = [16, 15, 4], strides = [1, 1, 1]} : vector<16x16x4xbf16> to vector<16x15x4xbf16>
    %147 = tpu.concatenate %145, %146 in 1 : vector<16x1x4xbf16>, vector<16x15x4xbf16> -> vector<16x16x4xbf16>
    %148 = vector.extract_strided_slice %101 {offsets = [0, 1, 0], sizes = [16, 15, 4], strides = [1, 1, 1]} : vector<16x16x4xbf16> to vector<16x15x4xbf16>
    %149 = vector.extract_strided_slice %101 {offsets = [0, 14, 0], sizes = [16, 1, 4], strides = [1, 1, 1]} : vector<16x16x4xbf16> to vector<16x1x4xbf16>
    %150 = tpu.concatenate %148, %149 in 1 : vector<16x15x4xbf16>, vector<16x1x4xbf16> -> vector<16x16x4xbf16>
    %151 = vector.shape_cast %147 : vector<16x16x4xbf16> to vector<256x4xbf16>
    %c6_62 = arith.constant 6 : index
    %c0_63 = arith.constant 0 : index
    %c0_64 = arith.constant 0 : index
    %152 = vector.load %arg3[%c6_62, %c0_63, %c0_64] : memref<9x4x4xbf16, #tpu.memory_space<vmem>>, vector<1x4x4xbf16>
    %153 = vector.shape_cast %152 : vector<1x4x4xbf16> to vector<4x4xbf16>
    %cst_65 = arith.constant dense<0.000000e+00> : vector<256x4xf32>
    %154 = tpu.matmul %151, %153, %cst_65 {dimension_numbers = #tpu.dot_dimension_numbers<[1], [0], [0], [1], [0, 0, 1, 1], [], []>} : vector<256x4xbf16>, vector<4x4xbf16>, vector<256x4xf32> -> vector<256x4xf32>
    %155 = arith.addf %144, %154 : vector<256x4xf32>
    %156 = vector.shape_cast %101 : vector<16x16x4xbf16> to vector<256x4xbf16>
    %c7_66 = arith.constant 7 : index
    %c0_67 = arith.constant 0 : index
    %c0_68 = arith.constant 0 : index
    %157 = vector.load %arg3[%c7_66, %c0_67, %c0_68] : memref<9x4x4xbf16, #tpu.memory_space<vmem>>, vector<1x4x4xbf16>
    %158 = vector.shape_cast %157 : vector<1x4x4xbf16> to vector<4x4xbf16>
    %cst_69 = arith.constant dense<0.000000e+00> : vector<256x4xf32>
    %159 = tpu.matmul %156, %158, %cst_69 {dimension_numbers = #tpu.dot_dimension_numbers<[1], [0], [0], [1], [0, 0, 1, 1], [], []>} : vector<256x4xbf16>, vector<4x4xbf16>, vector<256x4xf32> -> vector<256x4xf32>
    %160 = arith.addf %155, %159 : vector<256x4xf32>
    %161 = vector.shape_cast %150 : vector<16x16x4xbf16> to vector<256x4xbf16>
    %c8_70 = arith.constant 8 : index
    %c0_71 = arith.constant 0 : index
    %c0_72 = arith.constant 0 : index
    %162 = vector.load %arg3[%c8_70, %c0_71, %c0_72] : memref<9x4x4xbf16, #tpu.memory_space<vmem>>, vector<1x4x4xbf16>
    %163 = vector.shape_cast %162 : vector<1x4x4xbf16> to vector<4x4xbf16>
    %cst_73 = arith.constant dense<0.000000e+00> : vector<256x4xf32>
    %164 = tpu.matmul %161, %163, %cst_73 {dimension_numbers = #tpu.dot_dimension_numbers<[1], [0], [0], [1], [0, 0, 1, 1], [], []>} : vector<256x4xbf16>, vector<4x4xbf16>, vector<256x4xf32> -> vector<256x4xf32>
    %165 = arith.addf %160, %164 : vector<256x4xf32>
    %cst_74 = arith.constant dense<0.000000e+00> : vector<4xf32>
    %166 = vector.multi_reduction <add>, %165, %cst_74 [0] : vector<256x4xf32> to vector<4xf32>
    %167 = vector.shape_cast %166 : vector<4xf32> to vector<1x4xf32>
    %cst_75 = arith.constant 3.906250e-03 : f32
    %168 = vector.broadcast %cst_75 : f32 to vector<1x4xf32>
    %169 = arith.mulf %167, %168 : vector<1x4xf32>
    %170 = arith.mulf %165, %165 : vector<256x4xf32>
    %cst_76 = arith.constant dense<0.000000e+00> : vector<4xf32>
    %171 = vector.multi_reduction <add>, %170, %cst_76 [0] : vector<256x4xf32> to vector<4xf32>
    %172 = vector.shape_cast %171 : vector<4xf32> to vector<1x4xf32>
    %cst_77 = arith.constant 3.906250e-03 : f32
    %173 = vector.broadcast %cst_77 : f32 to vector<1x4xf32>
    %174 = arith.mulf %172, %173 : vector<1x4xf32>
    %175 = arith.mulf %169, %169 : vector<1x4xf32>
    %176 = arith.subf %174, %175 : vector<1x4xf32>
    %177 = vector.broadcast %169 : vector<1x4xf32> to vector<256x4xf32>
    %178 = arith.subf %165, %177 : vector<256x4xf32>
    %cst_78 = arith.constant 9.99999974E-6 : f32
    %179 = vector.broadcast %cst_78 : f32 to vector<1x4xf32>
    %180 = arith.addf %176, %179 : vector<1x4xf32>
    %181 = math.rsqrt %180 : vector<1x4xf32>
    %182 = vector.broadcast %181 : vector<1x4xf32> to vector<256x4xf32>
    %183 = arith.mulf %178, %182 : vector<256x4xf32>
    %184 = arith.addf %2, %183 : vector<256x4xf32>
    %185 = vector.shape_cast %184 : vector<256x4xf32> to vector<16x16x4xf32>
    %c0_79 = arith.constant 0 : index
    %c0_80 = arith.constant 0 : index
    %c0_81 = arith.constant 0 : index
    %c0_82 = arith.constant 0 : index
    %186 = vector.load %arg4[%c0_79, %c0_80, %c0_81, %c0_82] : memref<1x16x16x4xf32, #tpu.memory_space<vmem>>, vector<1x16x16x4xf32>
    %187 = vector.shape_cast %186 : vector<1x16x16x4xf32> to vector<16x16x4xf32>
    %188 = vector.shape_cast %185 : vector<16x16x4xf32> to vector<1x16x16x4xf32>
    tpu.vector_store %arg4[%c0_79, %c0_80, %c0_81, %c0_82], %188 {strides = array<i32>} : memref<1x16x16x4xf32, #tpu.memory_space<vmem>>, vector<1x16x16x4xf32>,
    return
  }
  func.func @transform_0(%arg0: i32) -> (i32, i32, i32, i32) {
    %c0_i32 = arith.constant 0 : i32
    %c0_i32_0 = arith.constant 0 : i32
    %c0_i32_1 = arith.constant 0 : i32
    %c0_i32_2 = arith.constant 0 : i32
    return %arg0, %c0_i32, %c0_i32_0, %c0_i32_1 : i32, i32, i32, i32
  }
  func.func @transform_1(%arg0: i32) -> (i32, i32, i32) {
    %c0_i32 = arith.constant 0 : i32
    %c0_i32_0 = arith.constant 0 : i32
    %c0_i32_1 = arith.constant 0 : i32
    %c0_i32_2 = arith.constant 0 : i32
    return %c0_i32, %c0_i32_0, %c0_i32_1 : i32, i32, i32
  }
  func.func @transform_2(%arg0: i32) -> (i32, i32, i32) {
    %c0_i32 = arith.constant 0 : i32
    %c0_i32_0 = arith.constant 0 : i32
    %c0_i32_1 = arith.constant 0 : i32
    %c0_i32_2 = arith.constant 0 : i32
    return %c0_i32, %c0_i32_0, %c0_i32_1 : i32, i32, i32
  }
  func.func @transform_3(%arg0: i32) -> (i32, i32, i32, i32) {
    %c0_i32 = arith.constant 0 : i32
    %c0_i32_0 = arith.constant 0 : i32
    %c0_i32_1 = arith.constant 0 : i32
    %c0_i32_2 = arith.constant 0 : i32
    return %arg0, %c0_i32, %c0_i32_0, %c0_i32_1 : i32, i32, i32, i32
  }
}

</mosaic_0001>

<bundles_post_ra>
// kernel: tpu_custom_call.1
= control target key start
LH: loop header
LB: loop body
LE: loop exit
PB: predicated region body
PF: predicated region fallthrough
CT: control target
= control target key end

     0   :  { %8 = vsyncpa [#allocation3], 0  ;;  %s9520_s0 = inlined_call_operand.hbm [shape: f32[2,16,16,4], index: 0, kind: input, shape index: {}]   ;;  %s9521_s1 = inlined_call_operand.hbm [shape: bf16[9,4,4], index: 1, kind: input, shape index: {}]   ;;  %s9522_s2 = inlined_call_operand.hbm [shape: bf16[9,4,4], index: 2, kind: input, shape index: {}]   ;;  %s9523_s3 = inlined_call_operand.hbm [shape: f32[2,16,16,4], index: 3, kind: output, shape index: {}]  }
   0x1   :  { %10 = vsyncpa [#allocation3 + $0x1], 0 }
   0x2   :  { %11 = vsyncpa [#allocation6], 0 }
   0x3   :  { %12 = vsyncpa [#allocation4], 0 }
   0x4   :  { %14 = vsyncpa [#allocation4 + $0x1], 0  ;;  %s7196_s12 = smov 0   ;;  %s7198_s13 = smov 0  }
   0x5   :  { %s7200_s14 = smov 0   ;;  %s7202_s15 = smov 0  }
   0x6 LB: > { %s7217_s16 = sadd.s32 4294967295, %s7164_s15   ;;  %s5143_s17 = sadd.s32 4294967294, %s7164_s15   ;;  %s7164_s15 = sphi %s7202_s15, %s9606_s15   ;;  %s7160_s14 = sphi %s7200_s14, %s9605_s14   ;;  %s7156_s13 = sphi %s7198_s13, %s9604_s13   ;;  %s7152_s12 = sphi %s7196_s12, %s9603_s12  }
   0x7   : > { %p40_p0 = scmp.ne.s32.totalorder %s7156_s13, %s7152_s12  ;;  %p9524_p1 = scmp.eq.s32.totalorder %s7217_s16, 0 }
   0x8   : > { %p112_p3 = scmp.eq.s32.totalorder %s5143_s17, 1  ;;  %p5144_p5 = scmp.ge.s32.totalorder %s7164_s15, 1 }
   0x9   : > { %p7226_p4 = por %p9524_p1, %p40_p0  ;;  %p119_p7 = scmp.lt.s32.totalorder %s7164_s15, 3 }
   0xa   : > { %p7231_p6 = por %p112_p3, %p40_p0  ;;  %s7166_s21 = smov [#allocation5]  }
   0xb   : > { %s9556_s18 = scalar_select %p7226_p4, 1, 0 }
   0xc   : > { %s9557_s19 = scalar_select %p7231_p6, 1, 0 }
   0xd   : > { %p7236_p8 = pnand %p5144_p5, %p119_p7  ;;  %s131_s22 = sshll.u32 %s7166_s21, 4  ;;  %s7240_s22 = int_to_ptr.vmem [resolvable:$true] %s131_s22 }
   0xe   : > { %s7167_s24 = smov [#allocation7]   ;;  %s7008_s28 = scalar_lea.hbm %s9521_s1, 288 }
   0xf   : > { %p6911_p9 = pneg %p7236_p8  ;;  %s144_s25 = sshll.u32 %s7167_s24, 4  ;;  %s7251_s25 = int_to_ptr.vmem [resolvable:$true] %s144_s25 }
  0x10   : > { %p7009_p12 = scmp.ne.s32.totalorder %s9521_s1, %s7008_s28  ;;  %p7015_p5 = scmp.lt.u32.totalorder %s7008_s28, %s9521_s1 }
  0x11   : > { %p7247_p11 = pnand %p6911_p9, %p9524_p1 }
  0x13   : > { %p7010_p13 = pneg %p7247_p11 }
  0x15   : > { %p7011_p0 = pnand %p7010_p13, %p7009_p12 }
  0x17   : > { %p7012_p3 = pneg %p7011_p0 }
  0x19   : > { %p7017_p7 = pnand %p7015_p5, %p7012_p3 }
  0x1b   : > { %7020 = shalt.err (!%p7017_p7)
}
  0x1c   : > { %s7021_s6 = scalar_lea.vmem %s7240_s22, 288  ;;  %p7029_p2 = scmp.lt.s32.totalorder %s7240_s22, %s7240_s22 }
  0x1d   : > { %p7022_p9 = scmp.ne.s32.totalorder %s7240_s22, %s7021_s6  ;;  %p7030_p12 = scmp.lt.s32.totalorder %s7021_s6, %s7021_s6 }
  0x1f   : > { %p7024_p10 = pnand %p7022_p9, %p7010_p13  ;;  %p7031_p0 = por %p7030_p12, %p7029_p2 }
  0x21   : > { %p7025_p1 = pneg %p7024_p10 }
  0x23   : > { %p7032_p6 = pnand %p7031_p0, %p7025_p1 }
  0x25   : > { %7035 = shalt.err (!%p7032_p6)
}
  0x26   : > { %s7168_s7 = smov 32   ;;  %s7169_s8 = smov 2  }
  0x27   : > { %6914 = dma.hbm_to_vmem [thread:$0]  (!%p7247_p11), %s9521_s1, 288, %s7240_s22, [#allocation6], %s7168_s7, %s7168_s7, %s7169_s8  }
  0x28   : > { %s7036_s21 = scalar_lea.hbm %s9522_s2, 288 }
  0x29   : > { %p7037_p2 = scmp.ne.s32.totalorder %s9522_s2, %s7036_s21  ;;  %p7043_p10 = scmp.lt.u32.totalorder %s7036_s21, %s9522_s2 }
  0x2b   : > { %p7039_p1 = pnand %p7037_p2, %p7010_p13 }
  0x2d   : > { %p7040_p6 = pneg %p7039_p1 }
  0x2f   : > { %p7045_p3 = pnand %p7043_p10, %p7040_p6 }
  0x31   : > { %7048 = shalt.err (!%p7045_p3)
}
  0x32   : > { %s7049_s22 = scalar_lea.vmem %s7251_s25, 288  ;;  %p7057_p12 = scmp.lt.s32.totalorder %s7251_s25, %s7251_s25 }
  0x33   : > { %p7050_p5 = scmp.ne.s32.totalorder %s7251_s25, %s7049_s22  ;;  %p7058_p0 = scmp.lt.s32.totalorder %s7049_s22, %s7049_s22 }
  0x35   : > { %p7052_p7 = pnand %p7050_p5, %p7010_p13  ;;  %p7059_p2 = por %p7058_p0, %p7057_p12 }
  0x37   : > { %p7053_p9 = pneg %p7052_p7 }
  0x39   : > { %p7060_p1 = pnand %p7059_p2, %p7053_p9 }
  0x3b   : > { %7063 = shalt.err (!%p7060_p1)
}
  0x3c   : > { %6917 = dma.hbm_to_vmem [thread:$0]  (!%p7247_p11), %s9522_s2, 288, %s7251_s25, [#allocation6], %s7168_s7, %s7168_s7, %s7169_s8  }
  0x3d   : > { %s7306_s4 = sadd.s32 1, %s7164_s15   ;;  %s27_s23 = sadd.s32 1, %s7160_s14 }
  0x3e   : > { %s24_s5 = ssub.s32 %s7164_s15, %s7306_s4  ;;  %p34_p13 = scmp.ne.s32.totalorder %s7160_s14, %s7156_s13 }
  0x3f   : > { %p25_p6 = scmp.eq.s32.totalorder %s24_s5, 0  ;;  %p35_p10 = scmp.eq.s32.totalorder %s7164_s15, 0 }
  0x40   : > { %p9560_p3 = scmp.eq.s32.totalorder %s7217_s16, 1  ;;  %p6928_p7 = scmp.lt.s32.totalorder %s7164_s15, 2 }
  0x41   : > { %s7322_s9 = scalar_select %p25_p6, %s7160_s14, %s27_s23  }
  0x42   : > { %p7316_p5 = por %p9560_p3, %p34_p13  ;;  %p36_p9 = por %p35_p10, %p34_p13 }
  0x43   : > { %s158_s10 = sand.u32 1, %s7160_s14   ;;  %s5449_s25 = sshll.u32 %s7164_s15, 12 }
  0x44   : > { %s9561_s6 = scalar_select %p7316_p5, 1, 0 }
  0x45   : > { %s5148_s11 = sshll.u32 %s158_s10, 8  ;;  %s7329_s17 = scalar_lea.hbm %s9520_s0, %s5449_s25 }
  0x46   : > { %s162_s21 = scalar_lea.vmem [#allocation2], %s5148_s11  ;;  %p7333_p11 = pnand %p6928_p7, %p36_p9 }
  0x47   : > { %s169_s24 = sshll.u32 %s162_s21, 4  ;;  %s7337_s27 = scalar_lea.sflag [#allocation3], %s158_s10  ;;  %s7331_s24 = int_to_ptr.vmem [resolvable:$true] %s169_s24 }
  0x48   : > { %s7064_s28 = scalar_lea.hbm %s7329_s17, 4096  ;;  %p7066_p0 = pneg %p7333_p11 }
  0x49   : > { %p7065_p12 = scmp.ne.s32.totalorder %s7329_s17, %s7064_s28  ;;  %s7069_s30 = scalar_lea.hbm %s9520_s0, 8192 }
  0x4a   : > { %p7070_p13 = scmp.lt.u32.totalorder %s7329_s17, %s9520_s0  ;;  %p7071_p6 = scmp.lt.u32.totalorder %s7069_s30, %s7064_s28 }
  0x4b   : > { %p7067_p2 = pnand %p7066_p0, %p7065_p12  ;;  %p7073_p3 = scmp.lt.u32.totalorder %s7064_s28, %s7329_s17 }
  0x4c   : > { %p7072_p10 = por %p7071_p6, %p7070_p13 }
  0x4d   : > { %p7068_p1 = pneg %p7067_p2 }
  0x4e   : > { %p7074_p7 = por %p7073_p3, %p7072_p10 }
  0x50   : > { %p7075_p9 = pnand %p7074_p7, %p7068_p1 }
  0x52   : > { %7078 = shalt.err (!%p7075_p9)
}
  0x53   : > { %s7079_s10 = scalar_lea.vmem %s7331_s24, 4096  ;;  %s7170_s11 = smov [#allocation2]  }
  0x54   : > { %p7080_p12 = scmp.ne.s32.totalorder %s7331_s24, %s7079_s10  ;;  %s7084_s25 = sshll.u32 %s7170_s11, 4  ;;  %s7085_s25 = int_to_ptr.vmem [resolvable:$false] %s7084_s25 }
  0x55   : > { %s7086_s7 = scalar_lea.vmem %s7085_s25, 8192  ;;  %p7087_p4 = scmp.lt.s32.totalorder %s7331_s24, %s7085_s25 }
  0x56   : > { %p7082_p2 = pnand %p7080_p12, %p7066_p0  ;;  %p7088_p13 = scmp.lt.s32.totalorder %s7086_s7, %s7079_s10 }
  0x58   : > { %p7083_p5 = pneg %p7082_p2  ;;  %p7089_p6 = por %p7088_p13, %p7087_p4 }
  0x5a   : > { %p7090_p10 = pnand %p7089_p6, %p7083_p5 }
  0x5c   : > { %7093 = shalt.err (!%p7090_p10)
}
  0x5d   : > { %s7171_s8 = smov 128   ;;  %s7172_s21 = smov 8  }
  0x5e   : > { %6921 = dma.hbm_to_vmem [thread:$0]  (!%p7333_p11), %s7329_s17, 4096, %s7331_s24, %s7337_s27, %s7171_s8, %s7171_s8, %s7172_s21  }
  0x5f   : > { %181 = sbr.rel (%p7236_p8) target bundleno = 1818 (0x71a), region = 32 }
  0x66   : > { %s7368_s28 = sand.u32 1, %s7156_s13   ;;  %p9563_p4 = scmp.ne.s32.totalorder %s9556_s18, 0 }
  0x67   : > { %s5152_s22 = sshll.u32 %s7368_s28, 8  ;;  %s184_s29 = scalar_lea.sflag [#allocation3], %s7368_s28 }
  0x68   : > { %s7374_s30 = scalar_lea.vmem [#allocation2], %s5152_s22 }
  0x69   : > { %7139 = dma.done.wait (%p9563_p4), %s184_s29, 4096  }
  0x6a   : > { %7141 = vsyncadd (%p9563_p4), %s184_s29, 4294963200  ;;  %p9564_p5 = scmp.eq.s32.totalorder %s7217_s16, 0 }
  0x6c   : > { %7143 = dma.done.wait (%p9564_p5), [#allocation6], 576   ;;  %p9565_p8 = pmov %p9564_p5 }
  0x6d   : > { %vm532_vm0 = vcmask 1041408   ;;  %v500_v0 = vld [vmem:[#allocation5 + $0x2] sm:$0x3]  ;;  %v221_v1 = vld [vmem:[%s7374_s30 + $0x10] sm:$0xff]  ;;  %v222_v2 = vld [vmem:[%s7374_s30 + $0x18] sm:$0xff]  ;;  %vm501_vm1 = vcmask 31744  }
  0x6e   : > { %7145 = vsyncadd (%p9565_p8), [#allocation6], 4294966720  ;;  %6881 = vmatprep.subr.msk.bf16.mxu0 %vm532_vm0, %v500_v0  ;;  %v534_v3 = vsel %vm532_vm0, %v500_v0, 0  ;;  %v7388_v4 = vpack.c.bf16 %v222_v2, %v221_v1  ;;  %v219_v5 = vld [vmem:[%s7374_s30] sm:$0xff]  ;;  %v220_v6 = vld [vmem:[%s7374_s30 + $0x8] sm:$0xff]  ;;  %vm480_vm2 = vcmask 1047552  }
  0x6f   : > { %v498_v7 = vld [vmem:[#allocation5] sm:$0x3]  ;;  %5758 = vmatpush3.bf16.msra.mxu0 %v534_v3  ;;  %v7392_v8 = vpack.c.bf16 %v220_v6, %v219_v5  ;;  %v224_v11 = vld [vmem:[%s7374_s30 + $0x28] sm:$0xff]  ;;  %v225_v12 = vld [vmem:[%s7374_s30 + $0x30] sm:$0xff]  ;;  %vm481_vm3 = vsmask.f32 7424 }
  0x70   : > { %5759 = vmatprep.mubr.msk.bf16.mxu0 %vm501_vm1, %v7388_v4  ;;  %6882 = vmatprep.subr.msk.bf16.mxu0 %vm532_vm0, %v498_v7  ;;  %v743_v9 = vsel %vm532_vm0, %v498_v7, 0  ;;  %v223_v10 = vld [vmem:[%s7374_s30 + $0x20] sm:$0xff]  ;;  %v226_v13 = vld [vmem:[%s7374_s30 + $0x38] sm:$0xff]  ;;  %v228_v18 = vld [vmem:[%s7374_s30 + $0x48] sm:$0xff]  ;;  %v7433_v29 = vshrl.u32 %v7388_v4, 16  ;;  %v7441_v31 = vshll.u32 %v7388_v4, 16 }
  0x71   : > { %v7406_v14 = vpack.c.bf16 %v224_v11, %v223_v10  ;;  %v7408_v15 = vpack.c.bf16 %v226_v13, %v225_v12  ;;  %v7410_v16 = vld [vmem:[#allocation5 + $0x4] sm:$0x3]  ;;  %v229_v19 = vld [vmem:[%s7374_s30 + $0x50] sm:$0xff]  ;;  %v230_v20 = vld [vmem:[%s7374_s30 + $0x58] sm:$0xff]  ;;  %v7436_v30 = vshll.u32 %v7392_v8, 16  ;;  %v7444_v32 = vshrl.u32 %v7392_v8, 16 }
  0x72   : > { %5760 = vmatmul.mubr.msk.bf16.vlgmr.msra.gmra.mrb[0].mxu0 %vm501_vm1, %v7392_v8  ;;  %v227_v17 = vld [vmem:[%s7374_s30 + $0x40] sm:$0xff]  ;;  %v7424_v22 = vpack.c.bf16 %v230_v20, %v229_v19  ;;  %v232_v24 = vld [vmem:[%s7374_s30 + $0x68] sm:$0xff]  ;;  %v233_v25 = vld [vmem:[%s7374_s30 + $0x70] sm:$0xff]  ;;  %v420_v40 = vrot.slane %v7441_v31, 1  ;;  %vm402_vm5 = vcmask 1040384   ;;  %s9332_s18 = scalar_lea.vmem [#allocation8], %s5152_s22 }
  0x73   : > { %5792 = vmatpush3.bf16.msra.mxu0 %v743_v9  ;;  %5763 = vmatprep.mubr.msk.bf16.mxu0 %vm501_vm1, %v7388_v4  ;;  %v7422_v21 = vpack.c.bf16 %v228_v18, %v227_v17  ;;  %v231_v23 = vld [vmem:[%s7374_s30 + $0x60] sm:$0xff]  ;;  %v234_v26 = vld [vmem:[%s7374_s30 + $0x78] sm:$0xff]  ;;  %v236_v28 = vld [vmem:[%s7374_s30 + $0x88] sm:$0xff]  ;;  %v7447_v33 = vshrl.u32 %v7406_v14, 16  ;;  %v7456_v36 = vshll.u32 %v7406_v14, 16  ;;  %v7459_v37 = vshrl.u32 %v7408_v15, 16 }
  0x74   : > { %6883 = vmatprep.subr.msk.bf16.mxu0 %vm532_vm0, %v7410_v16  ;;  %v235_v27 = vld [vmem:[%s7374_s30 + $0x80] sm:$0xff]  ;;  %v7451_v34 = vpack.c.bf16 %v232_v24, %v231_v23  ;;  %v7453_v35 = vpack.c.bf16 %v234_v26, %v233_v25  ;;  %v7464_v39 = vshll.u32 %v7408_v15, 16  ;;  %v422_v41 = vrot.slane %v7436_v30, 1  ;;  %vm7482_vm4 = vmand %vm480_vm2, %vm481_vm3  ;;  %v237_v3 = vld [vmem:[%s7374_s30 + $0x90] sm:$0xff]  ;;  %s5450_s20 = sshll.u32 %s7217_s16, 12  ;;  %s5051_s17 = sshll.u32 %s9332_s18, 4  ;;  %s9444_s17 = int_to_ptr.vmem [resolvable:$true] %s5051_s17 }
  0x75   : > { %v7461_v38 = vpack.c.bf16 %v236_v28, %v235_v27  ;;  %v7469_v42 = vshrl.u32 %v7422_v21, 16  ;;  %v7472_v43 = vshll.u32 %v7422_v21, 16  ;;  %v7475_v44 = vshrl.u32 %v7424_v22, 16  ;;  %v238_v5 = vld [vmem:[%s7374_s30 + $0x98] sm:$0xff]  ;;  %v239_v11 = vld [vmem:[%s7374_s30 + $0xa0] sm:$0xff]  ;;  %v240_v12 = vld [vmem:[%s7374_s30 + $0xa8] sm:$0xff]  ;;  %s9440_s27 = scalar_lea.hbm %s9523_s3, %s5450_s20 }
  0x76   : > { %v7478_v45 = vshll.u32 %v7424_v22, 16  ;;  %v7487_v47 = vshrl.u32 %v7451_v34, 16  ;;  %v421_v48 = vor.u32 %v420_v40, %v7433_v29  ;;  %v423_v49 = vor.u32 %v422_v41, %v7444_v32  ;;  %s5038_s16 = scalar_lea.sflag [#allocation4], %s7368_s28  ;;  %s7094_s23 = scalar_lea.vmem %s9444_s17, 4096 }
  0x77   : > { %9566 = vst [vmem:[#allocation12_spill] sm:$0xff] %v7461_v38  ;;  %v424_v50 = vrot.slane %v7456_v36, 1  ;;  %v7493_v51 = vshll.u32 %v7451_v34, 16  ;;  %v7496_v52 = vshrl.u32 %v7453_v35, 16  ;;  %v426_v53 = vrot.slane %v7464_v39, 1  ;;  %p7095_p11 = scmp.ne.s32.totalorder %s9444_s17, %s7094_s23  ;;  %p9600_p0 = scmp.ne.s32.totalorder %s9561_s6, 0 }
  0x78   : > { %v428_v54 = vrot.slane %v7472_v43, 1  ;;  %v7501_v55 = vshll.u32 %v7453_v35, 16  ;;  %v7506_v56 = vsel %vm7482_vm4, %v421_v48, %v7441_v31  ;;  %v7511_v57 = vsel %vm7482_vm4, %v423_v49, %v7436_v30  ;;  %v241_v48 = vld [vmem:[%s7374_s30 + $0xb0] sm:$0xff]  ;;  %v242_v49 = vld [vmem:[%s7374_s30 + $0xb8] sm:$0xff]  ;;  %s7173_s5 = smov [#allocation8]  }
  0x79   : > { %v425_v58 = vor.u32 %v424_v50, %v7447_v33  ;;  %v7515_v59 = vshll.u32 %v7461_v38, 16  ;;  %v427_v60 = vor.u32 %v426_v53, %v7459_v37  ;;  %v430_v62 = vrot.slane %v7478_v45, 1  ;;  %p7096_p1 = pnand %p7095_p11, %p9600_p0  ;;  %s7098_s10 = sshll.u32 %s7173_s5, 4  ;;  %s7099_s10 = int_to_ptr.vmem [resolvable:$false] %s7098_s10 }
  0x7a   : > { %5764 = vmatmul.mubr.msk.bf16.gmra.mrb[4].mxu0 %vm501_vm1, %v7406_v14  ;;  %v429_v61 = vor.u32 %v428_v54, %v7469_v42  ;;  %v7523_v63 = vshrl.u32 %v7461_v38, 16  ;;  %v432_v1 = vrot.slane %v7493_v51, 1  ;;  %v434_v2 = vrot.slane %v7501_v55, 1  ;;  %v243_v54 = vld [vmem:[%s7374_s30 + $0xc0] sm:$0xff]  ;;  %s7100_s11 = scalar_lea.vmem %s7099_s10, 8192  ;;  %p7101_p7 = scmp.lt.s32.totalorder %s9444_s17, %s7099_s10 }
  0x7b   : > { %5767 = vmatprep.mubr.msk.bf16.mxu0 %vm501_vm1, %v7408_v15  ;;  %v7528_v0 = vsel %vm7482_vm4, %v425_v58, %v7456_v36  ;;  %v7539_v6 = vsel %vm7482_vm4, %v427_v60, %v7464_v39  ;;  %v431_v9 = vor.u32 %v430_v62, %v7475_v44  ;;  %v436_v10 = vrot.slane %v7515_v59, 1  ;;  %v244_v58 = vld [vmem:[%s7374_s30 + $0xc8] sm:$0xff]  ;;  %p7097_p3 = pneg %p7096_p1  ;;  %p7102_p9 = scmp.lt.s32.totalorder %s7100_s11, %s7094_s23 }
  0x7c   : > { %v7544_v7 = vsel %vm7482_vm4, %v429_v61, %v7472_v43  ;;  %v433_v13 = vor.u32 %v432_v1, %v7487_v47  ;;  %v435_v17 = vor.u32 %v434_v2, %v7496_v52  ;;  %v7558_v20 = vpack.c.bf16 %v238_v5, %v237_v3 }
  0x7d   : > { %v7555_v18 = vsel %vm7482_vm4, %v431_v9, %v7478_v45  ;;  %v437_v19 = vor.u32 %v436_v10, %v7523_v63  ;;  %v7570_v25 = vpack.c.bf16 %v240_v12, %v239_v11  ;;  %v7601_v62 = vpack.c.bf16 %v242_v49, %v241_v48  ;;  %v245_v12 = vld [vmem:[%s7374_s30 + $0xd0] sm:$0xff]  ;;  %v248_v48 = vld [vmem:[%s7374_s30 + $0xe8] sm:$0xff]  ;;  %p7103_p12 = por %p7102_p9, %p7101_p7 }
  0x7e   : > { %9569 = vst [vmem:[#allocation13_spill] sm:$0xff] %v7558_v20  ;;  %v7563_v23 = vsel %vm7482_vm4, %v433_v13, %v7493_v51  ;;  %v7568_v24 = vsel %vm7482_vm4, %v435_v17, %v7501_v55  ;;  %v7578_v27 = vshll.u32 %v7558_v20, 16  ;;  %v7586_v40 = vshrl.u32 %v7558_v20, 16  ;;  %v246_v13 = vld [vmem:[%s7374_s30 + $0xd8] sm:$0xff] }
  0x7f   : > { %9570 = vst [vmem:[#allocation14_spill] sm:$0xff] %v7570_v25  ;;  %v7575_v26 = vsel %vm7482_vm4, %v437_v19, %v7515_v59  ;;  %v7581_v28 = vshll.u32 %v7570_v25, 16  ;;  %v7594_v50 = vshrl.u32 %v7570_v25, 16  ;;  %9571 = vst [vmem:[#allocation15_spill] sm:$0xff] %v7601_v62  ;;  %v7608_v2 = vpack.c.bf16 %v244_v58, %v243_v54  ;;  %p7104_p2 = pnand %p7103_p12, %p7097_p3 }
  0x80   : > { %v438_v41 = vrot.slane %v7578_v27, 1  ;;  %v7616_v5 = vshll.u32 %v7601_v62, 16  ;;  %v7624_v10 = vshrl.u32 %v7601_v62, 16  ;;  %v7639_v54 = vpack.c.bf16 %v246_v13, %v245_v12 }
  0x81   : > { %v440_v53 = vrot.slane %v7581_v28, 1  ;;  %9572 = vst [vmem:[#allocation16_spill] sm:$0xff] %v7608_v2  ;;  %v7619_v9 = vshll.u32 %v7608_v2, 16  ;;  %v7632_v17 = vshrl.u32 %v7608_v2, 16  ;;  %vm403_vm6 = vsmask.f32 256 }
  0x82   : > { %5768 = vmatmul.mubr.msk.bf16.gmra.mrb[8].mxu0 %vm501_vm1, %v7422_v21  ;;  %v439_v60 = vor.u32 %v438_v41, %v7586_v40  ;;  %v442_v11 = vrot.slane %v7616_v5, 1  ;;  %v247_v41 = vld [vmem:[%s7374_s30 + $0xe0] sm:$0xff]  ;;  %9573 = vst [vmem:[#allocation17_spill] sm:$0xff] %v7639_v54  ;;  %v7663_v13 = vshrl.u32 %v7639_v54, 16  ;;  %vm7674_vm7 = vmand %vm402_vm5, %vm403_vm6 }
  0x83   : > { %5771 = vmatprep.mubr.msk.bf16.mxu0 %vm501_vm1, %v7424_v22  ;;  %v441_v61 = vor.u32 %v440_v53, %v7594_v50  ;;  %v444_v19 = vrot.slane %v7619_v9, 1 }
  0x84   : > { %v7606_v1 = vsel %vm7482_vm4, %v439_v60, %v7578_v27  ;;  %v443_v49 = vor.u32 %v442_v11, %v7624_v10  ;;  %v7646_v60 = vpack.c.bf16 %v248_v48, %v247_v41  ;;  %v7655_v11 = vshll.u32 %v7639_v54, 16 }
  0x85   : > { %v7613_v3 = vsel %vm7482_vm4, %v441_v61, %v7581_v28  ;;  %v445_v53 = vor.u32 %v444_v19, %v7632_v17 }
  0x86   : > { %v7644_v58 = vsel %vm7482_vm4, %v443_v49, %v7616_v5  ;;  %v7658_v12 = vshll.u32 %v7646_v60, 16  ;;  %v446_v19 = vrot.slane %v7655_v11, 1  ;;  %v7669_v41 = vshrl.u32 %v7646_v60, 16 }
  0x87   : > { %v7651_v61 = vsel %vm7482_vm4, %v445_v53, %v7619_v9 }
  0x88   : > { %v448_v48 = vrot.slane %v7658_v12, 1  ;;  %v447_v53 = vor.u32 %v446_v19, %v7663_v13 }
  0x8a   : > { %5772 = vmatmul.mubr.msk.bf16.gmra.mrb[12].mxu0 %vm501_vm1, %v7451_v34 }
  0x8b   : > { %5775 = vmatprep.mubr.msk.bf16.mxu0 %vm501_vm1, %v7453_v35 }
  0x92   : > { %5776 = vmatmul.mubr.msk.bf16.gmra.mrb[16].mxu0 %vm501_vm1, %v7461_v38 }
  0x93   : > { %5779 = vmatprep.mubr.msk.bf16.mxu0 %vm501_vm1, %v7558_v20  ;;  %v7682_v20 = vsel %vm7482_vm4, %v447_v53, %v7655_v11 }
  0x9a   : > { %5780 = vmatmul.mubr.msk.bf16.gmra.mrb[20].mxu0 %vm501_vm1, %v7570_v25  ;;  %v449_v25 = vor.u32 %v448_v48, %v7669_v41  ;;  %v954_v48 = vsel %vm532_vm0, %v7410_v16, 0 }
  0x9b   : > { %5783 = vmatprep.mubr.msk.bf16.mxu0 %vm501_vm1, %v7601_v62  ;;  %v327_v62 = vrot.slane %v7433_v29, 7 }
  0x9c   : > { %v7688_v38 = vsel %vm7482_vm4, %v449_v25, %v7658_v12  ;;  %v335_v25 = vrot.slane %v7447_v33, 7 }
  0x9d   : > { %v330_v49 = vor.u32 %v7441_v31, %v327_v62 }
  0x9f   : > { %v7693_v31 = vsel %vm7674_vm7, %v7433_v29, %v330_v49  ;;  %v339_v29 = vrot.slane %v7459_v37, 7  ;;  %v1165_v49 = vld [vmem:[#allocation5 + $0x6] sm:$0x3] }
  0xa2   : > { %5784 = vmatmul.mubr.msk.bf16.gmra.mrb[24].mxu0 %vm501_vm1, %v7608_v2 }
  0xa3   : > { %5787 = vmatprep.mubr.msk.bf16.mxu0 %vm501_vm1, %v7639_v54  ;;  %v331_v54 = vrot.slane %v7444_v32, 7 }
  0xa5   : > { %v334_v62 = vor.u32 %v7436_v30, %v331_v54  ;;  %v338_v30 = vor.u32 %v7456_v36, %v335_v25  ;;  %v343_v54 = vrot.slane %v7469_v42, 7 }
  0xa7   : > { %v7703_v19 = vsel %vm7674_vm7, %v7444_v32, %v334_v62  ;;  %v342_v32 = vor.u32 %v7464_v39, %v339_v29  ;;  %v7719_v16 = vsel %vm7674_vm7, %v7447_v33, %v338_v30  ;;  %v347_v62 = vrot.slane %v7475_v44, 7 }
  0xa8   : > { %v346_v36 = vor.u32 %v7472_v43, %v343_v54  ;;  %v363_v30 = vrot.slane %v7586_v40, 7  ;;  %v371_v54 = vrot.slane %v7624_v10, 7 }
  0xa9   : > { %v7725_v53 = vsel %vm7674_vm7, %v7459_v37, %v342_v32  ;;  %v350_v33 = vor.u32 %v7478_v45, %v347_v62  ;;  %v351_v37 = vrot.slane %v7487_v47, 7 }
  0xaa   : > { %5788 = vmatmul.mubr.msk.bf16.gmra.mrb[28].mxu0 %vm501_vm1, %v7646_v60  ;;  %v7737_v39 = vsel %vm7674_vm7, %v7469_v42, %v346_v36  ;;  %v379_v36 = vrot.slane %v7663_v13, 7 }
  0xab   : > { %5793 = vmatprep.mubr.msk.bf16.mxu0 %vm501_vm1, %v7693_v31  ;;  %v7743_v25 = vsel %vm7674_vm7, %v7475_v44, %v350_v33  ;;  %v354_v43 = vor.u32 %v7493_v51, %v351_v37  ;;  %v359_v44 = vrot.slane %v7523_v63, 7 }
  0xad   : > { %v7755_v45 = vsel %vm7674_vm7, %v7487_v47, %v354_v43  ;;  %v362_v51 = vor.u32 %v7515_v59, %v359_v44  ;;  %v366_v47 = vor.u32 %v7578_v27, %v363_v30 }
  0xaf   : > { %v7779_v32 = vsel %vm7674_vm7, %v7586_v40, %v366_v47  ;;  %v375_v40 = vrot.slane %v7632_v17, 7  ;;  %v1767_v47 = vld [vmem:[#allocation5 + $0xc] sm:$0x3] }
  0xb2   : > { %5794 = vmatmul.mubr.msk.bf16.vlgmr.msra.gmra.mrb[0].mxu0 %vm501_vm1, %v7703_v19 }
  0xb3   : > { %5826 = vmatpush3.bf16.msra.mxu0 %v954_v48  ;;  %5797 = vmatprep.mubr.msk.bf16.mxu0 %vm501_vm1, %v7693_v31  ;;  %v355_v48 = vrot.slane %v7496_v52, 7 }
  0xb4   : > { %6884 = vmatprep.subr.msk.bf16.mxu0 %vm532_vm0, %v1165_v49 }
  0xb5   : > { %v358_v42 = vor.u32 %v7501_v55, %v355_v48  ;;  %v7773_v55 = vsel %vm7674_vm7, %v7523_v63, %v362_v51  ;;  %v374_v63 = vor.u32 %v7616_v5, %v371_v54  ;;  %v9578_v54 = vld [vmem:[#allocation14_spill] sm:$0xff] }
  0xb7   : > { %v7761_v29 = vsel %vm7674_vm7, %v7496_v52, %v358_v42  ;;  %v367_v52 = vrot.slane %v7594_v50, 7  ;;  %v7797_v62 = vsel %vm7674_vm7, %v7624_v10, %v374_v63  ;;  %v383_v10 = vrot.slane %v7669_v41, 7  ;;  %v9580_v63 = vld [vmem:[#allocation16_spill] sm:$0xff] }
  0xb9   : > { %v370_v59 = vor.u32 %v7581_v28, %v367_v52  ;;  %v378_v28 = vor.u32 %v7619_v9, %v375_v40  ;;  %v386_v9 = vor.u32 %v7658_v12, %v383_v10  ;;  %v9577_v52 = vld [vmem:[#allocation13_spill] sm:$0xff] }
  0xba   : > { %5798 = vmatmul.mubr.msk.bf16.gmra.mrb[4].mxu0 %vm501_vm1, %v7719_v16  ;;  %v9581_v40 = vld [vmem:[#allocation17_spill] sm:$0xff] }
  0xbb   : > { %5801 = vmatprep.mubr.msk.bf16.mxu0 %vm501_vm1, %v7725_v53  ;;  %v7791_v27 = vsel %vm7674_vm7, %v7594_v50, %v370_v59  ;;  %v382_v50 = vor.u32 %v7655_v11, %v379_v36  ;;  %v7809_v5 = vsel %vm7674_vm7, %v7632_v17, %v378_v28  ;;  %v7825_v17 = vsel %vm7674_vm7, %v7669_v41, %v386_v9  ;;  %v1566_v41 = vld [vmem:[#allocation5 + $0xa] sm:$0x3]  ;;  %v9579_v59 = vld [vmem:[#allocation15_spill] sm:$0xff]  ;;  %v1965_v28 = vld [vmem:[#allocation5 + $0xe] sm:$0x3] }
  0xbc   : > { %v1170_v11 = vsel %vm532_vm0, %v1165_v49, 0  ;;  %v250_v49 = vld [vmem:[%s7374_s30 + $0xf8] sm:$0xff]  ;;  %v1571_v51 = vsel %vm532_vm0, %v1566_v41, 0  ;;  %v1769_v36 = vsel %vm532_vm0, %v1767_v47, 0  ;;  %v1967_v9 = vsel %vm532_vm0, %v1965_v28, 0 }
  0xbd   : > { %v7815_v33 = vsel %vm7674_vm7, %v7663_v13, %v382_v50  ;;  %v1366_v13 = vld [vmem:[#allocation5 + $0x8] sm:$0x3] }
  0xbe   : > { %v1370_v12 = vsel %vm532_vm0, %v1366_v13, 0 }
  0xc2   : > { %5802 = vmatmul.mubr.msk.bf16.gmra.mrb[8].mxu0 %vm501_vm1, %v7737_v39 }
  0xc3   : > { %5805 = vmatprep.mubr.msk.bf16.mxu0 %vm501_vm1, %v7743_v25 }
  0xca   : > { %5806 = vmatmul.mubr.msk.bf16.gmra.mrb[12].mxu0 %vm501_vm1, %v7755_v45 }
  0xcb   : > { %5809 = vmatprep.mubr.msk.bf16.mxu0 %vm501_vm1, %v7761_v29 }
  0xd2   : > { %5810 = vmatmul.mubr.msk.bf16.gmra.mrb[16].mxu0 %vm501_vm1, %v7773_v55 }
  0xd3   : > { %5813 = vmatprep.mubr.msk.bf16.mxu0 %vm501_vm1, %v7779_v32 }
  0xda   : > { %5814 = vmatmul.mubr.msk.bf16.gmra.mrb[20].mxu0 %vm501_vm1, %v7791_v27 }
  0xdb   : > { %5817 = vmatprep.mubr.msk.bf16.mxu0 %vm501_vm1, %v7797_v62 }
  0xe2   : > { %5818 = vmatmul.mubr.msk.bf16.gmra.mrb[24].mxu0 %vm501_vm1, %v7809_v5 }
  0xe3   : > { %5821 = vmatprep.mubr.msk.bf16.mxu0 %vm501_vm1, %v7815_v33 }
  0xea   : > { %5822 = vmatmul.mubr.msk.bf16.gmra.mrb[28].mxu0 %vm501_vm1, %v7825_v17 }
  0xeb   : > { %5827 = vmatprep.mubr.msk.bf16.mxu0 %vm501_vm1, %v7506_v56 }
  0xf2   : > { %5828 = vmatmul.mubr.msk.bf16.vlgmr.msra.gmra.mrb[0].mxu0 %vm501_vm1, %v7511_v57 }
  0xf3   : > { %5860 = vmatpush3.bf16.msra.mxu0 %v1170_v11  ;;  %5831 = vmatprep.mubr.msk.bf16.mxu0 %vm501_vm1, %v7506_v56  ;;  %v2163_v11 = vld [vmem:[#allocation5 + $0x10] sm:$0x3] }
  0xf4   : > { %6885 = vmatprep.subr.msk.bf16.mxu0 %vm532_vm0, %v1366_v13 }
  0xfa   : > { %5832 = vmatmul.mubr.msk.bf16.gmra.mrb[4].mxu0 %vm501_vm1, %v7528_v0 }
  0xfb   : > { %5835 = vmatprep.mubr.msk.bf16.mxu0 %vm501_vm1, %v7539_v6 }
 0x102   : > { %5836 = vmatmul.mubr.msk.bf16.gmra.mrb[8].mxu0 %vm501_vm1, %v7544_v7 }
 0x103   : > { %5839 = vmatprep.mubr.msk.bf16.mxu0 %vm501_vm1, %v7555_v18 }
 0x10a   : > { %5840 = vmatmul.mubr.msk.bf16.gmra.mrb[12].mxu0 %vm501_vm1, %v7563_v23 }
 0x10b   : > { %5843 = vmatprep.mubr.msk.bf16.mxu0 %vm501_vm1, %v7568_v24 }
 0x112   : > { %5844 = vmatmul.mubr.msk.bf16.gmra.mrb[16].mxu0 %vm501_vm1, %v7575_v26 }
 0x113   : > { %5847 = vmatprep.mubr.msk.bf16.mxu0 %vm501_vm1, %v7606_v1 }
 0x11a   : > { %5848 = vmatmul.mubr.msk.bf16.gmra.mrb[20].mxu0 %vm501_vm1, %v7613_v3 }
 0x11b   : > { %5851 = vmatprep.mubr.msk.bf16.mxu0 %vm501_vm1, %v7644_v58 }
 0x122   : > { %5852 = vmatmul.mubr.msk.bf16.gmra.mrb[24].mxu0 %vm501_vm1, %v7651_v61 }
 0x123   : > { %5855 = vmatprep.mubr.msk.bf16.mxu0 %vm501_vm1, %v7682_v20 }
 0x12a   : > { %5856 = vmatmul.mubr.msk.bf16.gmra.mrb[28].mxu0 %vm501_vm1, %v7688_v38 }
 0x12b   : > { %5861 = vmatprep.mubr.msk.bf16.mxu0 %vm501_vm1, %v7703_v19  ;;  %v249_v19 = vld [vmem:[%s7374_s30 + $0xf0] sm:$0xff] }
 0x12c   : > { %v7889_v37 = vpack.c.bf16 %v250_v49, %v249_v19 }
 0x12e   : > { %v1150_v48 = vshrl.u32 %v7889_v37, 16  ;;  %v1154_v42 = vshll.u32 %v7889_v37, 16 }
 0x130   : > { %v1153_v43 = vrot.slane %v1150_v48, 7 }
 0x132   : > { %5862 = vmatmul.mubr.msk.bf16.vlgmr.msra.gmra.mrb[0].mxu0 %vm501_vm1, %v7693_v31  ;;  %v1156_v44 = vor.u32 %v1154_v42, %v1153_v43 }
 0x133   : > { %5894 = vmatpush3.bf16.msra.mxu0 %v1370_v12  ;;  %5865 = vmatprep.mubr.msk.bf16.mxu0 %vm501_vm1, %v7719_v16 }
 0x134   : > { %6886 = vmatprep.subr.msk.bf16.mxu0 %vm532_vm0, %v1566_v41  ;;  %v7903_v30 = vsel %vm7674_vm7, %v1150_v48, %v1156_v44 }
 0x13a   : > { %5866 = vmatmul.mubr.msk.bf16.gmra.mrb[4].mxu0 %vm501_vm1, %v7725_v53 }
 0x13b   : > { %5869 = vmatprep.mubr.msk.bf16.mxu0 %vm501_vm1, %v7737_v39 }
 0x142   : > { %5870 = vmatmul.mubr.msk.bf16.gmra.mrb[8].mxu0 %vm501_vm1, %v7743_v25 }
 0x143   : > { %5873 = vmatprep.mubr.msk.bf16.mxu0 %vm501_vm1, %v7755_v45 }
 0x14a   : > { %5874 = vmatmul.mubr.msk.bf16.gmra.mrb[12].mxu0 %vm501_vm1, %v7761_v29 }
 0x14b   : > { %5877 = vmatprep.mubr.msk.bf16.mxu0 %vm501_vm1, %v7773_v55 }
 0x152   : > { %5878 = vmatmul.mubr.msk.bf16.gmra.mrb[16].mxu0 %vm501_vm1, %v7779_v32 }
 0x153   : > { %5881 = vmatprep.mubr.msk.bf16.mxu0 %vm501_vm1, %v7791_v27 }
 0x15a   : > { %5882 = vmatmul.mubr.msk.bf16.gmra.mrb[20].mxu0 %vm501_vm1, %v7797_v62 }
 0x15b   : > { %5885 = vmatprep.mubr.msk.bf16.mxu0 %vm501_vm1, %v7809_v5 }
 0x162   : > { %5886 = vmatmul.mubr.msk.bf16.gmra.mrb[24].mxu0 %vm501_vm1, %v7815_v33 }
 0x163   : > { %5889 = vmatprep.mubr.msk.bf16.mxu0 %vm501_vm1, %v7825_v17 }
 0x16a   : > { %5890 = vmatmul.mubr.msk.bf16.gmra.mrb[28].mxu0 %vm501_vm1, %v7903_v30 }
 0x16b   : > { %5895 = vmatprep.mubr.msk.bf16.mxu0 %vm501_vm1, %v7392_v8  ;;  %v9576_v8 = vld [vmem:[#allocation12_spill] sm:$0xff] }
 0x172   : > { %5896 = vmatmul.mubr.msk.bf16.vlgmr.msra.gmra.mrb[0].mxu0 %vm501_vm1, %v7388_v4 }
 0x173   : > { %5928 = vmatpush3.bf16.msra.mxu0 %v1571_v51  ;;  %5899 = vmatprep.mubr.msk.bf16.mxu0 %vm501_vm1, %v7406_v14 }
 0x174   : > { %6887 = vmatprep.subr.msk.bf16.mxu0 %vm532_vm0, %v1767_v47 }
 0x17a   : > { %5900 = vmatmul.mubr.msk.bf16.gmra.mrb[4].mxu0 %vm501_vm1, %v7408_v15 }
 0x17b   : > { %5903 = vmatprep.mubr.msk.bf16.mxu0 %vm501_vm1, %v7422_v21 }
 0x182   : > { %5904 = vmatmul.mubr.msk.bf16.gmra.mrb[8].mxu0 %vm501_vm1, %v7424_v22 }
 0x183   : > { %5907 = vmatprep.mubr.msk.bf16.mxu0 %vm501_vm1, %v7451_v34 }
 0x18a   : > { %5908 = vmatmul.mubr.msk.bf16.gmra.mrb[12].mxu0 %vm501_vm1, %v7453_v35 }
 0x18b   : > { %5911 = vmatprep.mubr.msk.bf16.mxu0 %vm501_vm1, %v9576_v8 }
 0x192   : > { %5912 = vmatmul.mubr.msk.bf16.gmra.mrb[16].mxu0 %vm501_vm1, %v9577_v52 }
 0x193   : > { %5915 = vmatprep.mubr.msk.bf16.mxu0 %vm501_vm1, %v9578_v54 }
 0x19a   : > { %5916 = vmatmul.mubr.msk.bf16.gmra.mrb[20].mxu0 %vm501_vm1, %v9579_v59 }
 0x19b   : > { %5919 = vmatprep.mubr.msk.bf16.mxu0 %vm501_vm1, %v9580_v63 }
 0x1a2   : > { %5920 = vmatmul.mubr.msk.bf16.gmra.mrb[24].mxu0 %vm501_vm1, %v9581_v40 }
 0x1a3   : > { %5923 = vmatprep.mubr.msk.bf16.mxu0 %vm501_vm1, %v7646_v60 }
 0x1aa   : > { %5924 = vmatmul.mubr.msk.bf16.gmra.mrb[28].mxu0 %vm501_vm1, %v7889_v37 }
 0x1ab   : > { %5929 = vmatprep.mubr.msk.bf16.mxu0 %vm501_vm1, %v7511_v57  ;;  %v1159_v57 = vrot.slane %v1154_v42, 1 }
 0x1ad   : > { %v1160_v50 = vor.u32 %v1159_v57, %v1150_v48 }
 0x1af   : > { %v1163_v10 = vsel %vm7482_vm4, %v1160_v50, %v1154_v42 }
 0x1b2   : > { %5930 = vmatmul.mubr.msk.bf16.vlgmr.msra.gmra.mrb[0].mxu0 %vm501_vm1, %v7506_v56 }
 0x1b3   : > { %5962 = vmatpush3.bf16.msra.mxu0 %v1769_v36  ;;  %5933 = vmatprep.mubr.msk.bf16.mxu0 %vm501_vm1, %v7528_v0 }
 0x1b4   : > { %6888 = vmatprep.subr.msk.bf16.mxu0 %vm532_vm0, %v1965_v28 }
 0x1ba   : > { %5934 = vmatmul.mubr.msk.bf16.gmra.mrb[4].mxu0 %vm501_vm1, %v7539_v6 }
 0x1bb   : > { %5937 = vmatprep.mubr.msk.bf16.mxu0 %vm501_vm1, %v7544_v7 }
 0x1c2   : > { %5938 = vmatmul.mubr.msk.bf16.gmra.mrb[8].mxu0 %vm501_vm1, %v7555_v18 }
 0x1c3   : > { %5941 = vmatprep.mubr.msk.bf16.mxu0 %vm501_vm1, %v7563_v23 }
 0x1ca   : > { %5942 = vmatmul.mubr.msk.bf16.gmra.mrb[12].mxu0 %vm501_vm1, %v7568_v24 }
 0x1cb   : > { %5945 = vmatprep.mubr.msk.bf16.mxu0 %vm501_vm1, %v7575_v26 }
 0x1d2   : > { %5946 = vmatmul.mubr.msk.bf16.gmra.mrb[16].mxu0 %vm501_vm1, %v7606_v1 }
 0x1d3   : > { %5949 = vmatprep.mubr.msk.bf16.mxu0 %vm501_vm1, %v7613_v3 }
 0x1da   : > { %5950 = vmatmul.mubr.msk.bf16.gmra.mrb[20].mxu0 %vm501_vm1, %v7644_v58 }
 0x1db   : > { %5953 = vmatprep.mubr.msk.bf16.mxu0 %vm501_vm1, %v7651_v61 }
 0x1e2   : > { %5954 = vmatmul.mubr.msk.bf16.gmra.mrb[24].mxu0 %vm501_vm1, %v7682_v20 }
 0x1e3   : > { %5957 = vmatprep.mubr.msk.bf16.mxu0 %vm501_vm1, %v7688_v38 }
 0x1ea   : > { %5958 = vmatmul.mubr.msk.bf16.gmra.mrb[28].mxu0 %vm501_vm1, %v1163_v10 }
 0x1eb   : > { %5963 = vmatprep.mubr.msk.bf16.mxu0 %vm501_vm1, %v7693_v31  ;;  %v2165_v31 = vsel %vm532_vm0, %v2163_v11, 0 }
 0x1f2   : > { %5964 = vmatmul.mubr.msk.bf16.vlgmr.msra.gmra.mrb[0].mxu0 %vm501_vm1, %v7719_v16 }
 0x1f3   : > { %5996 = vmatpush3.bf16.msra.mxu0 %v1967_v9  ;;  %5967 = vmatprep.mubr.msk.bf16.mxu0 %vm501_vm1, %v7725_v53 }
 0x1f4   : > { %6889 = vmatprep.subr.msk.bf16.mxu0 %vm532_vm0, %v2163_v11 }
 0x1fa   : > { %5968 = vmatmul.mubr.msk.bf16.gmra.mrb[4].mxu0 %vm501_vm1, %v7737_v39 }
 0x1fb   : > { %5971 = vmatprep.mubr.msk.bf16.mxu0 %vm501_vm1, %v7743_v25 }
 0x202   : > { %5972 = vmatmul.mubr.msk.bf16.gmra.mrb[8].mxu0 %vm501_vm1, %v7755_v45 }
 0x203   : > { %5975 = vmatprep.mubr.msk.bf16.mxu0 %vm501_vm1, %v7761_v29 }
 0x20a   : > { %5976 = vmatmul.mubr.msk.bf16.gmra.mrb[12].mxu0 %vm501_vm1, %v7773_v55 }
 0x20b   : > { %5979 = vmatprep.mubr.msk.bf16.mxu0 %vm501_vm1, %v7779_v32 }
 0x212   : > { %5980 = vmatmul.mubr.msk.bf16.gmra.mrb[16].mxu0 %vm501_vm1, %v7791_v27 }
 0x213   : > { %5983 = vmatprep.mubr.msk.bf16.mxu0 %vm501_vm1, %v7797_v62 }
 0x21a   : > { %5984 = vmatmul.mubr.msk.bf16.gmra.mrb[20].mxu0 %vm501_vm1, %v7809_v5 }
 0x21b   : > { %5987 = vmatprep.mubr.msk.bf16.mxu0 %vm501_vm1, %v7815_v33 }
 0x222   : > { %5988 = vmatmul.mubr.msk.bf16.gmra.mrb[24].mxu0 %vm501_vm1, %v7825_v17 }
 0x223   : > { %5991 = vmatprep.mubr.msk.bf16.mxu0 %vm501_vm1, %v7903_v30 }
 0x22a   : > { %5992 = vmatmul.mubr.msk.bf16.gmra.mrb[28].mxu0 %vm501_vm1, %v7825_v17 }
 0x22b   : > { %5997 = vmatprep.mubr.msk.bf16.mxu0 %vm501_vm1, %v7388_v4  ;;  %v2875_v4 = vld [vmem:[#allocation7 + $0x2] sm:$0x3] }
 0x22c   : > { %6890 = vmatprep.subr.msk.bf16.mxu1 %vm532_vm0, %v2875_v4 }
 0x232   : > { %5998 = vmatmul.mubr.msk.bf16.vlgmr.msra.gmra.mrb[0].mxu0 %vm501_vm1, %v7406_v14  ;;  %v2907_v14 = vsel %vm532_vm0, %v2875_v4, 0 }
 0x233   : > { %6030 = vmatpush3.bf16.msra.mxu0 %v2165_v31  ;;  %6001 = vmatprep.mubr.msk.bf16.mxu0 %vm501_vm1, %v7408_v15  ;;  %v8076_v15 = vld [vmem:[#allocation7] sm:$0x3] }
 0x234   : > { %6064 = vmatpush3.bf16.msra.mxu1 %v2907_v14 }
 0x235   : > { %6891 = vmatprep.subr.msk.bf16.mxu1 %vm532_vm0, %v8076_v15 }
 0x23a   : > { %6002 = vmatmul.mubr.msk.bf16.gmra.mrb[4].mxu0 %vm501_vm1, %v7422_v21 }
 0x23b   : > { %6005 = vmatprep.mubr.msk.bf16.mxu0 %vm501_vm1, %v7424_v22 }
 0x242   : > { %6006 = vmatmul.mubr.msk.bf16.gmra.mrb[8].mxu0 %vm501_vm1, %v7451_v34 }
 0x243   : > { %6009 = vmatprep.mubr.msk.bf16.mxu0 %vm501_vm1, %v7453_v35 }
 0x24a   : > { %6010 = vmatmul.mubr.msk.bf16.gmra.mrb[12].mxu0 %vm501_vm1, %v9576_v8 }
 0x24b   : > { %6013 = vmatprep.mubr.msk.bf16.mxu0 %vm501_vm1, %v9577_v52 }
 0x252   : > { %6014 = vmatmul.mubr.msk.bf16.gmra.mrb[16].mxu0 %vm501_vm1, %v9578_v54 }
 0x253   : > { %6017 = vmatprep.mubr.msk.bf16.mxu0 %vm501_vm1, %v9579_v59 }
 0x25a   : > { %6018 = vmatmul.mubr.msk.bf16.gmra.mrb[20].mxu0 %vm501_vm1, %v9580_v63 }
 0x25b   : > { %6021 = vmatprep.mubr.msk.bf16.mxu0 %vm501_vm1, %v9581_v40 }
 0x262   : > { %6022 = vmatmul.mubr.msk.bf16.gmra.mrb[24].mxu0 %vm501_vm1, %v7646_v60 }
 0x263   : > { %6025 = vmatprep.mubr.msk.bf16.mxu0 %vm501_vm1, %v7889_v37 }
 0x26a   : > { %6026 = vmatmul.mubr.msk.bf16.gmra.mrb[28].mxu0 %vm501_vm1, %v7646_v60 }
 0x26b   : > { %6031 = vmatprep.mubr.msk.bf16.mxu0 %vm501_vm1, %v7506_v56 }
 0x272   : > { %6032 = vmatmul.mubr.msk.bf16.vlgmr.msra.gmra.mrb[0].mxu0 %vm501_vm1, %v7528_v0 }
 0x273   : > { %6035 = vmatprep.mubr.msk.bf16.mxu0 %vm501_vm1, %v7539_v6 }
 0x27a   : > { %6036 = vmatmul.mubr.msk.bf16.gmra.mrb[4].mxu0 %vm501_vm1, %v7544_v7 }
 0x27b   : > { %6039 = vmatprep.mubr.msk.bf16.mxu0 %vm501_vm1, %v7555_v18 }
 0x282   : > { %6040 = vmatmul.mubr.msk.bf16.gmra.mrb[8].mxu0 %vm501_vm1, %v7563_v23 }
 0x283   : > { %6043 = vmatprep.mubr.msk.bf16.mxu0 %vm501_vm1, %v7568_v24 }
 0x28a   : > { %6044 = vmatmul.mubr.msk.bf16.gmra.mrb[12].mxu0 %vm501_vm1, %v7575_v26 }
 0x28b   : > { %6047 = vmatprep.mubr.msk.bf16.mxu0 %vm501_vm1, %v7606_v1 }
 0x292   : > { %6048 = vmatmul.mubr.msk.bf16.gmra.mrb[16].mxu0 %vm501_vm1, %v7613_v3 }
 0x293   : > { %6051 = vmatprep.mubr.msk.bf16.mxu0 %vm501_vm1, %v7644_v58 }
 0x29a   : > { %6052 = vmatmul.mubr.msk.bf16.gmra.mrb[20].mxu0 %vm501_vm1, %v7651_v61 }
 0x29b   : > { %6055 = vmatprep.mubr.msk.bf16.mxu0 %vm501_vm1, %v7682_v20 }
 0x2a2   : > { %6056 = vmatmul.mubr.msk.bf16.gmra.mrb[24].mxu0 %vm501_vm1, %v7688_v38 }
 0x2a3   : > { %6059 = vmatprep.mubr.msk.bf16.mxu0 %vm501_vm1, %v1163_v10 }
 0x2aa   : > { %6060 = vmatmul.mubr.msk.bf16.gmra.mrb[28].mxu0 %vm501_vm1, %v7688_v38 }
 0x345   : > { %v8080_v21 = vpop.f32.mrb[0].mxu0 }
 0x346   : > { %v8082_v22 = vpop.f32.mrb[1].mxu0  ;;  %v2432_v56 = vmul.f32 %v8080_v21, %v8080_v21  ;;  %v2363_v20 = vsel %vm501_vm1, %v8080_v21, 0.0 }
 0x347   : > { %v2430_v34 = vmul.f32 %v8082_v22, %v8082_v22  ;;  %v8086_v35 = vpop.f32.mrb[2].mxu0  ;;  %v2360_v0 = vsel %vm501_vm1, %v8082_v22, 0.0 }
 0x348   : > { %v8088_v38 = vpop.f32.mrb[3].mxu0  ;;  %v2433_v24 = vmul.f32 %v8086_v35, %v8086_v35  ;;  %v2465_v58 = vsel %vm501_vm1, %v2432_v56, 0.0  ;;  %v2365_v60 = vsel %vm501_vm1, %v8086_v35, 0.0 }
 0x349   : > { %v2361_v6 = vsel %vm501_vm1, %v8088_v38, 0.0  ;;  %v2431_v7 = vmul.f32 %v8088_v38, %v8088_v38  ;;  %v2462_v23 = vsel %vm501_vm1, %v2430_v34, 0.0 }
 0x34a   : > { %v2362_v18 = vadd.f32 %v2361_v6, %v2360_v0  ;;  %v2467_v25 = vsel %vm501_vm1, %v2433_v24, 0.0 }
 0x34b   : > { %v2463_v26 = vsel %vm501_vm1, %v2431_v7, 0.0 }
 0x34c   : > { %v2364_v1 = vadd.f32 %v2363_v20, %v2362_v18  ;;  %v2464_v3 = vadd.f32 %v2463_v26, %v2462_v23 }
 0x34d   : > { %v8107_v61 = vpop.f32.mrb[4].mxu0 }
 0x34e   : > { %v2466_v16 = vadd.f32 %v2465_v58, %v2464_v3  ;;  %v8109_v53 = vpop.f32.mrb[5].mxu0  ;;  %v2366_v39 = vadd.f32 %v2365_v60, %v2364_v1  ;;  %v2436_v5 = vmul.f32 %v8107_v61, %v8107_v61  ;;  %v2371_v19 = vsel %vm501_vm1, %v8107_v61, 0.0 }
 0x34f   : > { %v2367_v45 = vsel %vm501_vm1, %v8109_v53, 0.0  ;;  %v2434_v29 = vmul.f32 %v8109_v53, %v8109_v53  ;;  %v8116_v55 = vpop.f32.mrb[6].mxu0 }
 0x350   : > { %v2368_v32 = vadd.f32 %v2367_v45, %v2366_v39  ;;  %v2468_v27 = vadd.f32 %v2467_v25, %v2466_v16  ;;  %v8118_v62 = vpop.f32.mrb[7].mxu0  ;;  %v2437_v49 = vmul.f32 %v8116_v55, %v8116_v55  ;;  %v2473_v42 = vsel %vm501_vm1, %v2436_v5, 0.0 }
 0x351   : > { %v2469_v33 = vsel %vm501_vm1, %v2434_v29, 0.0  ;;  %v2369_v17 = vsel %vm501_vm1, %v8118_v62, 0.0  ;;  %v2435_v13 = vmul.f32 %v8118_v62, %v8118_v62  ;;  %v2373_v44 = vsel %vm501_vm1, %v8116_v55, 0.0 }
 0x352   : > { %v2470_v12 = vadd.f32 %v2469_v33, %v2468_v27  ;;  %v2370_v41 = vadd.f32 %v2369_v17, %v2368_v32  ;;  %v2475_v52 = vsel %vm501_vm1, %v2437_v49, 0.0 }
 0x353   : > { %v2471_v37 = vsel %vm501_vm1, %v2435_v13, 0.0 }
 0x354   : > { %v2372_v48 = vadd.f32 %v2371_v19, %v2370_v41  ;;  %v2472_v43 = vadd.f32 %v2471_v37, %v2470_v12 }
 0x355   : > { %v8135_v30 = vpop.f32.mrb[8].mxu0 }
 0x356   : > { %v2474_v51 = vadd.f32 %v2473_v42, %v2472_v43  ;;  %v8137_v47 = vpop.f32.mrb[9].mxu0  ;;  %v2374_v8 = vadd.f32 %v2373_v44, %v2372_v48  ;;  %v2440_v57 = vmul.f32 %v8135_v30, %v8135_v30  ;;  %v2379_v4 = vsel %vm501_vm1, %v8135_v30, 0.0 }
 0x357   : > { %v2375_v54 = vsel %vm501_vm1, %v8137_v47, 0.0  ;;  %v2438_v59 = vmul.f32 %v8137_v47, %v8137_v47  ;;  %v8144_v63 = vpop.f32.mrb[10].mxu0 }
 0x358   : > { %v2376_v40 = vadd.f32 %v2375_v54, %v2374_v8  ;;  %v2476_v36 = vadd.f32 %v2475_v52, %v2474_v51  ;;  %v8146_v28 = vpop.f32.mrb[11].mxu0  ;;  %v2441_v14 = vmul.f32 %v8144_v63, %v8144_v63  ;;  %v2481_v6 = vsel %vm501_vm1, %v2440_v57, 0.0 }
 0x359   : > { %v2477_v50 = vsel %vm501_vm1, %v2438_v59, 0.0  ;;  %v2377_v10 = vsel %vm501_vm1, %v8146_v28, 0.0  ;;  %v2439_v9 = vmul.f32 %v8146_v28, %v8146_v28  ;;  %v2381_v7 = vsel %vm501_vm1, %v8144_v63, 0.0 }
 0x35a   : > { %v2478_v11 = vadd.f32 %v2477_v50, %v2476_v36  ;;  %v2378_v31 = vadd.f32 %v2377_v10, %v2376_v40  ;;  %v2483_v26 = vsel %vm501_vm1, %v2441_v14, 0.0 }
 0x35b   : > { %v2479_v34 = vsel %vm501_vm1, %v2439_v9, 0.0 }
 0x35c   : > { %v2380_v56 = vadd.f32 %v2379_v4, %v2378_v31  ;;  %v2480_v0 = vadd.f32 %v2479_v34, %v2478_v11 }
 0x35d   : > { %v8163_v18 = vpop.f32.mrb[12].mxu0 }
 0x35e   : > { %v2482_v20 = vadd.f32 %v2481_v6, %v2480_v0  ;;  %v8165_v23 = vpop.f32.mrb[13].mxu0  ;;  %v2382_v24 = vadd.f32 %v2381_v7, %v2380_v56  ;;  %v2444_v25 = vmul.f32 %v8163_v18, %v8163_v18  ;;  %v2387_v33 = vsel %vm501_vm1, %v8163_v18, 0.0 }
 0x35f   : > { %v2383_v1 = vsel %vm501_vm1, %v8165_v23, 0.0  ;;  %v2442_v3 = vmul.f32 %v8165_v23, %v8165_v23  ;;  %v8172_v58 = vpop.f32.mrb[14].mxu0 }
 0x360   : > { %v2384_v60 = vadd.f32 %v2383_v1, %v2382_v24  ;;  %v2484_v16 = vadd.f32 %v2483_v26, %v2482_v20  ;;  %v8174_v39 = vpop.f32.mrb[15].mxu0  ;;  %v2445_v17 = vmul.f32 %v8172_v58, %v8172_v58  ;;  %v2489_v19 = vsel %vm501_vm1, %v2444_v25, 0.0 }
 0x361   : > { %v2485_v45 = vsel %vm501_vm1, %v2442_v3, 0.0  ;;  %v2385_v29 = vsel %vm501_vm1, %v8174_v39, 0.0  ;;  %v2443_v32 = vmul.f32 %v8174_v39, %v8174_v39  ;;  %v2389_v49 = vsel %vm501_vm1, %v8172_v58, 0.0 }
 0x362   : > { %v2486_v27 = vadd.f32 %v2485_v45, %v2484_v16  ;;  %v2386_v5 = vadd.f32 %v2385_v29, %v2384_v60  ;;  %v2491_v44 = vsel %vm501_vm1, %v2445_v17, 0.0 }
 0x363   : > { %v2487_v13 = vsel %vm501_vm1, %v2443_v32, 0.0 }
 0x364   : > { %v2388_v12 = vadd.f32 %v2387_v33, %v2386_v5  ;;  %v2488_v41 = vadd.f32 %v2487_v13, %v2486_v27 }
 0x365   : > { %v8191_v37 = vpop.f32.mrb[16].mxu0 }
 0x366   : > { %v2490_v48 = vadd.f32 %v2489_v19, %v2488_v41  ;;  %v8193_v43 = vpop.f32.mrb[17].mxu0  ;;  %v2390_v42 = vadd.f32 %v2389_v49, %v2388_v12  ;;  %v2448_v36 = vmul.f32 %v8191_v37, %v8191_v37  ;;  %v2395_v31 = vsel %vm501_vm1, %v8191_v37, 0.0 }
 0x367   : > { %v2391_v51 = vsel %vm501_vm1, %v8193_v43, 0.0  ;;  %v2446_v8 = vmul.f32 %v8193_v43, %v8193_v43  ;;  %v8200_v52 = vpop.f32.mrb[18].mxu0 }
 0x368   : > { %v2392_v54 = vadd.f32 %v2391_v51, %v2390_v42  ;;  %v2492_v59 = vadd.f32 %v2491_v44, %v2490_v48  ;;  %v8202_v40 = vpop.f32.mrb[19].mxu0  ;;  %v2449_v4 = vmul.f32 %v8200_v52, %v8200_v52  ;;  %v2497_v0 = vsel %vm501_vm1, %v2448_v36, 0.0 }
 0x369   : > { %v2493_v57 = vsel %vm501_vm1, %v2446_v8, 0.0  ;;  %v2393_v50 = vsel %vm501_vm1, %v8202_v40, 0.0  ;;  %v2447_v10 = vmul.f32 %v8202_v40, %v8202_v40  ;;  %v2397_v6 = vsel %vm501_vm1, %v8200_v52, 0.0 }
 0x36a   : > { %v2494_v9 = vadd.f32 %v2493_v57, %v2492_v59  ;;  %v2394_v11 = vadd.f32 %v2393_v50, %v2392_v54  ;;  %v2499_v1 = vsel %vm501_vm1, %v2449_v4, 0.0 }
 0x36b   : > { %v2495_v14 = vsel %vm501_vm1, %v2447_v10, 0.0 }
 0x36c   : > { %v2396_v34 = vadd.f32 %v2395_v31, %v2394_v11  ;;  %v2496_v56 = vadd.f32 %v2495_v14, %v2494_v9 }
 0x36d   : > { %v8219_v7 = vpop.f32.mrb[20].mxu0 }
 0x36e   : > { %v2498_v20 = vadd.f32 %v2497_v0, %v2496_v56  ;;  %v8221_v24 = vpop.f32.mrb[21].mxu0  ;;  %v2398_v26 = vadd.f32 %v2397_v6, %v2396_v34  ;;  %v2452_v32 = vmul.f32 %v8219_v7, %v8219_v7  ;;  %v2403_v12 = vsel %vm501_vm1, %v8219_v7, 0.0 }
 0x36f   : > { %v2399_v3 = vsel %vm501_vm1, %v8221_v24, 0.0  ;;  %v2450_v60 = vmul.f32 %v8221_v24, %v8221_v24  ;;  %v8228_v16 = vpop.f32.mrb[22].mxu0 }
 0x370   : > { %v2400_v25 = vadd.f32 %v2399_v3, %v2398_v26  ;;  %v2500_v45 = vadd.f32 %v2499_v1, %v2498_v20  ;;  %v8230_v29 = vpop.f32.mrb[23].mxu0  ;;  %v2453_v41 = vmul.f32 %v8228_v16, %v8228_v16  ;;  %v2505_v42 = vsel %vm501_vm1, %v2452_v32, 0.0 }
 0x371   : > { %v2501_v27 = vsel %vm501_vm1, %v2450_v60, 0.0  ;;  %v2401_v5 = vsel %vm501_vm1, %v8230_v29, 0.0  ;;  %v2451_v33 = vmul.f32 %v8230_v29, %v8230_v29  ;;  %v2405_v44 = vsel %vm501_vm1, %v8228_v16, 0.0 }
 0x372   : > { %v2502_v17 = vadd.f32 %v2501_v27, %v2500_v45  ;;  %v2402_v13 = vadd.f32 %v2401_v5, %v2400_v25  ;;  %v2507_v36 = vsel %vm501_vm1, %v2453_v41, 0.0 }
 0x373   : > { %v2503_v19 = vsel %vm501_vm1, %v2451_v33, 0.0 }
 0x374   : > { %v2404_v49 = vadd.f32 %v2403_v12, %v2402_v13  ;;  %v2504_v48 = vadd.f32 %v2503_v19, %v2502_v17 }
 0x375   : > { %v8247_v51 = vpop.f32.mrb[24].mxu0 }
 0x376   : > { %v2506_v8 = vadd.f32 %v2505_v42, %v2504_v48  ;;  %v8249_v54 = vpop.f32.mrb[25].mxu0  ;;  %v2406_v59 = vadd.f32 %v2405_v44, %v2404_v49  ;;  %v2456_v4 = vmul.f32 %v8247_v51, %v8247_v51  ;;  %v2411_v20 = vsel %vm501_vm1, %v8247_v51, 0.0 }
 0x377   : > { %v2407_v57 = vsel %vm501_vm1, %v8249_v54, 0.0  ;;  %v2454_v50 = vmul.f32 %v8249_v54, %v8249_v54  ;;  %v8256_v10 = vpop.f32.mrb[26].mxu0 }
 0x378   : > { %v2408_v9 = vadd.f32 %v2407_v57, %v2406_v59  ;;  %v2508_v11 = vadd.f32 %v2507_v36, %v2506_v8  ;;  %v8258_v31 = vpop.f32.mrb[27].mxu0  ;;  %v2457_v26 = vmul.f32 %v8256_v10, %v8256_v10  ;;  %v2513_v25 = vsel %vm501_vm1, %v2456_v4, 0.0 }
 0x379   : > { %v2509_v14 = vsel %vm501_vm1, %v2454_v50, 0.0  ;;  %v2409_v34 = vsel %vm501_vm1, %v8258_v31, 0.0  ;;  %v2455_v56 = vmul.f32 %v8258_v31, %v8258_v31  ;;  %v2413_v45 = vsel %vm501_vm1, %v8256_v10, 0.0 }
 0x37a   : > { %v2510_v0 = vadd.f32 %v2509_v14, %v2508_v11  ;;  %v2410_v6 = vadd.f32 %v2409_v34, %v2408_v9  ;;  %v2515_v17 = vsel %vm501_vm1, %v2457_v26, 0.0 }
 0x37b   : > { %v2511_v1 = vsel %vm501_vm1, %v2455_v56, 0.0 }
 0x37c   : > { %v2412_v3 = vadd.f32 %v2411_v20, %v2410_v6  ;;  %v2512_v60 = vadd.f32 %v2511_v1, %v2510_v0 }
 0x37d   : > { %v8275_v32 = vpop.f32.mrb[28].mxu0 }
 0x37e   : > { %v2514_v27 = vadd.f32 %v2513_v25, %v2512_v60  ;;  %v8277_v5 = vpop.f32.mrb[29].mxu0  ;;  %v2414_v33 = vadd.f32 %v2413_v45, %v2412_v3  ;;  %v2460_v42 = vmul.f32 %v8275_v32, %v8275_v32  ;;  %v2419_v50 = vsel %vm501_vm1, %v8275_v32, 0.0 }
 0x37f   : > { %v2415_v13 = vsel %vm501_vm1, %v8277_v5, 0.0  ;;  %v2458_v12 = vmul.f32 %v8277_v5, %v8277_v5  ;;  %v8284_v41 = vpop.f32.mrb[30].mxu0 }
 0x380   : > { %v2416_v19 = vadd.f32 %v2415_v13, %v2414_v33  ;;  %v2516_v49 = vadd.f32 %v2515_v17, %v2514_v27  ;;  %v8286_v48 = vpop.f32.mrb[31].mxu0  ;;  %v2461_v9 = vmul.f32 %v8284_v41, %v8284_v41  ;;  %v2521_v34 = vsel %vm501_vm1, %v2460_v42, 0.0 }
 0x381   : > { %v2517_v44 = vsel %vm501_vm1, %v2458_v12, 0.0  ;;  %v2417_v8 = vsel %vm501_vm1, %v8286_v48, 0.0  ;;  %v2459_v59 = vmul.f32 %v8286_v48, %v8286_v48  ;;  %v2421_v56 = vsel %vm501_vm1, %v8284_v41, 0.0 }
 0x382   : > { %v2518_v36 = vadd.f32 %v2517_v44, %v2516_v49  ;;  %v2418_v57 = vadd.f32 %v2417_v8, %v2416_v19  ;;  %v2523_v20 = vsel %vm501_vm1, %v2461_v9, 0.0 }
 0x383   : > { %v2519_v11 = vsel %vm501_vm1, %v2459_v59, 0.0 }
 0x384   : > { %v2420_v4 = vadd.f32 %v2419_v50, %v2418_v57  ;;  %v2520_v14 = vadd.f32 %v2519_v11, %v2518_v36 }
 0x386   : > { %v2422_v0 = vadd.f32 %v2421_v56, %v2420_v4  ;;  %v2522_v6 = vadd.f32 %v2521_v34, %v2520_v14 }
 0x388   : > { %v2423_v26 = vrot.slane %v2422_v0, 4  ;;  %v2524_v1 = vadd.f32 %v2523_v20, %v2522_v6 }
 0x38a   : > { %v2424_v3 = vadd.f32 %v2423_v26, %v2422_v0  ;;  %v2525_v60 = vrot.slane %v2524_v1, 4 }
 0x38c   : > { %v2425_v25 = vrot.slane %v2424_v3, 2  ;;  %v2526_v45 = vadd.f32 %v2525_v60, %v2524_v1 }
 0x38e   : > { %v2426_v27 = vadd.f32 %v2425_v25, %v2424_v3  ;;  %v2527_v33 = vrot.slane %v2526_v45, 2 }
 0x390   : > { %v2427_v17 = vrot.slane %v2426_v27, 1  ;;  %v2528_v13 = vadd.f32 %v2527_v33, %v2526_v45 }
 0x392   : > { %v2428_v12 = vadd.f32 %v2427_v17, %v2426_v27  ;;  %v2529_v19 = vrot.slane %v2528_v13, 1 }
 0x394   : > { %v8304_v49 = vmul.f32 0.00390625, %v2428_v12  ;;  %v2530_v42 = vadd.f32 %v2529_v19, %v2528_v13 }
 0x396   : > { %v2531_v44 = vmul.f32 0.00390625, %v2530_v42  ;;  %v2532_v8 = vmul.f32 %v8304_v49, %v8304_v49  ;;  %v2562_v59 = vsub.f32 %v8277_v5, %v8304_v49  ;;  %v2563_v36 = vsub.f32 %v8286_v48, %v8304_v49 }
 0x397   : > { %v2534_v57 = vsub.f32 %v8082_v22, %v8304_v49  ;;  %v2535_v50 = vsub.f32 %v8088_v38, %v8304_v49  ;;  %v2536_v9 = vsub.f32 %v8080_v21, %v8304_v49  ;;  %v2537_v11 = vsub.f32 %v8086_v35, %v8304_v49 }
 0x398   : > { %v2533_v4 = vsub.f32 %v2531_v44, %v2532_v8  ;;  %v2538_v14 = vsub.f32 %v8109_v53, %v8304_v49  ;;  %v2539_v5 = vsub.f32 %v8118_v62, %v8304_v49  ;;  %v2540_v48 = vsub.f32 %v8107_v61, %v8304_v49 }
 0x399   : > { %v2541_v22 = vsub.f32 %v8116_v55, %v8304_v49  ;;  %v2542_v38 = vsub.f32 %v8137_v47, %v8304_v49  ;;  %v2543_v21 = vsub.f32 %v8146_v28, %v8304_v49  ;;  %v2544_v35 = vsub.f32 %v8135_v30, %v8304_v49 }
 0x39a   : > { %v2566_v34 = vadd.f32 1e-05, %v2533_v4  ;;  %v2545_v53 = vsub.f32 %v8144_v63, %v8304_v49  ;;  %v2546_v62 = vsub.f32 %v8165_v23, %v8304_v49  ;;  %v2547_v61 = vsub.f32 %v8174_v39, %v8304_v49 }
 0x39b   : > { %v2548_v55 = vsub.f32 %v8163_v18, %v8304_v49  ;;  %v2549_v47 = vsub.f32 %v8172_v58, %v8304_v49  ;;  %v2550_v28 = vsub.f32 %v8193_v43, %v8304_v49  ;;  %v2551_v30 = vsub.f32 %v8202_v40, %v8304_v49 }
 0x39c   : > { %6972 = vrsqrt.f32 %v2566_v34  ;;  %v2552_v63 = vsub.f32 %v8191_v37, %v8304_v49  ;;  %v2553_v23 = vsub.f32 %v8200_v52, %v8304_v49  ;;  %v2554_v39 = vsub.f32 %v8221_v24, %v8304_v49 }
 0x39d   : > { %v2555_v18 = vsub.f32 %v8230_v29, %v8304_v49  ;;  %v2556_v58 = vsub.f32 %v8219_v7, %v8304_v49  ;;  %v2557_v43 = vsub.f32 %v8228_v16, %v8304_v49  ;;  %v2558_v40 = vsub.f32 %v8249_v54, %v8304_v49 }
 0x39e   : > { %v2559_v37 = vsub.f32 %v8258_v31, %v8304_v49  ;;  %v2560_v52 = vsub.f32 %v8247_v51, %v8304_v49  ;;  %v2561_v24 = vsub.f32 %v8256_v10, %v8304_v49  ;;  %v2564_v29 = vsub.f32 %v8275_v32, %v8304_v49 }
 0x39f   : > { %v2565_v7 = vsub.f32 %v8284_v41, %v8304_v49  ;;  %v8374_v16 = vsel %vm532_vm0, %v8076_v15, 0 }
 0x3a6   : > { %v6973_v56 = vpop.eup %6972 }
 0x3a7   : > { %v2596_v54 = vmul.f32 %v6973_v56, %v2562_v59  ;;  %v2597_v0 = vmul.f32 %v6973_v56, %v2563_v36  ;;  %v8376_v31 = vmul.f32 %v6973_v56, %v2534_v57  ;;  %v8378_v6 = vmul.f32 %v6973_v56, %v2535_v50 }
 0x3a8   : > { %v2570_v51 = vmul.f32 %v6973_v56, %v2536_v9  ;;  %v2571_v20 = vmul.f32 %v6973_v56, %v2537_v11  ;;  %v2572_v10 = vmul.f32 %v6973_v56, %v2538_v14  ;;  %v2573_v26 = vmul.f32 %v6973_v56, %v2539_v5 }
 0x3a9   : > { %v2628_v1 = vmax.f32 %v2596_v54, 0.0  ;;  %v2629_v32 = vmax.f32 %v2597_v0, 0.0  ;;  %v2574_v3 = vmul.f32 %v6973_v56, %v2540_v48  ;;  %v2575_v60 = vmul.f32 %v6973_v56, %v2541_v22 }
 0x3aa   : > { %v2576_v41 = vmul.f32 %v6973_v56, %v2542_v38  ;;  %v2577_v25 = vmul.f32 %v6973_v56, %v2543_v21  ;;  %v2578_v45 = vmul.f32 %v6973_v56, %v2544_v35  ;;  %v2579_v27 = vmul.f32 %v6973_v56, %v2545_v53 }
 0x3ab   : > { %v8380_v15 = vpack.c.bf16 %v2629_v32, %v2628_v1  ;;  %v2580_v33 = vmul.f32 %v6973_v56, %v2546_v62  ;;  %v2581_v17 = vmul.f32 %v6973_v56, %v2547_v61  ;;  %v2582_v13 = vmul.f32 %v6973_v56, %v2548_v55 }
 0x3ac   : > { %v2583_v12 = vmul.f32 %v6973_v56, %v2549_v47  ;;  %v2584_v19 = vmul.f32 %v6973_v56, %v2550_v28  ;;  %v2585_v49 = vmul.f32 %v6973_v56, %v2551_v30  ;;  %v2586_v42 = vmul.f32 %v6973_v56, %v2552_v63 }
 0x3ad   : > { %v2587_v44 = vmul.f32 %v6973_v56, %v2553_v23  ;;  %v2588_v8 = vmul.f32 %v6973_v56, %v2554_v39  ;;  %v2589_v59 = vmul.f32 %v6973_v56, %v2555_v18  ;;  %v2590_v36 = vmul.f32 %v6973_v56, %v2556_v58 }
 0x3ae   : > { %v2591_v57 = vmul.f32 %v6973_v56, %v2557_v43  ;;  %v2592_v50 = vmul.f32 %v6973_v56, %v2558_v40  ;;  %v2593_v9 = vmul.f32 %v6973_v56, %v2559_v37  ;;  %v2594_v11 = vmul.f32 %v6973_v56, %v2560_v52 }
 0x3af   : > { %v2595_v4 = vmul.f32 %v6973_v56, %v2561_v24  ;;  %v2598_v14 = vmul.f32 %v6973_v56, %v2564_v29  ;;  %v2599_v5 = vmul.f32 %v6973_v56, %v2565_v7  ;;  %v2600_v48 = vmax.f32 %v8376_v31, 0.0 }
 0x3b0   : > { %v2601_v22 = vmax.f32 %v8378_v6, 0.0  ;;  %v2602_v38 = vmax.f32 %v2570_v51, 0.0  ;;  %v2603_v21 = vmax.f32 %v2571_v20, 0.0  ;;  %v2604_v35 = vmax.f32 %v2572_v10, 0.0 }
 0x3b1   : > { %v2605_v34 = vmax.f32 %v2573_v26, 0.0  ;;  %v2606_v53 = vmax.f32 %v2574_v3, 0.0  ;;  %v2607_v62 = vmax.f32 %v2575_v60, 0.0  ;;  %v2608_v61 = vmax.f32 %v2576_v41, 0.0 }
 0x3b2   : > { %v2609_v55 = vmax.f32 %v2577_v25, 0.0  ;;  %v2610_v47 = vmax.f32 %v2578_v45, 0.0  ;;  %v2611_v28 = vmax.f32 %v2579_v27, 0.0  ;;  %v2612_v30 = vmax.f32 %v2580_v33, 0.0 }
 0x3b3   : > { %v2613_v63 = vmax.f32 %v2581_v17, 0.0  ;;  %v2614_v23 = vmax.f32 %v2582_v13, 0.0  ;;  %v2615_v39 = vmax.f32 %v2583_v12, 0.0  ;;  %v2616_v18 = vmax.f32 %v2584_v19, 0.0  ;;  %v8416_v12 = vld [vmem:[#allocation7 + $0x4] sm:$0x3] }
 0x3b4   : > { %v2617_v58 = vmax.f32 %v2585_v49, 0.0  ;;  %v2618_v43 = vmax.f32 %v2586_v42, 0.0  ;;  %v2619_v40 = vmax.f32 %v2587_v44, 0.0  ;;  %v2620_v37 = vmax.f32 %v2588_v8, 0.0 }
 0x3b5   : > { %v2621_v52 = vmax.f32 %v2589_v59, 0.0  ;;  %v2622_v24 = vmax.f32 %v2590_v36, 0.0  ;;  %v2623_v29 = vmax.f32 %v2591_v57, 0.0  ;;  %v2624_v7 = vmax.f32 %v2592_v50, 0.0 }
 0x3b6   : > { %v2625_v56 = vmax.f32 %v2593_v9, 0.0  ;;  %v2626_v54 = vmax.f32 %v2594_v11, 0.0  ;;  %v2627_v0 = vmax.f32 %v2595_v4, 0.0  ;;  %v2630_v31 = vmax.f32 %v2598_v14, 0.0 }
 0x3b7   : > { %v2631_v6 = vmax.f32 %v2599_v5, 0.0  ;;  %v8384_v51 = vpack.c.bf16 %v2603_v21, %v2602_v38  ;;  %v8386_v20 = vpack.c.bf16 %v2605_v34, %v2604_v35  ;;  %v8388_v10 = vpack.c.bf16 %v2607_v62, %v2606_v53 }
 0x3b8   : > { %v8390_v26 = vpack.c.bf16 %v2609_v55, %v2608_v61  ;;  %v8392_v1 = vpack.c.bf16 %v2611_v28, %v2610_v47  ;;  %v8394_v32 = vpack.c.bf16 %v2613_v63, %v2612_v30  ;;  %v8396_v3 = vpack.c.bf16 %v2615_v39, %v2614_v23 }
 0x3b9   : > { %9582 = vst [vmem:[#allocation12_spill] sm:$0xff] %v8384_v51  ;;  %9583 = vst [vmem:[#allocation13_spill] sm:$0xff] %v8386_v20  ;;  %v8398_v60 = vpack.c.bf16 %v2617_v58, %v2616_v18  ;;  %v8400_v41 = vpack.c.bf16 %v2619_v40, %v2618_v43  ;;  %v8402_v25 = vpack.c.bf16 %v2621_v52, %v2620_v37  ;;  %6065 = vmatprep.mubr.msk.bf16.mxu1 %vm501_vm1, %v8384_v51 }
 0x3ba   : > { %9584 = vst [vmem:[#allocation14_spill] sm:$0xff] %v8388_v10  ;;  %9585 = vst [vmem:[#allocation15_spill] sm:$0xff] %v8390_v26  ;;  %v8404_v45 = vpack.c.bf16 %v2623_v29, %v2622_v24  ;;  %v8408_v27 = vpack.c.bf16 %v2625_v56, %v2624_v7  ;;  %v8410_v33 = vpack.c.bf16 %v2627_v0, %v2626_v54  ;;  %v8430_v19 = vshrl.u32 %v8384_v51, 16 }
 0x3bb   : > { %9586 = vst [vmem:[#allocation16_spill] sm:$0xff] %v8392_v1  ;;  %9587 = vst [vmem:[#allocation17_spill] sm:$0xff] %v8394_v32  ;;  %v8412_v17 = vpack.c.bf16 %v2631_v6, %v2630_v31  ;;  %v8414_v13 = vpack.c.bf16 %v2601_v22, %v2600_v48  ;;  %v8433_v49 = vshll.u32 %v8384_v51, 16  ;;  %v8442_v44 = vshrl.u32 %v8386_v20, 16 }
 0x3bc   : > { %9588 = vst [vmem:[#allocation18_spill] sm:$0xff] %v8396_v3  ;;  %v8445_v8 = vshll.u32 %v8386_v20, 16  ;;  %v8448_v59 = vshrl.u32 %v8388_v10, 16  ;;  %v8451_v36 = vshll.u32 %v8388_v10, 16  ;;  %v8454_v57 = vshrl.u32 %v8390_v26, 16 }
 0x3bd   : > { %9589 = vst [vmem:[#allocation19_spill] sm:$0xff] %v8412_v17  ;;  %6066 = vmatmul.mubr.msk.bf16.vlgmr.msra.gmra.mrb[0].mxu1 %vm501_vm1, %v8414_v13  ;;  %v8436_v42 = vshll.u32 %v8414_v13, 16  ;;  %v8457_v50 = vshll.u32 %v8390_v26, 16  ;;  %v8460_v9 = vshrl.u32 %v8392_v1, 16  ;;  %v8463_v11 = vshll.u32 %v8392_v1, 16 }
 0x3be   : > { %6069 = vmatprep.mubr.msk.bf16.mxu1 %vm501_vm1, %v8384_v51  ;;  %6098 = vmatpush3.bf16.msra.mxu1 %v8374_v16  ;;  %v8439_v16 = vshrl.u32 %v8414_v13, 16  ;;  %v8466_v4 = vshrl.u32 %v8394_v32, 16  ;;  %v8469_v14 = vshll.u32 %v8394_v32, 16  ;;  %v8472_v5 = vshrl.u32 %v8396_v3, 16 }
 0x3bf   : > { %6892 = vmatprep.subr.msk.bf16.mxu1 %vm532_vm0, %v8416_v12  ;;  %v8475_v48 = vshll.u32 %v8396_v3, 16  ;;  %v8478_v22 = vshrl.u32 %v8398_v60, 16  ;;  %v8481_v38 = vshll.u32 %v8398_v60, 16  ;;  %v8484_v21 = vshrl.u32 %v8400_v41, 16 }
 0x3c0   : > { %v8487_v35 = vshll.u32 %v8400_v41, 16  ;;  %v8490_v34 = vshrl.u32 %v8402_v25, 16  ;;  %v8493_v53 = vshll.u32 %v8402_v25, 16  ;;  %v8498_v62 = vshrl.u32 %v8404_v45, 16 }
 0x3c1   : > { %v8501_v61 = vshll.u32 %v8404_v45, 16  ;;  %v2798_v55 = vrot.slane %v8433_v49, 1  ;;  %v2800_v47 = vrot.slane %v8436_v42, 1  ;;  %v8508_v28 = vshrl.u32 %v8408_v27, 16  ;;  %v9594_v2 = vld [vmem:[#allocation15_spill] sm:$0xff] }
 0x3c2   : > { %v8511_v30 = vshll.u32 %v8408_v27, 16  ;;  %v8514_v63 = vshrl.u32 %v8410_v33, 16  ;;  %v2802_v23 = vrot.slane %v8445_v8, 1  ;;  %v8518_v39 = vshll.u32 %v8410_v33, 16 }
 0x3c3   : > { %v2799_v18 = vor.u32 %v2798_v55, %v8430_v19  ;;  %v2801_v58 = vor.u32 %v2800_v47, %v8439_v16  ;;  %v2804_v43 = vrot.slane %v8451_v36, 1  ;;  %v8524_v40 = vshrl.u32 %v8380_v15, 16 }
 0x3c4   : > { %v2803_v37 = vor.u32 %v2802_v23, %v8442_v44  ;;  %v2806_v52 = vrot.slane %v8457_v50, 1  ;;  %v2808_v24 = vrot.slane %v8463_v11, 1  ;;  %v8530_v29 = vshll.u32 %v8380_v15, 16 }
 0x3c5   : > { %6070 = vmatmul.mubr.msk.bf16.gmra.mrb[4].mxu1 %vm501_vm1, %v8386_v20  ;;  %v8535_v7 = vsel %vm7482_vm4, %v2799_v18, %v8433_v49  ;;  %v8540_v56 = vsel %vm7482_vm4, %v2801_v58, %v8436_v42  ;;  %v2805_v54 = vor.u32 %v2804_v43, %v8448_v59  ;;  %v2810_v55 = vrot.slane %v8469_v14, 1 }
 0x3c6   : > { %6073 = vmatprep.mubr.msk.bf16.mxu1 %vm501_vm1, %v8388_v10  ;;  %v8546_v0 = vsel %vm7482_vm4, %v2803_v37, %v8445_v8  ;;  %v2807_v31 = vor.u32 %v2806_v52, %v8454_v57  ;;  %v2809_v6 = vor.u32 %v2808_v24, %v8460_v9  ;;  %v2812_v23 = vrot.slane %v8475_v48, 1 }
 0x3c7   : > { %v8554_v47 = vsel %vm7482_vm4, %v2805_v54, %v8451_v36  ;;  %v2814_v18 = vrot.slane %v8481_v38, 1  ;;  %v2816_v58 = vrot.slane %v8487_v35, 1  ;;  %v2811_v52 = vor.u32 %v2810_v55, %v8466_v4 }
 0x3c8   : > { %v8562_v43 = vsel %vm7482_vm4, %v2807_v31, %v8457_v50  ;;  %v8567_v37 = vsel %vm7482_vm4, %v2809_v6, %v8463_v11  ;;  %v2818_v24 = vrot.slane %v8493_v53, 1  ;;  %v2813_v54 = vor.u32 %v2812_v23, %v8472_v5 }
 0x3c9   : > { %v2820_v31 = vrot.slane %v8501_v61, 1  ;;  %v8582_v6 = vsel %vm7482_vm4, %v2811_v52, %v8469_v14  ;;  %v2824_v23 = vrot.slane %v8518_v39, 1  ;;  %v2826_v20 = vrot.slane %v8530_v29, 1 }
 0x3ca   : > { %v2819_v55 = vor.u32 %v2818_v24, %v8490_v34  ;;  %v2712_v46 = vrot.slane %v8439_v16, 7 }
 0x3cb   : > { %v2821_v24 = vor.u32 %v2820_v31, %v8498_v62  ;;  %v2825_v10 = vor.u32 %v2824_v23, %v8514_v63  ;;  %v8631_v23 = vshrl.u32 %v8412_v17, 16 }
 0x3cd   : > { %6074 = vmatmul.mubr.msk.bf16.gmra.mrb[8].mxu1 %vm501_vm1, %v8390_v26  ;;  %v2817_v26 = vor.u32 %v2816_v58, %v8484_v21 }
 0x3ce   : > { %6077 = vmatprep.mubr.msk.bf16.mxu1 %vm501_vm1, %v8392_v1  ;;  %v2815_v1 = vor.u32 %v2814_v18, %v8478_v22  ;;  %v8590_v18 = vsel %vm7482_vm4, %v2813_v54, %v8475_v48 }
 0x3cf   : > { %v8600_v52 = vsel %vm7482_vm4, %v2817_v26, %v8487_v35  ;;  %v8617_v26 = vshll.u32 %v8412_v17, 16  ;;  %v3538_v17 = vld [vmem:[#allocation7 + $0x6] sm:$0x3] }
 0x3d0   : > { %v8595_v58 = vsel %vm7482_vm4, %v2815_v1, %v8481_v38  ;;  %v8614_v1 = vsel %vm7482_vm4, %v2821_v24, %v8501_v61 }
 0x3d1   : > { %v3532_v24 = vrot.slane %v8617_v26, 1 }
 0x3d5   : > { %6078 = vmatmul.mubr.msk.bf16.gmra.mrb[12].mxu1 %vm501_vm1, %v8394_v32  ;;  %v2822_v32 = vrot.slane %v8511_v30, 1 }
 0x3d6   : > { %6081 = vmatprep.mubr.msk.bf16.mxu1 %vm501_vm1, %v8396_v3  ;;  %v8606_v3 = vsel %vm7482_vm4, %v2819_v55, %v8493_v53  ;;  %v2827_v55 = vor.u32 %v2826_v20, %v8524_v40 }
 0x3d7   : > { %v2823_v54 = vor.u32 %v2822_v32, %v8508_v28  ;;  %v8627_v32 = vsel %vm7482_vm4, %v2825_v10, %v8518_v39  ;;  %v2708_v10 = vrot.slane %v8430_v19, 7 }
 0x3d8   : > { %v8637_v51 = vsel %vm7482_vm4, %v2827_v55, %v8530_v29 }
 0x3d9   : > { %v8622_v31 = vsel %vm7482_vm4, %v2823_v54, %v8511_v30  ;;  %v3533_v54 = vor.u32 %v3532_v24, %v8631_v23  ;;  %v2711_v55 = vor.u32 %v8433_v49, %v2708_v10  ;;  %v2716_v10 = vrot.slane %v8442_v44, 7 }
 0x3db   : > { %v8647_v20 = vsel %vm7482_vm4, %v3533_v54, %v8617_v26  ;;  %v8665_v24 = vsel %vm7674_vm7, %v8430_v19, %v2711_v55  ;;  %v2715_v54 = vor.u32 %v8436_v42, %v2712_v46  ;;  %v2720_v19 = vrot.slane %v8448_v59, 7 }
 0x3dc   : > { %9590 = vst [vmem:[#allocation20_spill] sm:$0xff] %v8647_v20  ;;  %v3327_v20 = vsel %vm532_vm0, %v8416_v12, 0  ;;  %v2719_v12 = vor.u32 %v8445_v8, %v2716_v10  ;;  %v2724_v55 = vrot.slane %v8454_v57, 7  ;;  %v2728_v46 = vrot.slane %v8460_v9, 7 }
 0x3dd   : > { %6082 = vmatmul.mubr.msk.bf16.gmra.mrb[16].mxu1 %vm501_vm1, %v8398_v60  ;;  %v8675_v49 = vsel %vm7674_vm7, %v8439_v16, %v2715_v54  ;;  %v2723_v42 = vor.u32 %v8451_v36, %v2720_v19  ;;  %v2732_v54 = vrot.slane %v8466_v4, 7  ;;  %v2736_v10 = vrot.slane %v8472_v5, 7 }
 0x3de   : > { %6085 = vmatprep.mubr.msk.bf16.mxu1 %vm501_vm1, %v8400_v41  ;;  %v8689_v16 = vsel %vm7674_vm7, %v8442_v44, %v2719_v12  ;;  %v2727_v8 = vor.u32 %v8457_v50, %v2724_v55  ;;  %v2731_v44 = vor.u32 %v8463_v11, %v2728_v46  ;;  %v2740_v19 = vrot.slane %v8478_v22, 7 }
 0x3df   : > { %v2735_v50 = vor.u32 %v8469_v14, %v2732_v54  ;;  %v2744_v12 = vrot.slane %v8484_v21, 7  ;;  %v2752_v55 = vrot.slane %v8498_v62, 7  ;;  %v2756_v46 = vrot.slane %v8508_v28, 7 }
 0x3e0   : > { %v8707_v36 = vsel %vm7674_vm7, %v8454_v57, %v2727_v8  ;;  %v2739_v57 = vor.u32 %v8475_v48, %v2736_v10  ;;  %v2743_v14 = vor.u32 %v8481_v38, %v2740_v19  ;;  %v2760_v8 = vrot.slane %v8514_v63, 7  ;;  %v9592_v19 = vld [vmem:[#allocation13_spill] sm:$0xff] }
 0x3e1   : > { %v8725_v11 = vsel %vm7674_vm7, %v8466_v4, %v2735_v50  ;;  %v2747_v4 = vor.u32 %v8487_v35, %v2744_v12  ;;  %v4140_v50 = vld [vmem:[#allocation7 + $0xc] sm:$0x3]  ;;  %v9597_v12 = vld [vmem:[#allocation18_spill] sm:$0xff] }
 0x3e2   : > { %v8743_v48 = vsel %vm7674_vm7, %v8478_v22, %v2743_v14  ;;  %v2755_v22 = vor.u32 %v8501_v61, %v2752_v55  ;;  %v9598_v14 = vld [vmem:[#allocation19_spill] sm:$0xff] }
 0x3e5   : > { %6086 = vmatmul.mubr.msk.bf16.gmra.mrb[20].mxu1 %vm501_vm1, %v8402_v25 }
 0x3e6   : > { %6089 = vmatprep.mubr.msk.bf16.mxu1 %vm501_vm1, %v8404_v45 }
 0x3ed   : > { %6090 = vmatmul.mubr.msk.bf16.gmra.mrb[24].mxu1 %vm501_vm1, %v8408_v27 }
 0x3ee   : > { %6093 = vmatprep.mubr.msk.bf16.mxu1 %vm501_vm1, %v8410_v33 }
 0x3f5   : > { %6094 = vmatmul.mubr.msk.bf16.gmra.mrb[28].mxu1 %vm501_vm1, %v8380_v15 }
 0x3f6   : > { %6099 = vmatprep.mubr.msk.bf16.mxu1 %vm501_vm1, %v8665_v24 }
 0x3fd   : > { %6100 = vmatmul.mubr.msk.bf16.vlgmr.msra.gmra.mrb[0].mxu1 %vm501_vm1, %v8675_v49 }
 0x3fe   : > { %6103 = vmatprep.mubr.msk.bf16.mxu1 %vm501_vm1, %v8665_v24  ;;  %6132 = vmatpush3.bf16.msra.mxu1 %v3327_v20  ;;  %v8697_v20 = vsel %vm7674_vm7, %v8448_v59, %v2723_v42  ;;  %v8715_v59 = vsel %vm7674_vm7, %v8460_v9, %v2731_v44  ;;  %v8733_v9 = vsel %vm7674_vm7, %v8472_v5, %v2739_v57  ;;  %v2748_v42 = vrot.slane %v8490_v34, 7  ;;  %v9591_v57 = vld [vmem:[#allocation12_spill] sm:$0xff] }
 0x3ff   : > { %6893 = vmatprep.subr.msk.bf16.mxu1 %vm532_vm0, %v3538_v17  ;;  %v8751_v5 = vsel %vm7674_vm7, %v8484_v21, %v2747_v4  ;;  %v8769_v21 = vsel %vm7674_vm7, %v8498_v62, %v2755_v22  ;;  %v2764_v44 = vrot.slane %v8524_v40, 7  ;;  %v4142_v4 = vsel %vm532_vm0, %v4140_v50, 0 }
 0x400   : > { %v2751_v38 = vor.u32 %v8493_v53, %v2748_v42  ;;  %v2759_v53 = vor.u32 %v8511_v30, %v2756_v46  ;;  %v4338_v42 = vld [vmem:[#allocation7 + $0xe] sm:$0x3] }
 0x401   : > { %v2767_v30 = vor.u32 %v8530_v29, %v2764_v44  ;;  %v3526_v29 = vrot.slane %v8631_v23, 7  ;;  %v4340_v55 = vsel %vm532_vm0, %v4338_v42, 0 }
 0x402   : > { %v8761_v35 = vsel %vm7674_vm7, %v8490_v34, %v2751_v38  ;;  %v2763_v34 = vor.u32 %v8518_v39, %v2760_v8  ;;  %v8779_v61 = vsel %vm7674_vm7, %v8508_v28, %v2759_v53  ;;  %v3543_v39 = vsel %vm532_vm0, %v3538_v17, 0  ;;  %v4536_v38 = vld [vmem:[#allocation7 + $0x10] sm:$0x3] }
 0x403   : > { %v8795_v28 = vsel %vm7674_vm7, %v8524_v40, %v2767_v30  ;;  %v3939_v40 = vld [vmem:[#allocation7 + $0xa] sm:$0x3] }
 0x404   : > { %v8787_v62 = vsel %vm7674_vm7, %v8514_v63, %v2763_v34  ;;  %v3739_v63 = vld [vmem:[#allocation7 + $0x8] sm:$0x3]  ;;  %v3944_v10 = vsel %vm532_vm0, %v3939_v40, 0 }
 0x405   : > { %6104 = vmatmul.mubr.msk.bf16.gmra.mrb[4].mxu1 %vm501_vm1, %v8689_v16  ;;  %v3743_v17 = vsel %vm532_vm0, %v3739_v63, 0 }
 0x406   : > { %6107 = vmatprep.mubr.msk.bf16.mxu1 %vm501_vm1, %v8697_v20 }
 0x40d   : > { %6108 = vmatmul.mubr.msk.bf16.gmra.mrb[8].mxu1 %vm501_vm1, %v8707_v36 }
 0x40e   : > { %6111 = vmatprep.mubr.msk.bf16.mxu1 %vm501_vm1, %v8715_v59 }
 0x415   : > { %6112 = vmatmul.mubr.msk.bf16.gmra.mrb[12].mxu1 %vm501_vm1, %v8725_v11 }
 0x416   : > { %6115 = vmatprep.mubr.msk.bf16.mxu1 %vm501_vm1, %v8733_v9 }
 0x41d   : > { %6116 = vmatmul.mubr.msk.bf16.gmra.mrb[16].mxu1 %vm501_vm1, %v8743_v48 }
 0x41e   : > { %6119 = vmatprep.mubr.msk.bf16.mxu1 %vm501_vm1, %v8751_v5 }
 0x425   : > { %6120 = vmatmul.mubr.msk.bf16.gmra.mrb[20].mxu1 %vm501_vm1, %v8761_v35 }
 0x426   : > { %6123 = vmatprep.mubr.msk.bf16.mxu1 %vm501_vm1, %v8769_v21 }
 0x42d   : > { %6124 = vmatmul.mubr.msk.bf16.gmra.mrb[24].mxu1 %vm501_vm1, %v8779_v61 }
 0x42e   : > { %6127 = vmatprep.mubr.msk.bf16.mxu1 %vm501_vm1, %v8787_v62 }
 0x435   : > { %6128 = vmatmul.mubr.msk.bf16.gmra.mrb[28].mxu1 %vm501_vm1, %v8795_v28 }
 0x436   : > { %6133 = vmatprep.mubr.msk.bf16.mxu1 %vm501_vm1, %v8535_v7 }
 0x43d   : > { %6134 = vmatmul.mubr.msk.bf16.vlgmr.msra.gmra.mrb[0].mxu1 %vm501_vm1, %v8540_v56 }
 0x43e   : > { %6137 = vmatprep.mubr.msk.bf16.mxu1 %vm501_vm1, %v8535_v7  ;;  %6166 = vmatpush3.bf16.msra.mxu1 %v3543_v39 }
 0x43f   : > { %6894 = vmatprep.subr.msk.bf16.mxu1 %vm532_vm0, %v3739_v63 }
 0x445   : > { %6138 = vmatmul.mubr.msk.bf16.gmra.mrb[4].mxu1 %vm501_vm1, %v8546_v0 }
 0x446   : > { %6141 = vmatprep.mubr.msk.bf16.mxu1 %vm501_vm1, %v8554_v47 }
 0x44d   : > { %6142 = vmatmul.mubr.msk.bf16.gmra.mrb[8].mxu1 %vm501_vm1, %v8562_v43 }
 0x44e   : > { %6145 = vmatprep.mubr.msk.bf16.mxu1 %vm501_vm1, %v8567_v37 }
 0x455   : > { %6146 = vmatmul.mubr.msk.bf16.gmra.mrb[12].mxu1 %vm501_vm1, %v8582_v6 }
 0x456   : > { %6149 = vmatprep.mubr.msk.bf16.mxu1 %vm501_vm1, %v8590_v18 }
 0x45d   : > { %6150 = vmatmul.mubr.msk.bf16.gmra.mrb[16].mxu1 %vm501_vm1, %v8595_v58 }
 0x45e   : > { %6153 = vmatprep.mubr.msk.bf16.mxu1 %vm501_vm1, %v8600_v52 }
 0x465   : > { %6154 = vmatmul.mubr.msk.bf16.gmra.mrb[20].mxu1 %vm501_vm1, %v8606_v3 }
 0x466   : > { %6157 = vmatprep.mubr.msk.bf16.mxu1 %vm501_vm1, %v8614_v1 }
 0x46d   : > { %6158 = vmatmul.mubr.msk.bf16.gmra.mrb[24].mxu1 %vm501_vm1, %v8622_v31 }
 0x46e   : > { %6161 = vmatprep.mubr.msk.bf16.mxu1 %vm501_vm1, %v8627_v32 }
 0x475   : > { %6162 = vmatmul.mubr.msk.bf16.gmra.mrb[28].mxu1 %vm501_vm1, %v8637_v51 }
 0x476   : > { %6167 = vmatprep.mubr.msk.bf16.mxu1 %vm501_vm1, %v8675_v49  ;;  %v3529_v49 = vor.u32 %v8617_v26, %v3526_v29  ;;  %v9593_v26 = vld [vmem:[#allocation14_spill] sm:$0xff] }
 0x478   : > { %v3531_v54 = vsel %vm7674_vm7, %v8631_v23, %v3529_v49  ;;  %v9595_v23 = vld [vmem:[#allocation16_spill] sm:$0xff] }
 0x47d   : > { %6168 = vmatmul.mubr.msk.bf16.vlgmr.msra.gmra.mrb[0].mxu1 %vm501_vm1, %v8665_v24 }
 0x47e   : > { %6171 = vmatprep.mubr.msk.bf16.mxu1 %vm501_vm1, %v8689_v16  ;;  %6200 = vmatpush3.bf16.msra.mxu1 %v3743_v17 }
 0x47f   : > { %6895 = vmatprep.subr.msk.bf16.mxu1 %vm532_vm0, %v3939_v40 }
 0x485   : > { %6172 = vmatmul.mubr.msk.bf16.gmra.mrb[4].mxu1 %vm501_vm1, %v8697_v20 }
 0x486   : > { %6175 = vmatprep.mubr.msk.bf16.mxu1 %vm501_vm1, %v8707_v36 }
 0x48d   : > { %6176 = vmatmul.mubr.msk.bf16.gmra.mrb[8].mxu1 %vm501_vm1, %v8715_v59 }
 0x48e   : > { %6179 = vmatprep.mubr.msk.bf16.mxu1 %vm501_vm1, %v8725_v11 }
 0x495   : > { %6180 = vmatmul.mubr.msk.bf16.gmra.mrb[12].mxu1 %vm501_vm1, %v8733_v9 }
 0x496   : > { %6183 = vmatprep.mubr.msk.bf16.mxu1 %vm501_vm1, %v8743_v48 }
 0x49d   : > { %6184 = vmatmul.mubr.msk.bf16.gmra.mrb[16].mxu1 %vm501_vm1, %v8751_v5 }
 0x49e   : > { %6187 = vmatprep.mubr.msk.bf16.mxu1 %vm501_vm1, %v8761_v35 }
 0x4a5   : > { %6188 = vmatmul.mubr.msk.bf16.gmra.mrb[20].mxu1 %vm501_vm1, %v8769_v21 }
 0x4a6   : > { %6191 = vmatprep.mubr.msk.bf16.mxu1 %vm501_vm1, %v8779_v61 }
 0x4ad   : > { %6192 = vmatmul.mubr.msk.bf16.gmra.mrb[24].mxu1 %vm501_vm1, %v8787_v62 }
 0x4ae   : > { %6195 = vmatprep.mubr.msk.bf16.mxu1 %vm501_vm1, %v8795_v28 }
 0x4b5   : > { %6196 = vmatmul.mubr.msk.bf16.gmra.mrb[28].mxu1 %vm501_vm1, %v3531_v54 }
 0x4b6   : > { %6201 = vmatprep.mubr.msk.bf16.mxu1 %vm501_vm1, %v8414_v13  ;;  %v9596_v13 = vld [vmem:[#allocation17_spill] sm:$0xff] }
 0x4bd   : > { %6202 = vmatmul.mubr.msk.bf16.vlgmr.msra.gmra.mrb[0].mxu1 %vm501_vm1, %v9591_v57 }
 0x4be   : > { %6205 = vmatprep.mubr.msk.bf16.mxu1 %vm501_vm1, %v9592_v19  ;;  %6234 = vmatpush3.bf16.msra.mxu1 %v3944_v10 }
 0x4bf   : > { %6896 = vmatprep.subr.msk.bf16.mxu1 %vm532_vm0, %v4140_v50 }
 0x4c5   : > { %6206 = vmatmul.mubr.msk.bf16.gmra.mrb[4].mxu1 %vm501_vm1, %v9593_v26 }
 0x4c6   : > { %6209 = vmatprep.mubr.msk.bf16.mxu1 %vm501_vm1, %v9594_v2 }
 0x4cd   : > { %6210 = vmatmul.mubr.msk.bf16.gmra.mrb[8].mxu1 %vm501_vm1, %v9595_v23 }
 0x4ce   : > { %6213 = vmatprep.mubr.msk.bf16.mxu1 %vm501_vm1, %v9596_v13 }
 0x4d5   : > { %6214 = vmatmul.mubr.msk.bf16.gmra.mrb[12].mxu1 %vm501_vm1, %v9597_v12 }
 0x4d6   : > { %6217 = vmatprep.mubr.msk.bf16.mxu1 %vm501_vm1, %v8398_v60 }
 0x4dd   : > { %6218 = vmatmul.mubr.msk.bf16.gmra.mrb[16].mxu1 %vm501_vm1, %v8400_v41 }
 0x4de   : > { %6221 = vmatprep.mubr.msk.bf16.mxu1 %vm501_vm1, %v8402_v25 }
 0x4e5   : > { %6222 = vmatmul.mubr.msk.bf16.gmra.mrb[20].mxu1 %vm501_vm1, %v8404_v45 }
 0x4e6   : > { %6225 = vmatprep.mubr.msk.bf16.mxu1 %vm501_vm1, %v8408_v27 }
 0x4ed   : > { %6226 = vmatmul.mubr.msk.bf16.gmra.mrb[24].mxu1 %vm501_vm1, %v8410_v33 }
 0x4ee   : > { %6229 = vmatprep.mubr.msk.bf16.mxu1 %vm501_vm1, %v8380_v15 }
 0x4f5   : > { %6230 = vmatmul.mubr.msk.bf16.gmra.mrb[28].mxu1 %vm501_vm1, %v9598_v14 }
 0x4f6   : > { %6235 = vmatprep.mubr.msk.bf16.mxu1 %vm501_vm1, %v8540_v56  ;;  %v9599_v56 = vld [vmem:[#allocation20_spill] sm:$0xff] }
 0x4fd   : > { %6236 = vmatmul.mubr.msk.bf16.vlgmr.msra.gmra.mrb[0].mxu1 %vm501_vm1, %v8535_v7 }
 0x4fe   : > { %6239 = vmatprep.mubr.msk.bf16.mxu1 %vm501_vm1, %v8546_v0  ;;  %6268 = vmatpush3.bf16.msra.mxu1 %v4142_v4 }
 0x4ff   : > { %6897 = vmatprep.subr.msk.bf16.mxu1 %vm532_vm0, %v4338_v42 }
 0x505   : > { %6240 = vmatmul.mubr.msk.bf16.gmra.mrb[4].mxu1 %vm501_vm1, %v8554_v47 }
 0x506   : > { %6243 = vmatprep.mubr.msk.bf16.mxu1 %vm501_vm1, %v8562_v43 }
 0x50d   : > { %6244 = vmatmul.mubr.msk.bf16.gmra.mrb[8].mxu1 %vm501_vm1, %v8567_v37 }
 0x50e   : > { %6247 = vmatprep.mubr.msk.bf16.mxu1 %vm501_vm1, %v8582_v6 }
 0x515   : > { %6248 = vmatmul.mubr.msk.bf16.gmra.mrb[12].mxu1 %vm501_vm1, %v8590_v18 }
 0x516   : > { %6251 = vmatprep.mubr.msk.bf16.mxu1 %vm501_vm1, %v8595_v58 }
 0x51d   : > { %6252 = vmatmul.mubr.msk.bf16.gmra.mrb[16].mxu1 %vm501_vm1, %v8600_v52 }
 0x51e   : > { %6255 = vmatprep.mubr.msk.bf16.mxu1 %vm501_vm1, %v8606_v3 }
 0x525   : > { %6256 = vmatmul.mubr.msk.bf16.gmra.mrb[20].mxu1 %vm501_vm1, %v8614_v1 }
 0x526   : > { %6259 = vmatprep.mubr.msk.bf16.mxu1 %vm501_vm1, %v8622_v31 }
 0x52d   : > { %6260 = vmatmul.mubr.msk.bf16.gmra.mrb[24].mxu1 %vm501_vm1, %v8627_v32 }
 0x52e   : > { %6263 = vmatprep.mubr.msk.bf16.mxu1 %vm501_vm1, %v8637_v51 }
 0x535   : > { %6264 = vmatmul.mubr.msk.bf16.gmra.mrb[28].mxu1 %vm501_vm1, %v9599_v56 }
 0x536   : > { %6269 = vmatprep.mubr.msk.bf16.mxu1 %vm501_vm1, %v8665_v24  ;;  %v4538_v24 = vsel %vm532_vm0, %v4536_v38, 0 }
 0x53d   : > { %6270 = vmatmul.mubr.msk.bf16.vlgmr.msra.gmra.mrb[0].mxu1 %vm501_vm1, %v8689_v16 }
 0x53e   : > { %6273 = vmatprep.mubr.msk.bf16.mxu1 %vm501_vm1, %v8697_v20  ;;  %6302 = vmatpush3.bf16.msra.mxu1 %v4340_v55 }
 0x53f   : > { %6898 = vmatprep.subr.msk.bf16.mxu1 %vm532_vm0, %v4536_v38 }
 0x545   : > { %6274 = vmatmul.mubr.msk.bf16.gmra.mrb[4].mxu1 %vm501_vm1, %v8707_v36 }
 0x546   : > { %6277 = vmatprep.mubr.msk.bf16.mxu1 %vm501_vm1, %v8715_v59 }
 0x54d   : > { %6278 = vmatmul.mubr.msk.bf16.gmra.mrb[8].mxu1 %vm501_vm1, %v8725_v11 }
 0x54e   : > { %6281 = vmatprep.mubr.msk.bf16.mxu1 %vm501_vm1, %v8733_v9 }
 0x555   : > { %6282 = vmatmul.mubr.msk.bf16.gmra.mrb[12].mxu1 %vm501_vm1, %v8743_v48 }
 0x556   : > { %6285 = vmatprep.mubr.msk.bf16.mxu1 %vm501_vm1, %v8751_v5 }
 0x55d   : > { %6286 = vmatmul.mubr.msk.bf16.gmra.mrb[16].mxu1 %vm501_vm1, %v8761_v35 }
 0x55e   : > { %6289 = vmatprep.mubr.msk.bf16.mxu1 %vm501_vm1, %v8769_v21 }
 0x565   : > { %6290 = vmatmul.mubr.msk.bf16.gmra.mrb[20].mxu1 %vm501_vm1, %v8779_v61 }
 0x566   : > { %6293 = vmatprep.mubr.msk.bf16.mxu1 %vm501_vm1, %v8787_v62 }
 0x56d   : > { %6294 = vmatmul.mubr.msk.bf16.gmra.mrb[24].mxu1 %vm501_vm1, %v8795_v28 }
 0x56e   : > { %6297 = vmatprep.mubr.msk.bf16.mxu1 %vm501_vm1, %v3531_v54 }
 0x575   : > { %6298 = vmatmul.mubr.msk.bf16.gmra.mrb[28].mxu1 %vm501_vm1, %v8795_v28 }
 0x576   : > { %6303 = vmatprep.mubr.msk.bf16.mxu1 %vm501_vm1, %v9591_v57 }
 0x57d   : > { %6304 = vmatmul.mubr.msk.bf16.vlgmr.msra.gmra.mrb[0].mxu1 %vm501_vm1, %v9592_v19 }
 0x57e   : > { %6307 = vmatprep.mubr.msk.bf16.mxu1 %vm501_vm1, %v9593_v26  ;;  %6336 = vmatpush3.bf16.msra.mxu1 %v4538_v24 }
 0x585   : > { %6308 = vmatmul.mubr.msk.bf16.gmra.mrb[4].mxu1 %vm501_vm1, %v9594_v2 }
 0x586   : > { %6311 = vmatprep.mubr.msk.bf16.mxu1 %vm501_vm1, %v9595_v23 }
 0x58d   : > { %6312 = vmatmul.mubr.msk.bf16.gmra.mrb[8].mxu1 %vm501_vm1, %v9596_v13 }
 0x58e   : > { %6315 = vmatprep.mubr.msk.bf16.mxu1 %vm501_vm1, %v9597_v12 }
 0x595   : > { %6316 = vmatmul.mubr.msk.bf16.gmra.mrb[12].mxu1 %vm501_vm1, %v8398_v60 }
 0x596   : > { %6319 = vmatprep.mubr.msk.bf16.mxu1 %vm501_vm1, %v8400_v41 }
 0x59d   : > { %6320 = vmatmul.mubr.msk.bf16.gmra.mrb[16].mxu1 %vm501_vm1, %v8402_v25 }
 0x59e   : > { %6323 = vmatprep.mubr.msk.bf16.mxu1 %vm501_vm1, %v8404_v45 }
 0x5a5   : > { %6324 = vmatmul.mubr.msk.bf16.gmra.mrb[20].mxu1 %vm501_vm1, %v8408_v27 }
 0x5a6   : > { %6327 = vmatprep.mubr.msk.bf16.mxu1 %vm501_vm1, %v8410_v33 }
 0x5ad   : > { %6328 = vmatmul.mubr.msk.bf16.gmra.mrb[24].mxu1 %vm501_vm1, %v8380_v15 }
 0x5ae   : > { %6331 = vmatprep.mubr.msk.bf16.mxu1 %vm501_vm1, %v9598_v14 }
 0x5b5   : > { %6332 = vmatmul.mubr.msk.bf16.gmra.mrb[28].mxu1 %vm501_vm1, %v8380_v15 }
 0x5b6   : > { %6337 = vmatprep.mubr.msk.bf16.mxu1 %vm501_vm1, %v8535_v7 }
 0x5bd   : > { %6338 = vmatmul.mubr.msk.bf16.vlgmr.msra.gmra.mrb[0].mxu1 %vm501_vm1, %v8546_v0 }
 0x5be   : > { %6341 = vmatprep.mubr.msk.bf16.mxu1 %vm501_vm1, %v8554_v47 }
 0x5c5   : > { %6342 = vmatmul.mubr.msk.bf16.gmra.mrb[4].mxu1 %vm501_vm1, %v8562_v43 }
 0x5c6   : > { %6345 = vmatprep.mubr.msk.bf16.mxu1 %vm501_vm1, %v8567_v37 }
 0x5cd   : > { %6346 = vmatmul.mubr.msk.bf16.gmra.mrb[8].mxu1 %vm501_vm1, %v8582_v6 }
 0x5ce   : > { %6349 = vmatprep.mubr.msk.bf16.mxu1 %vm501_vm1, %v8590_v18 }
 0x5d5   : > { %6350 = vmatmul.mubr.msk.bf16.gmra.mrb[12].mxu1 %vm501_vm1, %v8595_v58 }
 0x5d6   : > { %6353 = vmatprep.mubr.msk.bf16.mxu1 %vm501_vm1, %v8600_v52 }
 0x5dd   : > { %6354 = vmatmul.mubr.msk.bf16.gmra.mrb[16].mxu1 %vm501_vm1, %v8606_v3 }
 0x5de   : > { %6357 = vmatprep.mubr.msk.bf16.mxu1 %vm501_vm1, %v8614_v1 }
 0x5e5   : > { %6358 = vmatmul.mubr.msk.bf16.gmra.mrb[20].mxu1 %vm501_vm1, %v8622_v31 }
 0x5e6   : > { %6361 = vmatprep.mubr.msk.bf16.mxu1 %vm501_vm1, %v8627_v32 }
 0x5ed   : > { %6362 = vmatmul.mubr.msk.bf16.gmra.mrb[24].mxu1 %vm501_vm1, %v8637_v51 }
 0x5ee   : > { %6365 = vmatprep.mubr.msk.bf16.mxu1 %vm501_vm1, %v9599_v56 }
 0x5f5   : > { %6366 = vmatmul.mubr.msk.bf16.gmra.mrb[28].mxu1 %vm501_vm1, %v8637_v51 }
 0x690   : > { %v9037_v15 = vpop.f32.mrb[0].mxu1 }
 0x691   : > { %v9039_v3 = vpop.f32.mrb[1].mxu1  ;;  %v4805_v45 = vmul.f32 %v9037_v15, %v9037_v15  ;;  %v4736_v0 = vsel %vm501_vm1, %v9037_v15, 0.0 }
 0x692   : > { %v4803_v60 = vmul.f32 %v9039_v3, %v9039_v3  ;;  %v9043_v41 = vpop.f32.mrb[2].mxu1  ;;  %v4733_v27 = vsel %vm501_vm1, %v9039_v3, 0.0 }
 0x693   : > { %v9045_v25 = vpop.f32.mrb[3].mxu1  ;;  %v4806_v43 = vmul.f32 %v9043_v41, %v9043_v41  ;;  %v4838_v58 = vsel %vm501_vm1, %v4805_v45, 0.0  ;;  %v4738_v52 = vsel %vm501_vm1, %v9043_v41, 0.0 }
 0x694   : > { %v4734_v51 = vsel %vm501_vm1, %v9045_v25, 0.0  ;;  %v4804_v33 = vmul.f32 %v9045_v25, %v9045_v25  ;;  %v4835_v47 = vsel %vm501_vm1, %v4803_v60, 0.0 }
 0x695   : > { %v4735_v7 = vadd.f32 %v4734_v51, %v4733_v27  ;;  %v4840_v20 = vsel %vm501_vm1, %v4806_v43, 0.0 }
 0x696   : > { %v4836_v37 = vsel %vm501_vm1, %v4804_v33, 0.0 }
 0x697   : > { %v4737_v6 = vadd.f32 %v4736_v0, %v4735_v7  ;;  %v4837_v18 = vadd.f32 %v4836_v37, %v4835_v47 }
 0x698   : > { %v9064_v1 = vpop.f32.mrb[4].mxu1 }
 0x699   : > { %v4839_v31 = vadd.f32 %v4838_v58, %v4837_v18  ;;  %v9066_v32 = vpop.f32.mrb[5].mxu1  ;;  %v4739_v16 = vadd.f32 %v4738_v52, %v4737_v6  ;;  %v4809_v22 = vmul.f32 %v9064_v1, %v9064_v1  ;;  %v4744_v34 = vsel %vm501_vm1, %v9064_v1, 0.0 }
 0x69a   : > { %v4740_v36 = vsel %vm501_vm1, %v9066_v32, 0.0  ;;  %v4807_v59 = vmul.f32 %v9066_v32, %v9066_v32  ;;  %v9073_v11 = vpop.f32.mrb[6].mxu1 }
 0x69b   : > { %v4741_v9 = vadd.f32 %v4740_v36, %v4739_v16  ;;  %v4841_v48 = vadd.f32 %v4840_v20, %v4839_v31  ;;  %v9075_v5 = vpop.f32.mrb[7].mxu1  ;;  %v4810_v61 = vmul.f32 %v9073_v11, %v9073_v11  ;;  %v4846_v28 = vsel %vm501_vm1, %v4809_v22, 0.0 }
 0x69c   : > { %v4842_v35 = vsel %vm501_vm1, %v4807_v59, 0.0  ;;  %v4742_v46 = vsel %vm501_vm1, %v9075_v5, 0.0  ;;  %v4808_v21 = vmul.f32 %v9075_v5, %v9075_v5  ;;  %v4746_v39 = vsel %vm501_vm1, %v9073_v11, 0.0 }
 0x69d   : > { %v4843_v8 = vadd.f32 %v4842_v35, %v4841_v48  ;;  %v4743_v53 = vadd.f32 %v4742_v46, %v4741_v9  ;;  %v4848_v49 = vsel %vm501_vm1, %v4810_v61, 0.0 }
 0x69e   : > { %v4844_v44 = vsel %vm501_vm1, %v4808_v21, 0.0 }
 0x69f   : > { %v4745_v62 = vadd.f32 %v4744_v34, %v4743_v53  ;;  %v4845_v30 = vadd.f32 %v4844_v44, %v4843_v8 }
 0x6a0   : > { %v9092_v63 = vpop.f32.mrb[8].mxu1 }
 0x6a1   : > { %v4847_v17 = vadd.f32 %v4846_v28, %v4845_v30  ;;  %v9094_v40 = vpop.f32.mrb[9].mxu1  ;;  %v4747_v29 = vadd.f32 %v4746_v39, %v4745_v62  ;;  %v4813_v2 = vmul.f32 %v9092_v63, %v9092_v63  ;;  %v4752_v42 = vsel %vm501_vm1, %v9092_v63, 0.0 }
 0x6a2   : > { %v4748_v54 = vsel %vm501_vm1, %v9094_v40, 0.0  ;;  %v4811_v10 = vmul.f32 %v9094_v40, %v9094_v40  ;;  %v9101_v50 = vpop.f32.mrb[10].mxu1 }
 0x6a3   : > { %v4749_v57 = vadd.f32 %v4748_v54, %v4747_v29  ;;  %v4849_v19 = vadd.f32 %v4848_v49, %v4847_v17  ;;  %v9103_v26 = vpop.f32.mrb[11].mxu1  ;;  %v4814_v56 = vmul.f32 %v9101_v50, %v9101_v50  ;;  %v4854_v60 = vsel %vm501_vm1, %v4813_v2, 0.0 }
 0x6a4   : > { %v4850_v23 = vsel %vm501_vm1, %v4811_v10, 0.0  ;;  %v4750_v13 = vsel %vm501_vm1, %v9103_v26, 0.0  ;;  %v4812_v12 = vmul.f32 %v9103_v26, %v9103_v26  ;;  %v4754_v45 = vsel %vm501_vm1, %v9101_v50, 0.0 }
 0x6a5   : > { %v4851_v14 = vadd.f32 %v4850_v23, %v4849_v19  ;;  %v4751_v4 = vadd.f32 %v4750_v13, %v4749_v57  ;;  %v4856_v0 = vsel %vm501_vm1, %v4814_v56, 0.0 }
 0x6a6   : > { %v4852_v55 = vsel %vm501_vm1, %v4812_v12, 0.0 }
 0x6a7   : > { %v4753_v38 = vadd.f32 %v4752_v42, %v4751_v4  ;;  %v4853_v24 = vadd.f32 %v4852_v55, %v4851_v14 }
 0x6a8   : > { %v9120_v27 = vpop.f32.mrb[12].mxu1 }
 0x6a9   : > { %v4855_v51 = vadd.f32 %v4854_v60, %v4853_v24  ;;  %v9122_v33 = vpop.f32.mrb[13].mxu1  ;;  %v4755_v7 = vadd.f32 %v4754_v45, %v4753_v38  ;;  %v4817_v52 = vmul.f32 %v9120_v27, %v9120_v27  ;;  %v4760_v9 = vsel %vm501_vm1, %v9120_v27, 0.0 }
 0x6aa   : > { %v4756_v47 = vsel %vm501_vm1, %v9122_v33, 0.0  ;;  %v4815_v43 = vmul.f32 %v9122_v33, %v9122_v33  ;;  %v9129_v37 = vpop.f32.mrb[14].mxu1 }
 0x6ab   : > { %v4757_v6 = vadd.f32 %v4756_v47, %v4755_v7  ;;  %v4857_v18 = vadd.f32 %v4856_v0, %v4855_v51  ;;  %v9131_v58 = vpop.f32.mrb[15].mxu1  ;;  %v4818_v48 = vmul.f32 %v9129_v37, %v9129_v37  ;;  %v4862_v21 = vsel %vm501_vm1, %v4817_v52, 0.0 }
 0x6ac   : > { %v4858_v31 = vsel %vm501_vm1, %v4815_v43, 0.0  ;;  %v4758_v16 = vsel %vm501_vm1, %v9131_v58, 0.0  ;;  %v4816_v20 = vmul.f32 %v9131_v58, %v9131_v58  ;;  %v4762_v8 = vsel %vm501_vm1, %v9129_v37, 0.0 }
 0x6ad   : > { %v4859_v36 = vadd.f32 %v4858_v31, %v4857_v18  ;;  %v4759_v59 = vadd.f32 %v4758_v16, %v4757_v6  ;;  %v4864_v62 = vsel %vm501_vm1, %v4818_v48, 0.0 }
 0x6ae   : > { %v4860_v22 = vsel %vm501_vm1, %v4816_v20, 0.0 }
 0x6af   : > { %v4761_v35 = vadd.f32 %v4760_v9, %v4759_v59  ;;  %v4861_v46 = vadd.f32 %v4860_v22, %v4859_v36 }
 0x6b0   : > { %v9148_v53 = vpop.f32.mrb[16].mxu1 }
 0x6b1   : > { %v4863_v34 = vadd.f32 %v4862_v21, %v4861_v46  ;;  %v9150_v61 = vpop.f32.mrb[17].mxu1  ;;  %v4763_v44 = vadd.f32 %v4762_v8, %v4761_v35  ;;  %v4821_v54 = vmul.f32 %v9148_v53, %v9148_v53  ;;  %v4768_v13 = vsel %vm501_vm1, %v9148_v53, 0.0 }
 0x6b2   : > { %v4764_v30 = vsel %vm501_vm1, %v9150_v61, 0.0  ;;  %v4819_v28 = vmul.f32 %v9150_v61, %v9150_v61  ;;  %v9157_v39 = vpop.f32.mrb[18].mxu1 }
 0x6b3   : > { %v4765_v17 = vadd.f32 %v4764_v30, %v4763_v44  ;;  %v4865_v29 = vadd.f32 %v4864_v62, %v4863_v34  ;;  %v9159_v49 = vpop.f32.mrb[19].mxu1  ;;  %v4822_v12 = vmul.f32 %v9157_v39, %v9157_v39  ;;  %v4870_v56 = vsel %vm501_vm1, %v4821_v54, 0.0 }
 0x6b4   : > { %v4866_v10 = vsel %vm501_vm1, %v4819_v28, 0.0  ;;  %v4766_v57 = vsel %vm501_vm1, %v9159_v49, 0.0  ;;  %v4820_v19 = vmul.f32 %v9159_v49, %v9159_v49  ;;  %v4770_v55 = vsel %vm501_vm1, %v9157_v39, 0.0 }
 0x6b5   : > { %v4867_v2 = vadd.f32 %v4866_v10, %v4865_v29  ;;  %v4767_v23 = vadd.f32 %v4766_v57, %v4765_v17  ;;  %v4872_v51 = vsel %vm501_vm1, %v4822_v12, 0.0 }
 0x6b6   : > { %v4868_v14 = vsel %vm501_vm1, %v4820_v19, 0.0 }
 0x6b7   : > { %v4769_v4 = vadd.f32 %v4768_v13, %v4767_v23  ;;  %v4869_v42 = vadd.f32 %v4868_v14, %v4867_v2 }
 0x6b8   : > { %v9176_v38 = vpop.f32.mrb[20].mxu1 }
 0x6b9   : > { %v4871_v24 = vadd.f32 %v4870_v56, %v4869_v42  ;;  %v9178_v60 = vpop.f32.mrb[21].mxu1  ;;  %v4771_v45 = vadd.f32 %v4770_v55, %v4769_v4  ;;  %v4825_v52 = vmul.f32 %v9176_v38, %v9176_v38  ;;  %v4776_v9 = vsel %vm501_vm1, %v9176_v38, 0.0 }
 0x6ba   : > { %v4772_v7 = vsel %vm501_vm1, %v9178_v60, 0.0  ;;  %v4823_v0 = vmul.f32 %v9178_v60, %v9178_v60  ;;  %v9185_v47 = vpop.f32.mrb[22].mxu1 }
 0x6bb   : > { %v4773_v43 = vadd.f32 %v4772_v7, %v4771_v45  ;;  %v4873_v6 = vadd.f32 %v4872_v51, %v4871_v24  ;;  %v9187_v18 = vpop.f32.mrb[23].mxu1  ;;  %v4826_v48 = vmul.f32 %v9185_v47, %v9185_v47  ;;  %v4878_v21 = vsel %vm501_vm1, %v4825_v52, 0.0 }
 0x6bc   : > { %v4874_v31 = vsel %vm501_vm1, %v4823_v0, 0.0  ;;  %v4774_v16 = vsel %vm501_vm1, %v9187_v18, 0.0  ;;  %v4824_v20 = vmul.f32 %v9187_v18, %v9187_v18  ;;  %v4778_v8 = vsel %vm501_vm1, %v9185_v47, 0.0 }
 0x6bd   : > { %v4875_v36 = vadd.f32 %v4874_v31, %v4873_v6  ;;  %v4775_v59 = vadd.f32 %v4774_v16, %v4773_v43  ;;  %v4880_v28 = vsel %vm501_vm1, %v4826_v48, 0.0 }
 0x6be   : > { %v4876_v22 = vsel %vm501_vm1, %v4824_v20, 0.0 }
 0x6bf   : > { %v4777_v35 = vadd.f32 %v4776_v9, %v4775_v59  ;;  %v4877_v46 = vadd.f32 %v4876_v22, %v4875_v36 }
 0x6c0   : > { %v9204_v34 = vpop.f32.mrb[24].mxu1 }
 0x6c1   : > { %v4879_v44 = vadd.f32 %v4878_v21, %v4877_v46  ;;  %v9206_v62 = vpop.f32.mrb[25].mxu1  ;;  %v4779_v30 = vadd.f32 %v4778_v8, %v4777_v35  ;;  %v4829_v2 = vmul.f32 %v9204_v34, %v9204_v34  ;;  %v4784_v42 = vsel %vm501_vm1, %v9204_v34, 0.0 }
 0x6c2   : > { %v4780_v17 = vsel %vm501_vm1, %v9206_v62, 0.0  ;;  %v4827_v29 = vmul.f32 %v9206_v62, %v9206_v62  ;;  %v9213_v54 = vpop.f32.mrb[26].mxu1 }
 0x6c3   : > { %v4781_v10 = vadd.f32 %v4780_v17, %v4779_v30  ;;  %v4881_v57 = vadd.f32 %v4880_v28, %v4879_v44  ;;  %v9215_v19 = vpop.f32.mrb[27].mxu1  ;;  %v4830_v56 = vmul.f32 %v9213_v54, %v9213_v54  ;;  %v4886_v51 = vsel %vm501_vm1, %v4829_v2, 0.0 }
 0x6c4   : > { %v4882_v23 = vsel %vm501_vm1, %v4827_v29, 0.0  ;;  %v4782_v13 = vsel %vm501_vm1, %v9215_v19, 0.0  ;;  %v4828_v12 = vmul.f32 %v9215_v19, %v9215_v19  ;;  %v4786_v7 = vsel %vm501_vm1, %v9213_v54, 0.0 }
 0x6c5   : > { %v4883_v14 = vadd.f32 %v4882_v23, %v4881_v57  ;;  %v4783_v4 = vadd.f32 %v4782_v13, %v4781_v10  ;;  %v4888_v31 = vsel %vm501_vm1, %v4830_v56, 0.0 }
 0x6c6   : > { %v4884_v55 = vsel %vm501_vm1, %v4828_v12, 0.0 }
 0x6c7   : > { %v4785_v24 = vadd.f32 %v4784_v42, %v4783_v4  ;;  %v4885_v45 = vadd.f32 %v4884_v55, %v4883_v14 }
 0x6c8   : > { %v9232_v0 = vpop.f32.mrb[28].mxu1 }
 0x6c9   : > { %v4887_v43 = vadd.f32 %v4886_v51, %v4885_v45  ;;  %v9234_v6 = vpop.f32.mrb[29].mxu1  ;;  %v4787_v52 = vadd.f32 %v4786_v7, %v4785_v24  ;;  %v4833_v22 = vmul.f32 %v9232_v0, %v9232_v0  ;;  %v4792_v30 = vsel %vm501_vm1, %v9232_v0, 0.0 }
 0x6ca   : > { %v4788_v16 = vsel %vm501_vm1, %v9234_v6, 0.0  ;;  %v4831_v20 = vmul.f32 %v9234_v6, %v9234_v6  ;;  %v9241_v36 = vpop.f32.mrb[30].mxu1 }
 0x6cb   : > { %v4789_v59 = vadd.f32 %v4788_v16, %v4787_v52  ;;  %v4889_v9 = vadd.f32 %v4888_v31, %v4887_v43  ;;  %v9243_v48 = vpop.f32.mrb[31].mxu1  ;;  %v4834_v28 = vmul.f32 %v9241_v36, %v9241_v36  ;;  %v4894_v57 = vsel %vm501_vm1, %v4833_v22, 0.0 }
 0x6cc   : > { %v4890_v35 = vsel %vm501_vm1, %v4831_v20, 0.0  ;;  %v4790_v46 = vsel %vm501_vm1, %v9243_v48, 0.0  ;;  %v4832_v21 = vmul.f32 %v9243_v48, %v9243_v48  ;;  %v4794_v2 = vsel %vm501_vm1, %v9241_v36, 0.0 }
 0x6cd   : > { %v4891_v8 = vadd.f32 %v4890_v35, %v4889_v9  ;;  %v4791_v44 = vadd.f32 %v4790_v46, %v4789_v59  ;;  %v4896_v12 = vsel %vm501_vm1, %v4834_v28, 0.0 }
 0x6ce   : > { %v4892_v17 = vsel %vm501_vm1, %v4832_v21, 0.0 }
 0x6cf   : > { %v4793_v29 = vadd.f32 %v4792_v30, %v4791_v44  ;;  %v4893_v10 = vadd.f32 %v4892_v17, %v4891_v8 }
 0x6d1   : > { %v4795_v23 = vadd.f32 %v4794_v2, %v4793_v29  ;;  %v4895_v13 = vadd.f32 %v4894_v57, %v4893_v10 }
 0x6d3   : > { %v4796_v14 = vrot.slane %v4795_v23, 4  ;;  %v4897_v4 = vadd.f32 %v4896_v12, %v4895_v13 }
 0x6d5   : > { %v4797_v42 = vadd.f32 %v4796_v14, %v4795_v23  ;;  %v4898_v56 = vrot.slane %v4897_v4, 4 }
 0x6d7   : > { %v4798_v55 = vrot.slane %v4797_v42, 2  ;;  %v4899_v24 = vadd.f32 %v4898_v56, %v4897_v4 }
 0x6d9   : > { %v4799_v45 = vadd.f32 %v4798_v55, %v4797_v42  ;;  %v4900_v51 = vrot.slane %v4899_v24, 2 }
 0x6db   : > { %v4800_v7 = vrot.slane %v4799_v45, 1  ;;  %v4901_v43 = vadd.f32 %v4900_v51, %v4899_v24 }
 0x6dd   : > { %v4801_v52 = vadd.f32 %v4800_v7, %v4799_v45  ;;  %v4902_v31 = vrot.slane %v4901_v43, 1 }
 0x6df   : > { %v9261_v16 = vmul.f32 0.00390625, %v4801_v52  ;;  %v4903_v20 = vadd.f32 %v4902_v31, %v4901_v43 }
 0x6e1   : > { %v4904_v59 = vmul.f32 0.00390625, %v4903_v20  ;;  %v4905_v9 = vmul.f32 %v9261_v16, %v9261_v16  ;;  %v4936_v22 = vsub.f32 %v9243_v48, %v9261_v16  ;;  %v4907_v35 = vsub.f32 %v9039_v3, %v9261_v16 }
 0x6e2   : > { %v4908_v46 = vsub.f32 %v9045_v25, %v9261_v16  ;;  %v4909_v21 = vsub.f32 %v9037_v15, %v9261_v16  ;;  %v4910_v8 = vsub.f32 %v9043_v41, %v9261_v16  ;;  %v4911_v44 = vsub.f32 %v9066_v32, %v9261_v16 }
 0x6e3   : > { %v4906_v30 = vsub.f32 %v4904_v59, %v4905_v9  ;;  %v4912_v28 = vsub.f32 %v9075_v5, %v9261_v16  ;;  %v4913_v48 = vsub.f32 %v9064_v1, %v9261_v16  ;;  %v4914_v3 = vsub.f32 %v9073_v11, %v9261_v16 }
 0x6e4   : > { %v4915_v25 = vsub.f32 %v9094_v40, %v9261_v16  ;;  %v4916_v15 = vsub.f32 %v9103_v26, %v9261_v16  ;;  %v4917_v41 = vsub.f32 %v9092_v63, %v9261_v16  ;;  %v4918_v32 = vsub.f32 %v9101_v50, %v9261_v16 }
 0x6e5   : > { %v4939_v17 = vadd.f32 1e-05, %v4906_v30  ;;  %v4919_v5 = vsub.f32 %v9122_v33, %v9261_v16  ;;  %v4920_v1 = vsub.f32 %v9131_v58, %v9261_v16  ;;  %v4921_v11 = vsub.f32 %v9120_v27, %v9261_v16 }
 0x6e6   : > { %v4922_v40 = vsub.f32 %v9129_v37, %v9261_v16  ;;  %v4923_v26 = vsub.f32 %v9150_v61, %v9261_v16  ;;  %v4924_v63 = vsub.f32 %v9159_v49, %v9261_v16  ;;  %v4925_v50 = vsub.f32 %v9148_v53, %v9261_v16 }
 0x6e7   : > { %6974 = vrsqrt.f32 %v4939_v17  ;;  %v4926_v33 = vsub.f32 %v9157_v39, %v9261_v16  ;;  %v4927_v58 = vsub.f32 %v9178_v60, %v9261_v16  ;;  %v4928_v27 = vsub.f32 %v9187_v18, %v9261_v16 }
 0x6e8   : > { %v4929_v37 = vsub.f32 %v9176_v38, %v9261_v16  ;;  %v4930_v61 = vsub.f32 %v9185_v47, %v9261_v16  ;;  %v4931_v49 = vsub.f32 %v9206_v62, %v9261_v16  ;;  %v4932_v53 = vsub.f32 %v9215_v19, %v9261_v16 }
 0x6e9   : > { %v4933_v39 = vsub.f32 %v9204_v34, %v9261_v16  ;;  %v4934_v60 = vsub.f32 %v9213_v54, %v9261_v16  ;;  %v4935_v18 = vsub.f32 %v9234_v6, %v9261_v16  ;;  %v4937_v38 = vsub.f32 %v9232_v0, %v9261_v16  ;;  %v6976_v54 = vld [vmem:[%s7374_s30 + $0xe8] sm:$0xff] }
 0x6ea   : > { %v4938_v47 = vsub.f32 %v9241_v36, %v9261_v16 }
 0x6f1   : > { %v6975_v62 = vpop.eup %6974 }
 0x6f2   : > { %v4970_v29 = vmul.f32 %v6975_v62, %v4936_v22  ;;  %v4941_v10 = vmul.f32 %v6975_v62, %v4907_v35  ;;  %v4942_v19 = vmul.f32 %v6975_v62, %v4908_v46  ;;  %v4943_v57 = vmul.f32 %v6975_v62, %v4909_v21 }
 0x6f3   : > { %v4944_v2 = vmul.f32 %v6975_v62, %v4910_v8  ;;  %v4945_v34 = vmul.f32 %v6975_v62, %v4911_v44  ;;  %v4946_v23 = vmul.f32 %v6975_v62, %v4912_v28  ;;  %v4947_v13 = vmul.f32 %v6975_v62, %v4913_v48  ;;  %v6977_v44 = vld [vmem:[%s7374_s30] sm:$0xff]  ;;  %v6978_v28 = vld [vmem:[%s7374_s30 + $0x8] sm:$0xff] }
 0x6f4   : > { %v5002_v12 = vadd.f32 %v6976_v54, %v4970_v29  ;;  %v4948_v14 = vmul.f32 %v6975_v62, %v4914_v3  ;;  %v4949_v6 = vmul.f32 %v6975_v62, %v4915_v25  ;;  %v4950_v4 = vmul.f32 %v6975_v62, %v4916_v15  ;;  %v6979_v3 = vld [vmem:[%s7374_s30 + $0x10] sm:$0xff]  ;;  %v6980_v15 = vld [vmem:[%s7374_s30 + $0x18] sm:$0xff] }
 0x6f5   : > { %v4951_v42 = vmul.f32 %v6975_v62, %v4917_v41  ;;  %v4952_v0 = vmul.f32 %v6975_v62, %v4918_v32  ;;  %v4953_v56 = vmul.f32 %v6975_v62, %v4919_v5  ;;  %v4954_v55 = vmul.f32 %v6975_v62, %v4920_v1  ;;  %v6981_v32 = vld [vmem:[%s7374_s30 + $0x20] sm:$0xff]  ;;  %v6982_v5 = vld [vmem:[%s7374_s30 + $0x28] sm:$0xff]  ;;  %v6992_v29 = vld [vmem:[%s7374_s30 + $0x78] sm:$0xff] }
 0x6f6   : > { %5034 = vst.msk [vmem:[%s9332_s18 + $0xe8] sm:$0xff] %vm501_vm1, %v5002_v12  ;;  %v4955_v36 = vmul.f32 %v6975_v62, %v4921_v11  ;;  %v4956_v24 = vmul.f32 %v6975_v62, %v4922_v40  ;;  %v4957_v45 = vmul.f32 %v6975_v62, %v4923_v26  ;;  %v4958_v51 = vmul.f32 %v6975_v62, %v4924_v63  ;;  %v6983_v11 = vld [vmem:[%s7374_s30 + $0x30] sm:$0xff]  ;;  %v6984_v26 = vld [vmem:[%s7374_s30 + $0x38] sm:$0xff] }
 0x6f7   : > { %v4959_v7 = vmul.f32 %v6975_v62, %v4925_v50  ;;  %v9336_v43 = vmul.f32 %v6975_v62, %v4926_v33  ;;  %v9338_v52 = vmul.f32 %v6975_v62, %v4927_v58  ;;  %v9340_v31 = vmul.f32 %v6975_v62, %v4928_v27  ;;  %v6985_v50 = vld [vmem:[%s7374_s30 + $0x40] sm:$0xff]  ;;  %v6986_v58 = vld [vmem:[%s7374_s30 + $0x48] sm:$0xff]  ;;  %v6996_v54 = vld [vmem:[%s7374_s30 + $0x98] sm:$0xff] }
 0x6f8   : > { %v9342_v16 = vmul.f32 %v6975_v62, %v4929_v37  ;;  %v9344_v20 = vmul.f32 %v6975_v62, %v4930_v61  ;;  %v9346_v59 = vmul.f32 %v6975_v62, %v4931_v49  ;;  %v9348_v9 = vmul.f32 %v6975_v62, %v4932_v53  ;;  %v6987_v37 = vld [vmem:[%s7374_s30 + $0x50] sm:$0xff]  ;;  %v6988_v49 = vld [vmem:[%s7374_s30 + $0x58] sm:$0xff] }
 0x6f9   : > { %v9350_v22 = vmul.f32 %v6975_v62, %v4933_v39  ;;  %v9352_v35 = vmul.f32 %v6975_v62, %v4934_v60  ;;  %v9354_v46 = vmul.f32 %v6975_v62, %v4935_v18  ;;  %v9356_v21 = vmul.f32 %v6975_v62, %v4937_v38  ;;  %v6989_v39 = vld [vmem:[%s7374_s30 + $0x60] sm:$0xff]  ;;  %v6990_v18 = vld [vmem:[%s7374_s30 + $0x68] sm:$0xff] }
 0x6fa   : > { %v9358_v8 = vmul.f32 %v6975_v62, %v4938_v47  ;;  %v4973_v30 = vadd.f32 %v6977_v44, %v4941_v10  ;;  %v4974_v48 = vadd.f32 %v6978_v28, %v4942_v19  ;;  %v4975_v25 = vadd.f32 %v6979_v3, %v4943_v57  ;;  %v6991_v47 = vld [vmem:[%s7374_s30 + $0x70] sm:$0xff]  ;;  %v6993_v19 = vld [vmem:[%s7374_s30 + $0x80] sm:$0xff]  ;;  %v7007_v44 = vld [vmem:[%s7374_s30 + $0xf8] sm:$0xff] }
 0x6fb   : > { %v4976_v41 = vadd.f32 %v6980_v15, %v4944_v2  ;;  %v4977_v17 = vadd.f32 %v6981_v32, %v4945_v34  ;;  %v4978_v1 = vadd.f32 %v6982_v5, %v4946_v23  ;;  %v4979_v40 = vadd.f32 %v6983_v11, %v4947_v13  ;;  %v6994_v2 = vld [vmem:[%s7374_s30 + $0x88] sm:$0xff]  ;;  %v6995_v23 = vld [vmem:[%s7374_s30 + $0x90] sm:$0xff] }
 0x6fc   : > { %v4980_v63 = vadd.f32 %v6984_v26, %v4948_v14  ;;  %v4981_v33 = vadd.f32 %v6985_v50, %v4949_v6  ;;  %v4982_v27 = vadd.f32 %v6986_v58, %v4950_v4  ;;  %v4983_v61 = vadd.f32 %v6987_v37, %v4951_v42  ;;  %5005 = vst.msk [vmem:[%s9332_s18] sm:$0xff] %vm501_vm1, %v4973_v30  ;;  %v6997_v14 = vld [vmem:[%s7374_s30 + $0xa0] sm:$0xff]  ;;  %v6998_v4 = vld [vmem:[%s7374_s30 + $0xa8] sm:$0xff] }
 0x6fd   : > { %5006 = vst.msk [vmem:[%s9332_s18 + $0x8] sm:$0xff] %vm501_vm1, %v4974_v48  ;;  %5007 = vst.msk [vmem:[%s9332_s18 + $0x10] sm:$0xff] %vm501_vm1, %v4975_v25  ;;  %v4984_v53 = vadd.f32 %v6988_v49, %v4952_v0  ;;  %v4985_v60 = vadd.f32 %v6989_v39, %v4953_v56  ;;  %v4986_v38 = vadd.f32 %v6990_v18, %v4954_v55  ;;  %v6999_v0 = vld [vmem:[%s7374_s30 + $0xb0] sm:$0xff]  ;;  %v7000_v55 = vld [vmem:[%s7374_s30 + $0xb8] sm:$0xff] }
 0x6fe   : > { %v4987_v62 = vadd.f32 %v6991_v47, %v4955_v36  ;;  %5008 = vst.msk [vmem:[%s9332_s18 + $0x18] sm:$0xff] %vm501_vm1, %v4976_v41  ;;  %5009 = vst.msk [vmem:[%s9332_s18 + $0x20] sm:$0xff] %vm501_vm1, %v4977_v17  ;;  %v4988_v10 = vadd.f32 %v6992_v29, %v4956_v24  ;;  %v4989_v57 = vadd.f32 %v6993_v19, %v4957_v45  ;;  %v7001_v24 = vld [vmem:[%s7374_s30 + $0xc0] sm:$0xff] }
 0x6ff   : > { %5010 = vst.msk [vmem:[%s9332_s18 + $0x28] sm:$0xff] %vm501_vm1, %v4978_v1  ;;  %5011 = vst.msk [vmem:[%s9332_s18 + $0x30] sm:$0xff] %vm501_vm1, %v4979_v40  ;;  %v4990_v34 = vadd.f32 %v6994_v2, %v4958_v51  ;;  %v4991_v13 = vadd.f32 %v6995_v23, %v4959_v7  ;;  %v4992_v12 = vadd.f32 %v6996_v54, %v9336_v43  ;;  %v7002_v51 = vld [vmem:[%s7374_s30 + $0xc8] sm:$0xff]  ;;  %v7003_v43 = vld [vmem:[%s7374_s30 + $0xd0] sm:$0xff] }
 0x700   : > { %5012 = vst.msk [vmem:[%s9332_s18 + $0x38] sm:$0xff] %vm501_vm1, %v4980_v63  ;;  %5013 = vst.msk [vmem:[%s9332_s18 + $0x40] sm:$0xff] %vm501_vm1, %v4981_v33  ;;  %v4993_v6 = vadd.f32 %v6997_v14, %v9338_v52  ;;  %v4994_v42 = vadd.f32 %v6998_v4, %v9340_v31  ;;  %v4995_v56 = vadd.f32 %v6999_v0, %v9342_v16  ;;  %v7004_v31 = vld [vmem:[%s7374_s30 + $0xd8] sm:$0xff] }
 0x701   : > { %5014 = vst.msk [vmem:[%s9332_s18 + $0x48] sm:$0xff] %vm501_vm1, %v4982_v27  ;;  %5015 = vst.msk [vmem:[%s9332_s18 + $0x50] sm:$0xff] %vm501_vm1, %v4983_v61  ;;  %v4996_v36 = vadd.f32 %v7000_v55, %v9344_v20  ;;  %v4997_v45 = vadd.f32 %v7001_v24, %v9346_v59  ;;  %v4998_v7 = vadd.f32 %v7002_v51, %v9348_v9  ;;  %v7005_v20 = vld [vmem:[%s7374_s30 + $0xe0] sm:$0xff]  ;;  %v7006_v9 = vld [vmem:[%s7374_s30 + $0xf0] sm:$0xff] }
 0x702   : > { %5016 = vst.msk [vmem:[%s9332_s18 + $0x58] sm:$0xff] %vm501_vm1, %v4984_v53  ;;  %5017 = vst.msk [vmem:[%s9332_s18 + $0x60] sm:$0xff] %vm501_vm1, %v4985_v60  ;;  %v4999_v52 = vadd.f32 %v7003_v43, %v9350_v22  ;;  %v5000_v16 = vadd.f32 %v7004_v31, %v9352_v35  ;;  %v5001_v59 = vadd.f32 %v7005_v20, %v9354_v46 }
 0x703   : > { %5018 = vst.msk [vmem:[%s9332_s18 + $0x68] sm:$0xff] %vm501_vm1, %v4986_v38  ;;  %5019 = vst.msk [vmem:[%s9332_s18 + $0x70] sm:$0xff] %vm501_vm1, %v4987_v62  ;;  %v5003_v22 = vadd.f32 %v7006_v9, %v9356_v21  ;;  %v5004_v30 = vadd.f32 %v7007_v44, %v9358_v8 }
 0x704   : > { %5020 = vst.msk [vmem:[%s9332_s18 + $0x78] sm:$0xff] %vm501_vm1, %v4988_v10  ;;  %5021 = vst.msk [vmem:[%s9332_s18 + $0x80] sm:$0xff] %vm501_vm1, %v4989_v57 }
 0x705   : > { %5022 = vst.msk [vmem:[%s9332_s18 + $0x88] sm:$0xff] %vm501_vm1, %v4990_v34  ;;  %5023 = vst.msk [vmem:[%s9332_s18 + $0x90] sm:$0xff] %vm501_vm1, %v4991_v13 }
 0x706   : > { %5024 = vst.msk [vmem:[%s9332_s18 + $0x98] sm:$0xff] %vm501_vm1, %v4992_v12  ;;  %5025 = vst.msk [vmem:[%s9332_s18 + $0xa0] sm:$0xff] %vm501_vm1, %v4993_v6 }
 0x707   : > { %5026 = vst.msk [vmem:[%s9332_s18 + $0xa8] sm:$0xff] %vm501_vm1, %v4994_v42  ;;  %5027 = vst.msk [vmem:[%s9332_s18 + $0xb0] sm:$0xff] %vm501_vm1, %v4995_v56 }
 0x708   : > { %5028 = vst.msk [vmem:[%s9332_s18 + $0xb8] sm:$0xff] %vm501_vm1, %v4996_v36  ;;  %5029 = vst.msk [vmem:[%s9332_s18 + $0xc0] sm:$0xff] %vm501_vm1, %v4997_v45 }
 0x709   : > { %5030 = vst.msk [vmem:[%s9332_s18 + $0xc8] sm:$0xff] %vm501_vm1, %v4998_v7  ;;  %5031 = vst.msk [vmem:[%s9332_s18 + $0xd0] sm:$0xff] %vm501_vm1, %v4999_v52 }
 0x70a   : > { %5032 = vst.msk [vmem:[%s9332_s18 + $0xd8] sm:$0xff] %vm501_vm1, %v5000_v16  ;;  %5033 = vst.msk [vmem:[%s9332_s18 + $0xe0] sm:$0xff] %vm501_vm1, %v5001_v59 }
 0x70b   : > { %5035 = vst.msk [vmem:[%s9332_s18 + $0xf0] sm:$0xff] %vm501_vm1, %v5003_v22  ;;  %5036 = vst.msk [vmem:[%s9332_s18 + $0xf8] sm:$0xff] %vm501_vm1, %v5004_v30 }
 0x70c   : > { %7107 = shalt.err (!%p7104_p2)
}
 0x70d   : > { %s7108_s25 = scalar_lea.hbm %s9440_s27, 4096  ;;  %s7112_s21 = scalar_lea.hbm %s9523_s3, 8192 }
 0x70e   : > { %p7109_p13 = scmp.ne.s32.totalorder %s9440_s27, %s7108_s25  ;;  %p7113_p4 = scmp.lt.u32.totalorder %s9440_s27, %s9523_s3 }
 0x70f   : > { %p7114_p5 = scmp.lt.u32.totalorder %s7112_s21, %s7108_s25  ;;  %p7116_p11 = scmp.lt.u32.totalorder %s7108_s25, %s9440_s27 }
 0x710   : > { %p7110_p6 = pnand %p7109_p13, %p9600_p0 }
 0x711   : > { %p7115_p8 = por %p7114_p5, %p7113_p4 }
 0x712   : > { %p7111_p10 = pneg %p7110_p6 }
 0x713   : > { %p7117_p1 = por %p7116_p11, %p7115_p8 }
 0x715   : > { %p7118_p3 = pnand %p7117_p1, %p7111_p10 }
 0x717   : > { %7121 = shalt.err (!%p7118_p3)
}
 0x718   : > { %s7174_s30 = smov 128   ;;  %s7175_s18 = smov 8  }
 0x719   : > { %6909 = dma.vmem_to_hbm [thread:$0]  (%p9600_p0), %s9444_s17, 4096, %s9440_s27, %s5038_s16, %s7174_s30, %s7174_s30, %s7175_s18  }
 0x71a PF: > { %s5066_s20 = sand.u32 1, %s7152_s12   ;;  %p9601_p7 = scmp.ne.s32.totalorder %s9557_s19, 0 }
 0x71b   : > { %p9602_p9 = scmp.ge.s32.totalorder %s7164_s15, 2  ;;  %s5067_s24 = scalar_lea.sflag [#allocation4], %s5066_s20 }
 0x71d   : > { %p6923_p12 = pnand %p9602_p9, %p9601_p7 }
 0x71f   : > { %7147 = dma.done.wait (!%p6923_p12), %s5067_s24, 4096  }
 0x720   : > { %7149 = vsyncadd (!%p6923_p12), %s5067_s24, 4294963200  ;;  %p17_p2 = scmp.ge.s32.totalorder %s7306_s4, 4   ;;  %s9603_s12 = smov %s7156_s13 }
 0x721   : > { %s9604_s13 = smov %s7160_s14  ;;  %s9605_s14 = smov %s7322_s9 }
 0x722   : > { %s9606_s15 = smov %s7306_s4  ;;  %19 = sbr.rel (!%p17_p2) target bundleno = 6 (0x6), region = 101 }
 0x729   :  { %5072 = vsyncpa [#allocation3], 1 }
 0x72a   :  { %5074 = vsyncpa [#allocation3 + $0x1], 1 }
 0x72b   :  { %5075 = vsyncpa [#allocation6], 1 }
 0x72c   :  { %5076 = vsyncpa [#allocation4], 1 }
 0x72d   :  { %5078 = vsyncpa [#allocation4 + $0x1], 1 }

</bundles_post_ra>
